<compile_context>
chip_gen: v5e
topology: v5e:2x2
jax: 0.10.0
libtpu: 0.0.40
codegen_flags: <defaults>
</compile_context>

<pallas_src>
import jax
import jax.numpy as jnp
from jax import lax
from jax.experimental import pallas as pl
from jax.experimental.pallas import tpu as pltpu

INI = 0.01
NEG_INF = -1e18


# --------------------------------------------------------------------------
# Fused forward kernel (factory closes over the static sizes)
# --------------------------------------------------------------------------
def _make_fused_kernel(n_layer, n_hop, B, T, seq, ns, H, ns_pad, h_pad):
    f32 = jnp.float32

    def kernel(ms_ref, attn_mem_ref, lstm_in_ref, wm_cat_ref,
               init_i_ref, init_h_ref, init_c_ref, *rest):
        # rest = [w_ih_0, w_hh_0, b_0, ..., w_ih_{L-1}, w_hh_{L-1}, b_{L-1},
        #         hop_wq, hop_v, attn_wq, attn_v,        (inputs)
        #         scores, states]                        (outputs)
        lstm_refs = rest[:3 * n_layer]
        (hop_wq_ref, hop_v_ref, attn_wq_ref, attn_v_ref,
         scores_ref, states_ref) = rest[3 * n_layer:]

        b = pl.program_id(0)
        cdt = wm_cat_ref.dtype               # MXU operand dtype (f32 or bf16)

        # ---- _prepare: one fused (B*ns, D) @ (D, 2H) projection -------------
        mem_rows = jnp.concatenate(
            [attn_mem_ref[bb] for bb in range(B)], axis=0)         # (B*ns, D)
        feat = jnp.dot(mem_rows, wm_cat_ref[...],
                       preferred_element_type=f32)                 # (B*ns, 2H)

        # ---- n_layer LSTM, batch stacked on the sublane axis ----------------
        x_all = lstm_in_ref[...]                                   # (B, seq, D)
        init_h_all = init_h_ref[...]                               # (n_layer, H)
        init_c_all = init_c_ref[...]
        hs = None
        # TODO(synk): nn.LSTM inter-layer dropout is training-only; not applied.
        for l in range(n_layer):
            w_ih = lstm_refs[3 * l][...]                           # (Din, 4H) cdt
            w_hh = lstm_refs[3 * l + 1][...]                       # (H, 4H)   cdt
            bias = lstm_refs[3 * l + 2][...]                       # (1, 4H)   f32

            # Input projection hoisted off the serial recurrence as ONE matmul
            # over t-major rows (row index = t*B + bb).  No staging scratch.
            if l == 0:
                x_rows = jnp.concatenate(
                    [x_all[bb][t:t + 1, :]
                     for t in range(seq) for bb in range(B)], axis=0)   # (seq*B, D)
                xproj = jnp.dot(x_rows, w_ih,
                                preferred_element_type=f32) + bias      # (seq*B, 4H)
                xp = [jnp.dot(init_i_ref[...], w_ih,
                              preferred_element_type=f32) + bias]       # t=0: (1, 4H)
                xp += [xproj[t * B:(t + 1) * B, :] for t in range(seq)]
            else:
                h_rows = jnp.concatenate(hs, axis=0).astype(cdt)        # (T*B, H)
                xproj = jnp.dot(h_rows, w_ih,
                                preferred_element_type=f32) + bias      # (T*B, 4H)
                xp = [xproj[t * B:(t + 1) * B, :] for t in range(T)]

            h = jnp.broadcast_to(init_h_all[l:l + 1, :], (B, H))
            c = jnp.broadcast_to(init_c_all[l:l + 1, :], (B, H))
            hs = []
            # TODO(synk): at realistic T/H use lax.fori_loop(..., unroll=k) and
            # re-load w_ih/w_hh per chunk to bound vreg live ranges.
            for t in range(T):
                gates = xp[t] + jnp.dot(h.astype(cdt), w_hh,
                                        preferred_element_type=f32)     # (B, 4H)
                # One full-width sigmoid + one full-width tanh on the 4H=128
                # lane gate vector, then slice -> halves EUP pushes per step.
                sg = jax.nn.sigmoid(gates)
                tg = jnp.tanh(gates)
                i_g = sg[:, 0 * H:1 * H]
                f_g = sg[:, 1 * H:2 * H]
                g_g = tg[:, 2 * H:3 * H]
                o_g = sg[:, 3 * H:4 * H]
                c = f_g * c + i_g * g_g
                h = o_g * jnp.tanh(c)
                hs.append(h)                       # stays in vregs; no row stores

        # ---- n_hop glimpses + final pointer score (per batch row) -----------
        hop_wq = hop_wq_ref[...]
        attn_wq = attn_wq_ref[...]
        v_hop = hop_v_ref[...].reshape(1, 1, H)    # hoisted broadcasts
        v_attn = attn_v_ref[...].reshape(1, 1, H)
        lane = lax.broadcasted_iota(jnp.int32, (1, ns), 1)
        zero_s = jnp.zeros((T, ns_pad - ns), f32) if ns_pad > ns else None
        zero_h = jnp.zeros((T, h_pad - H), f32) if h_pad > H else None

        def score_fn(feat_e, q, wq, v_e):
            qp = jnp.dot(q.astype(cdt), wq, preferred_element_type=f32)  # (T, H)
            s = jnp.tanh(feat_e + qp[:, None, :])                        # (T, ns, H)
            return jnp.sum(s * v_e, axis=-1)                             # (T, ns)

        for bb in range(B):
            attn_feat = feat[bb * ns:(bb + 1) * ns, :H]                  # (ns, H)
            hop_feat = feat[bb * ns:(bb + 1) * ns, H:]
            hop_feat_e = hop_feat[None, :, :]     # hoisted out of hop loop
            attn_feat_e = attn_feat[None, :, :]
            hop_feat_c = hop_feat.astype(cdt)

            # NOTE: mem_sizes == 0 gives a 0/0 masked softmax (NaN), same as
            # the PyTorch reference; callers must pass mem_sizes >= 1.
            size = ms_ref[b * B + bb]
            mask_bias = jnp.where(lane < size, 0.0, NEG_INF).astype(f32)  # (1, ns)

            query = jnp.concatenate(
                [hs[t][bb:bb + 1, :] for t in range(T)], axis=0)          # (T, H)

            for _ in range(n_hop):
                sc = score_fn(hop_feat_e, query, hop_wq, v_hop) + mask_bias
                m = jnp.max(sc, axis=-1, keepdims=True)
                e = jnp.exp(sc - m)
                denom = jnp.sum(e, axis=-1, keepdims=True)
                r = pl.reciprocal(denom, approx=True)
                r = r * (2.0 - denom * r)          # one Newton step -> ~f32 exact
                query = jnp.dot((e * r).astype(cdt), hop_feat_c,
                                preferred_element_type=f32)               # (T, H)

            final = score_fn(attn_feat_e, query, attn_wq, v_attn)         # (T, ns)

            # Lane-dense (128-multiple) padded writeback -> unmasked stores.
            if zero_s is not None:
                final = jnp.concatenate([final, zero_s], axis=1)
            scores_ref[bb] = final
            if zero_h is not None:
                query = jnp.concatenate([query, zero_h], axis=1)
            states_ref[bb] = query

    return kernel


# --------------------------------------------------------------------------
# One-time weight packing (done OUTSIDE the forward)
# --------------------------------------------------------------------------
def pack_params(params, compute_dtype=jnp.float32):
    """Repack PyTorch-layout parameters into kernel-friendly layouts.

    compute_dtype is the MXU-operand dtype (use jnp.bfloat16 on v6e/v7x);
    biases / initial states / v vectors stay f32 (elementwise path).
    """
    H = params["attn_wq"].shape[0]
    D = params["init_i"].shape[0]
    cdt = compute_dtype
    return dict(
        # fused _prepare projection weight: columns [0:H]=attn_wm, [H:2H]=hop_wm
        wm_cat=jnp.concatenate([params["attn_wm"], params["hop_wm"]],
                               axis=1).astype(cdt),
        init_i=params["init_i"].reshape(1, D).astype(cdt),
        init_h=params["init_h"],
        init_c=params["init_c"],
        attn_wq=params["attn_wq"].astype(cdt),
        attn_v=params["attn_v"].reshape(1, H),
        hop_wq=params["hop_wq"].astype(cdt),
        hop_v=params["hop_v"].reshape(1, H),
        # PyTorch (4H, Din) gate-row order (i,f,g,o); transpose -> (Din, 4H)
        w_ih=[w.T.astype(cdt) for w in params["w_ih"]],
        w_hh=[w.T.astype(cdt) for w in params["w_hh"]],
        b=[(bi + bh).reshape(1, -1)
           for bi, bh in zip(params["b_ih"], params["b_hh"])],
    )


# --------------------------------------------------------------------------
# Forward wrapper: a single pallas_call
# --------------------------------------------------------------------------
def lstm_pointer_net_forward(packed, attn_mem, mem_sizes, lstm_in, n_hop,
                             batch_block=None, vmem_limit_bytes=None):
    bs, ns, D = attn_mem.shape
    H = packed["attn_wq"].shape[0]
    n_layer = packed["init_h"].shape[0]
    seq = lstm_in.shape[1]
    T = seq + 1
    cdt = packed["wm_cat"].dtype

    # Batch block: amortizes per-grid-step overhead and fills MXU sublanes in
    # the recurrent (B, H) @ (H, 4H) matmul.  On v7x pick batch_block so the
    # remaining grid steps still cover both TensorCores (e.g. bs // 2).
    B = batch_block if batch_block is not None else min(bs, 8)
    assert bs % B == 0, "bs must be divisible by the batch block"

    LANE = 128
    ns_pad = -(-ns // LANE) * LANE      # lane-dense output slabs
    h_pad = -(-H // LANE) * LANE

    kernel = _make_fused_kernel(n_layer, n_hop, B, T, seq, ns, H, ns_pad, h_pad)

    lstm_args, lstm_specs = [], []
    for l in range(n_layer):
        w_ih, w_hh, bias = packed["w_ih"][l], packed["w_hh"][l], packed["b"][l]
        lstm_args += [w_ih, w_hh, bias]
        lstm_specs += [
            pl.BlockSpec(w_ih.shape, lambda b, ms: (0, 0)),
            pl.BlockSpec(w_hh.shape, lambda b, ms: (0, 0)),
            pl.BlockSpec(bias.shape, lambda b, ms: (0, 0)),
        ]

    grid_spec = pltpu.PrefetchScalarGridSpec(
        num_scalar_prefetch=1,                     # mem_sizes -> SMEM
        grid=(bs // B,),
        in_specs=[
            pl.BlockSpec((B, ns, D), lambda b, ms: (b, 0, 0)),    # attn_mem
            pl.BlockSpec((B, seq, D), lambda b, ms: (b, 0, 0)),   # lstm_in
            pl.BlockSpec((D, 2 * H), lambda b, ms: (0, 0)),       # wm_cat
            pl.BlockSpec((1, D), lambda b, ms: (0, 0)),           # init_i
            pl.BlockSpec((n_layer, H), lambda b, ms: (0, 0)),     # init_h
            pl.BlockSpec((n_layer, H), lambda b, ms: (0, 0)),     # init_c
            *lstm_specs,                                          # LSTM weights
            pl.BlockSpec((H, H), lambda b, ms: (0, 0)),           # hop_wq
            pl.BlockSpec((1, H), lambda b, ms: (0, 0)),           # hop_v
            pl.BlockSpec((H, H), lambda b, ms: (0, 0)),           # attn_wq
            pl.BlockSpec((1, H), lambda b, ms: (0, 0)),           # attn_v
        ],
        out_specs=[
            pl.BlockSpec((B, T, ns_pad), lambda b, ms: (b, 0, 0)),  # scores (padded)
            pl.BlockSpec((B, T, h_pad), lambda b, ms: (b, 0, 0)),   # states (padded)
        ],
    )

    scores_pad, states_pad = pl.pallas_call(
        kernel,
        out_shape=(jax.ShapeDtypeStruct((bs, T, ns_pad), jnp.float32),
                   jax.ShapeDtypeStruct((bs, T, h_pad), jnp.float32)),
        grid_spec=grid_spec,
        compiler_params=pltpu.CompilerParams(
            dimension_semantics=("parallel",),     # megacore / v7x 2-TC split
            vmem_limit_bytes=vmem_limit_bytes),
    )(mem_sizes.astype(jnp.int32),
      attn_mem.astype(cdt),
      lstm_in.astype(cdt),
      packed["wm_cat"], packed["init_i"], packed["init_h"], packed["init_c"],
      *lstm_args,
      packed["hop_wq"], packed["hop_v"], packed["attn_wq"], packed["attn_v"])

    # Slice the lane-padded slabs back to logical widths (cheap XLA slice).
    return dict(scores=scores_pad[:, :, :ns], states=states_pad[:, :, :H])


# --------------------------------------------------------------------------
# Pure-JAX reference (for correctness check)
# --------------------------------------------------------------------------
def ref_forward(params, attn_mem, mem_sizes, lstm_in, n_hop):
    bs, ns, D = attn_mem.shape
    H = params["attn_wq"].shape[0]
    n_layer = params["init_h"].shape[0]
    attn_feat = attn_mem @ params["attn_wm"]
    hop_feat = attn_mem @ params["hop_wm"]
    init_i = jnp.broadcast_to(params["init_i"][None, None, :], (bs, 1, D))
    x = jnp.transpose(jnp.concatenate([init_i, lstm_in], axis=1), (1, 0, 2))

    def run_layer(x, w_ih, w_hh, b_ih, b_hh, h0, c0):
        def step(carry, x_t):
            h, c = carry
            gates = x_t @ w_ih.T + h @ w_hh.T + b_ih + b_hh
            i, f, g, o = jnp.split(gates, 4, axis=-1)
            c = jax.nn.sigmoid(f) * c + jax.nn.sigmoid(i) * jnp.tanh(g)
            h = jax.nn.sigmoid(o) * jnp.tanh(c)
            return (h, c), h
        _, ys = lax.scan(step, (h0, c0), x)
        return ys

    for l in range(n_layer):
        h0 = jnp.broadcast_to(params["init_h"][l][None, :], (bs, H))
        c0 = jnp.broadcast_to(params["init_c"][l][None, :], (bs, H))
        x = run_layer(x, params["w_ih"][l], params["w_hh"][l],
                      params["b_ih"][l], params["b_hh"][l], h0, c0)
    query = jnp.transpose(x, (1, 0, 2))

    valid = jnp.arange(ns)[None, :] < mem_sizes[:, None]
    bias = jnp.where(valid, 0.0, NEG_INF).astype(jnp.float32)[:, None, :]

    def score_fn(feat, q, w, v):
        s = jnp.tanh(feat[:, None, :, :] + (q @ w)[:, :, None, :])
        return jnp.sum(s * v[None, None, None, :], axis=-1)

    for _ in range(n_hop):
        sc = score_fn(hop_feat, query, params["hop_wq"], params["hop_v"]) + bias
        nrm = jax.nn.softmax(sc, axis=-1)
        query = jnp.einsum("bqs,bsh->bqh", nrm, hop_feat)
    scores = score_fn(attn_feat, query, params["attn_wq"], params["attn_v"])
    return dict(scores=scores, states=query)


# --------------------------------------------------------------------------
# Deterministic parameter init (shapes match LSTMPointerNet.__init__)
# --------------------------------------------------------------------------
def init_params(key, D, H, n_layer):
    ks = jax.random.split(key, 10)

    def uni(k, shape, a):
        return jax.random.uniform(k, shape, jnp.float32, -a, a)

    def xavier(k, shape):
        std = (2.0 / (shape[0] + shape[1])) ** 0.5
        return std * jax.random.normal(k, shape, jnp.float32)

    params = dict(
        init_h=uni(ks[0], (n_layer, H), INI),
        init_c=uni(ks[1], (n_layer, H), INI),
        init_i=uni(ks[2], (D,), 0.1),
        attn_wm=xavier(ks[3], (D, H)),
        attn_wq=xavier(ks[4], (H, H)),
        attn_v=uni(ks[5], (H,), INI),
        hop_wm=xavier(ks[6], (D, H)),
        hop_wq=xavier(ks[7], (H, H)),
        hop_v=uni(ks[8], (H,), INI),
    )
    kb = 1.0 / (H ** 0.5)
    kk = jax.random.split(ks[9], 4 * n_layer)
    w_ih, w_hh, b_ih, b_hh = [], [], [], []
    for l in range(n_layer):
        din = D if l == 0 else H
        w_ih.append(uni(kk[4 * l + 0], (4 * H, din), kb))
        w_hh.append(uni(kk[4 * l + 1], (4 * H, H), kb))
        b_ih.append(uni(kk[4 * l + 2], (4 * H,), kb))
        b_hh.append(uni(kk[4 * l + 3], (4 * H,), kb))
    params.update(w_ih=w_ih, w_hh=w_hh, b_ih=b_ih, b_hh=b_hh)
    return params


if __name__ == "__main__":
    D, H, n_layer, n_hop = 32, 32, 2, 2
    bs, ns, seq = 2, 8, 4

    key = jax.random.PRNGKey(0)
    kp, ka, kl = jax.random.split(key, 3)
    params = init_params(kp, D, H, n_layer)

    attn_mem = jax.random.normal(ka, (bs, ns, D), jnp.float32)
    lstm_in = jax.random.normal(kl, (bs, seq, D), jnp.float32)
    mem_sizes = jnp.array([8, 6], dtype=jnp.int32)
    # zero-length rows would make the masked softmax 0/0 (NaN), as in PyTorch
    assert int(mem_sizes.min()) >= 1

    ref = ref_forward(params, attn_mem, mem_sizes, lstm_in, n_hop)
    fwd = jax.jit(lstm_pointer_net_forward, static_argnums=(4,))

    # --- f32 MXU operands: tight check against the pure-JAX reference -------
    packed32 = pack_params(params, jnp.float32)
    out32 = fwd(packed32, attn_mem, mem_sizes, lstm_in, n_hop)
    scores32 = jax.block_until_ready(out32["scores"])
    states32 = jax.block_until_ready(out32["states"])
    assert scores32.shape == (bs, seq + 1, ns)
    assert states32.shape == (bs, seq + 1, H)
    assert jnp.allclose(scores32, ref["scores"], atol=5e-4, rtol=5e-4), float(
        jnp.max(jnp.abs(scores32 - ref["scores"])))
    assert jnp.allclose(states32, ref["states"], atol=5e-4, rtol=5e-4), float(
        jnp.max(jnp.abs(states32 - ref["states"])))

    # --- bf16 MXU operands (v6e/v7x fast path): loose sanity tolerance -------
    packed16 = pack_params(params, jnp.bfloat16)
    out16 = fwd(packed16, attn_mem, mem_sizes, lstm_in, n_hop)
    scores16 = jax.block_until_ready(out16["scores"])
    states16 = jax.block_until_ready(out16["states"])
    assert jnp.allclose(scores16, ref["scores"], atol=7.5e-2), float(
        jnp.max(jnp.abs(scores16 - ref["scores"])))
    assert jnp.allclose(states16, ref["states"], atol=2e-1), float(
        jnp.max(jnp.abs(states16 - ref["states"])))

    print("KERNEL_OK")
</pallas_src>

<mosaic_0001>
module attributes {stable_mosaic.version = 11 : i64} {
  func.func @kernel(%arg0: i32, %arg1: memref<2xi32, #tpu.memory_space<smem>>, %arg2: memref<2x8x32xf32, #tpu.memory_space<vmem>>, %arg3: memref<2x4x32xf32, #tpu.memory_space<vmem>>, %arg4: memref<32x64xf32, #tpu.memory_space<vmem>>, %arg5: memref<1x32xf32, #tpu.memory_space<vmem>>, %arg6: memref<2x32xf32, #tpu.memory_space<vmem>>, %arg7: memref<2x32xf32, #tpu.memory_space<vmem>>, %arg8: memref<32x128xf32, #tpu.memory_space<vmem>>, %arg9: memref<32x128xf32, #tpu.memory_space<vmem>>, %arg10: memref<1x128xf32, #tpu.memory_space<vmem>>, %arg11: memref<32x128xf32, #tpu.memory_space<vmem>>, %arg12: memref<32x128xf32, #tpu.memory_space<vmem>>, %arg13: memref<1x128xf32, #tpu.memory_space<vmem>>, %arg14: memref<32x32xf32, #tpu.memory_space<vmem>>, %arg15: memref<1x32xf32, #tpu.memory_space<vmem>>, %arg16: memref<32x32xf32, #tpu.memory_space<vmem>>, %arg17: memref<1x32xf32, #tpu.memory_space<vmem>>, %arg18: memref<2x5x128xf32, #tpu.memory_space<vmem>>, %arg19: memref<2x5x128xf32, #tpu.memory_space<vmem>>) attributes {dimension_semantics = [#tpu.dimension_semantics<parallel>], iteration_bounds = array<i64: 1>, scalar_prefetch = 1 : i64, scratch_operands = 0 : i64, tpu.core_type = #tpu.core_type<tc>, window_params = [{transform_indices = @transform_0, window_bounds = array<i64: 2, 8, 32>}, {transform_indices = @transform_1, window_bounds = array<i64: 2, 4, 32>}, {pipeline_mode = #tpu.pipeline_mode<synchronous>, transform_indices = @transform_2, window_bounds = array<i64: 32, 64>}, {pipeline_mode = #tpu.pipeline_mode<synchronous>, transform_indices = @transform_3, window_bounds = array<i64: 1, 32>}, {pipeline_mode = #tpu.pipeline_mode<synchronous>, transform_indices = @transform_4, window_bounds = array<i64: 2, 32>}, {pipeline_mode = #tpu.pipeline_mode<synchronous>, transform_indices = @transform_5, window_bounds = array<i64: 2, 32>}, {pipeline_mode = #tpu.pipeline_mode<synchronous>, transform_indices = @transform_6, window_bounds = array<i64: 32, 128>}, {pipeline_mode = #tpu.pipeline_mode<synchronous>, transform_indices = @transform_7, window_bounds = array<i64: 32, 128>}, {pipeline_mode = #tpu.pipeline_mode<synchronous>, transform_indices = @transform_8, window_bounds = array<i64: 1, 128>}, {pipeline_mode = #tpu.pipeline_mode<synchronous>, transform_indices = @transform_9, window_bounds = array<i64: 32, 128>}, {pipeline_mode = #tpu.pipeline_mode<synchronous>, transform_indices = @transform_10, window_bounds = array<i64: 32, 128>}, {pipeline_mode = #tpu.pipeline_mode<synchronous>, transform_indices = @transform_11, window_bounds = array<i64: 1, 128>}, {pipeline_mode = #tpu.pipeline_mode<synchronous>, transform_indices = @transform_12, window_bounds = array<i64: 32, 32>}, {pipeline_mode = #tpu.pipeline_mode<synchronous>, transform_indices = @transform_13, window_bounds = array<i64: 1, 32>}, {pipeline_mode = #tpu.pipeline_mode<synchronous>, transform_indices = @transform_14, window_bounds = array<i64: 32, 32>}, {pipeline_mode = #tpu.pipeline_mode<synchronous>, transform_indices = @transform_15, window_bounds = array<i64: 1, 32>}, {transform_indices = @transform_16, window_bounds = array<i64: 2, 5, 128>}, {transform_indices = @transform_17, window_bounds = array<i64: 2, 5, 128>}]} {
    %c0 = arith.constant 0 : index
    %c0_0 = arith.constant 0 : index
    %c0_1 = arith.constant 0 : index
    %0 = vector.load %arg2[%c0, %c0_0, %c0_1] : memref<2x8x32xf32, #tpu.memory_space<vmem>>, vector<1x8x32xf32>
    %1 = vector.shape_cast %0 : vector<1x8x32xf32> to vector<8x32xf32>
    %c1 = arith.constant 1 : index
    %c0_2 = arith.constant 0 : index
    %c0_3 = arith.constant 0 : index
    %2 = vector.load %arg2[%c1, %c0_2, %c0_3] : memref<2x8x32xf32, #tpu.memory_space<vmem>>, vector<1x8x32xf32>
    %3 = vector.shape_cast %2 : vector<1x8x32xf32> to vector<8x32xf32>
    %4 = tpu.concatenate %1, %3 in 0 : vector<8x32xf32>, vector<8x32xf32> -> vector<16x32xf32>
    %c0_4 = arith.constant 0 : index
    %c0_5 = arith.constant 0 : index
    %5 = vector.load %arg4[%c0_4, %c0_5] : memref<32x64xf32, #tpu.memory_space<vmem>>, vector<32x64xf32>
    %cst = arith.constant dense<0.000000e+00> : vector<16x64xf32>
    %6 = tpu.matmul %4, %5, %cst {dimension_numbers = #tpu.dot_dimension_numbers<[1], [0], [0], [1], [0, 0, 1, 1], [], []>} : vector<16x32xf32>, vector<32x64xf32>, vector<16x64xf32> -> vector<16x64xf32>
    %c0_6 = arith.constant 0 : index
    %c0_7 = arith.constant 0 : index
    %c0_8 = arith.constant 0 : index
    %7 = vector.load %arg3[%c0_6, %c0_7, %c0_8] : memref<2x4x32xf32, #tpu.memory_space<vmem>>, vector<2x4x32xf32>
    %c0_9 = arith.constant 0 : index
    %c0_10 = arith.constant 0 : index
    %8 = vector.load %arg6[%c0_9, %c0_10] : memref<2x32xf32, #tpu.memory_space<vmem>>, vector<2x32xf32>
    %c0_11 = arith.constant 0 : index
    %c0_12 = arith.constant 0 : index
    %9 = vector.load %arg7[%c0_11, %c0_12] : memref<2x32xf32, #tpu.memory_space<vmem>>, vector<2x32xf32>
    %c0_13 = arith.constant 0 : index
    %c0_14 = arith.constant 0 : index
    %10 = vector.load %arg8[%c0_13, %c0_14] : memref<32x128xf32, #tpu.memory_space<vmem>>, vector<32x128xf32>
    %c0_15 = arith.constant 0 : index
    %c0_16 = arith.constant 0 : index
    %11 = vector.load %arg9[%c0_15, %c0_16] : memref<32x128xf32, #tpu.memory_space<vmem>>, vector<32x128xf32>
    %c0_17 = arith.constant 0 : index
    %c0_18 = arith.constant 0 : index
    %12 = vector.load %arg10[%c0_17, %c0_18] : memref<1x128xf32, #tpu.memory_space<vmem>>, vector<1x128xf32>
    %13 = vector.extract_strided_slice %7 {offsets = [0, 0, 0], sizes = [1, 4, 32], strides = [1, 1, 1]} : vector<2x4x32xf32> to vector<1x4x32xf32>
    %14 = vector.shape_cast %13 : vector<1x4x32xf32> to vector<4x32xf32>
    %15 = vector.extract_strided_slice %14 {offsets = [0, 0], sizes = [1, 32], strides = [1, 1]} : vector<4x32xf32> to vector<1x32xf32>
    %16 = vector.extract_strided_slice %7 {offsets = [1, 0, 0], sizes = [1, 4, 32], strides = [1, 1, 1]} : vector<2x4x32xf32> to vector<1x4x32xf32>
    %17 = vector.shape_cast %16 : vector<1x4x32xf32> to vector<4x32xf32>
    %18 = vector.extract_strided_slice %17 {offsets = [0, 0], sizes = [1, 32], strides = [1, 1]} : vector<4x32xf32> to vector<1x32xf32>
    %19 = vector.extract_strided_slice %7 {offsets = [0, 0, 0], sizes = [1, 4, 32], strides = [1, 1, 1]} : vector<2x4x32xf32> to vector<1x4x32xf32>
    %20 = vector.shape_cast %19 : vector<1x4x32xf32> to vector<4x32xf32>
    %21 = vector.extract_strided_slice %20 {offsets = [1, 0], sizes = [1, 32], strides = [1, 1]} : vector<4x32xf32> to vector<1x32xf32>
    %22 = vector.extract_strided_slice %7 {offsets = [1, 0, 0], sizes = [1, 4, 32], strides = [1, 1, 1]} : vector<2x4x32xf32> to vector<1x4x32xf32>
    %23 = vector.shape_cast %22 : vector<1x4x32xf32> to vector<4x32xf32>
    %24 = vector.extract_strided_slice %23 {offsets = [1, 0], sizes = [1, 32], strides = [1, 1]} : vector<4x32xf32> to vector<1x32xf32>
    %25 = vector.extract_strided_slice %7 {offsets = [0, 0, 0], sizes = [1, 4, 32], strides = [1, 1, 1]} : vector<2x4x32xf32> to vector<1x4x32xf32>
    %26 = vector.shape_cast %25 : vector<1x4x32xf32> to vector<4x32xf32>
    %27 = vector.extract_strided_slice %26 {offsets = [2, 0], sizes = [1, 32], strides = [1, 1]} : vector<4x32xf32> to vector<1x32xf32>
    %28 = vector.extract_strided_slice %7 {offsets = [1, 0, 0], sizes = [1, 4, 32], strides = [1, 1, 1]} : vector<2x4x32xf32> to vector<1x4x32xf32>
    %29 = vector.shape_cast %28 : vector<1x4x32xf32> to vector<4x32xf32>
    %30 = vector.extract_strided_slice %29 {offsets = [2, 0], sizes = [1, 32], strides = [1, 1]} : vector<4x32xf32> to vector<1x32xf32>
    %31 = vector.extract_strided_slice %7 {offsets = [0, 0, 0], sizes = [1, 4, 32], strides = [1, 1, 1]} : vector<2x4x32xf32> to vector<1x4x32xf32>
    %32 = vector.shape_cast %31 : vector<1x4x32xf32> to vector<4x32xf32>
    %33 = vector.extract_strided_slice %32 {offsets = [3, 0], sizes = [1, 32], strides = [1, 1]} : vector<4x32xf32> to vector<1x32xf32>
    %34 = vector.extract_strided_slice %7 {offsets = [1, 0, 0], sizes = [1, 4, 32], strides = [1, 1, 1]} : vector<2x4x32xf32> to vector<1x4x32xf32>
    %35 = vector.shape_cast %34 : vector<1x4x32xf32> to vector<4x32xf32>
    %36 = vector.extract_strided_slice %35 {offsets = [3, 0], sizes = [1, 32], strides = [1, 1]} : vector<4x32xf32> to vector<1x32xf32>
    %37 = tpu.concatenate %15, %18, %21, %24, %27, %30, %33, %36 in 0 : vector<1x32xf32>, vector<1x32xf32>, vector<1x32xf32>, vector<1x32xf32>, vector<1x32xf32>, vector<1x32xf32>, vector<1x32xf32>, vector<1x32xf32> -> vector<8x32xf32>
    %cst_19 = arith.constant dense<0.000000e+00> : vector<8x128xf32>
    %38 = tpu.matmul %37, %10, %cst_19 {dimension_numbers = #tpu.dot_dimension_numbers<[1], [0], [0], [1], [0, 0, 1, 1], [], []>} : vector<8x32xf32>, vector<32x128xf32>, vector<8x128xf32> -> vector<8x128xf32>
    %39 = vector.broadcast %12 : vector<1x128xf32> to vector<8x128xf32>
    %40 = arith.addf %38, %39 : vector<8x128xf32>
    %c0_20 = arith.constant 0 : index
    %c0_21 = arith.constant 0 : index
    %41 = vector.load %arg5[%c0_20, %c0_21] : memref<1x32xf32, #tpu.memory_space<vmem>>, vector<1x32xf32>
    %cst_22 = arith.constant dense<0.000000e+00> : vector<1x128xf32>
    %42 = tpu.matmul %41, %10, %cst_22 {dimension_numbers = #tpu.dot_dimension_numbers<[1], [0], [0], [1], [0, 0, 1, 1], [], []>} : vector<1x32xf32>, vector<32x128xf32>, vector<1x128xf32> -> vector<1x128xf32>
    %43 = arith.addf %42, %12 : vector<1x128xf32>
    %44 = vector.extract_strided_slice %40 {offsets = [0, 0], sizes = [2, 128], strides = [1, 1]} : vector<8x128xf32> to vector<2x128xf32>
    %45 = vector.extract_strided_slice %40 {offsets = [2, 0], sizes = [2, 128], strides = [1, 1]} : vector<8x128xf32> to vector<2x128xf32>
    %46 = vector.extract_strided_slice %40 {offsets = [4, 0], sizes = [2, 128], strides = [1, 1]} : vector<8x128xf32> to vector<2x128xf32>
    %47 = vector.extract_strided_slice %40 {offsets = [6, 0], sizes = [2, 128], strides = [1, 1]} : vector<8x128xf32> to vector<2x128xf32>
    %48 = vector.extract_strided_slice %8 {offsets = [0, 0], sizes = [1, 32], strides = [1, 1]} : vector<2x32xf32> to vector<1x32xf32>
    %49 = vector.shape_cast %48 : vector<1x32xf32> to vector<1x32xf32>
    %50 = vector.broadcast %49 : vector<1x32xf32> to vector<2x32xf32>
    %51 = vector.extract_strided_slice %9 {offsets = [0, 0], sizes = [1, 32], strides = [1, 1]} : vector<2x32xf32> to vector<1x32xf32>
    %52 = vector.shape_cast %51 : vector<1x32xf32> to vector<1x32xf32>
    %53 = vector.broadcast %52 : vector<1x32xf32> to vector<2x32xf32>
    %cst_23 = arith.constant dense<0.000000e+00> : vector<2x128xf32>
    %54 = tpu.matmul %50, %11, %cst_23 {dimension_numbers = #tpu.dot_dimension_numbers<[1], [0], [0], [1], [0, 0, 1, 1], [], []>} : vector<2x32xf32>, vector<32x128xf32>, vector<2x128xf32> -> vector<2x128xf32>
    %55 = vector.broadcast %43 : vector<1x128xf32> to vector<2x128xf32>
    %56 = arith.addf %55, %54 : vector<2x128xf32>
    %57 = arith.negf %56 : vector<2x128xf32>
    %58 = math.exp %57 : vector<2x128xf32>
    %cst_24 = arith.constant 1.000000e+00 : f32
    %59 = vector.broadcast %cst_24 : f32 to vector<2x128xf32>
    %60 = arith.addf %59, %58 : vector<2x128xf32>
    %61 = arith.divf %59, %60 : vector<2x128xf32>
    %62 = math.tanh %56 : vector<2x128xf32>
    %63 = vector.extract_strided_slice %61 {offsets = [0, 0], sizes = [2, 32], strides = [1, 1]} : vector<2x128xf32> to vector<2x32xf32>
    %64 = vector.extract_strided_slice %61 {offsets = [0, 32], sizes = [2, 32], strides = [1, 1]} : vector<2x128xf32> to vector<2x32xf32>
    %65 = vector.extract_strided_slice %62 {offsets = [0, 64], sizes = [2, 32], strides = [1, 1]} : vector<2x128xf32> to vector<2x32xf32>
    %66 = vector.extract_strided_slice %61 {offsets = [0, 96], sizes = [2, 32], strides = [1, 1]} : vector<2x128xf32> to vector<2x32xf32>
    %67 = arith.mulf %64, %53 : vector<2x32xf32>
    %68 = arith.mulf %63, %65 : vector<2x32xf32>
    %69 = arith.addf %67, %68 : vector<2x32xf32>
    %70 = math.tanh %69 : vector<2x32xf32>
    %71 = arith.mulf %66, %70 : vector<2x32xf32>
    %cst_25 = arith.constant dense<0.000000e+00> : vector<2x128xf32>
    %72 = tpu.matmul %71, %11, %cst_25 {dimension_numbers = #tpu.dot_dimension_numbers<[1], [0], [0], [1], [0, 0, 1, 1], [], []>} : vector<2x32xf32>, vector<32x128xf32>, vector<2x128xf32> -> vector<2x128xf32>
    %73 = arith.addf %44, %72 : vector<2x128xf32>
    %74 = arith.negf %73 : vector<2x128xf32>
    %75 = math.exp %74 : vector<2x128xf32>
    %cst_26 = arith.constant 1.000000e+00 : f32
    %76 = vector.broadcast %cst_26 : f32 to vector<2x128xf32>
    %77 = arith.addf %76, %75 : vector<2x128xf32>
    %78 = arith.divf %76, %77 : vector<2x128xf32>
    %79 = math.tanh %73 : vector<2x128xf32>
    %80 = vector.extract_strided_slice %78 {offsets = [0, 0], sizes = [2, 32], strides = [1, 1]} : vector<2x128xf32> to vector<2x32xf32>
    %81 = vector.extract_strided_slice %78 {offsets = [0, 32], sizes = [2, 32], strides = [1, 1]} : vector<2x128xf32> to vector<2x32xf32>
    %82 = vector.extract_strided_slice %79 {offsets = [0, 64], sizes = [2, 32], strides = [1, 1]} : vector<2x128xf32> to vector<2x32xf32>
    %83 = vector.extract_strided_slice %78 {offsets = [0, 96], sizes = [2, 32], strides = [1, 1]} : vector<2x128xf32> to vector<2x32xf32>
    %84 = arith.mulf %81, %69 : vector<2x32xf32>
    %85 = arith.mulf %80, %82 : vector<2x32xf32>
    %86 = arith.addf %84, %85 : vector<2x32xf32>
    %87 = math.tanh %86 : vector<2x32xf32>
    %88 = arith.mulf %83, %87 : vector<2x32xf32>
    %cst_27 = arith.constant dense<0.000000e+00> : vector<2x128xf32>
    %89 = tpu.matmul %88, %11, %cst_27 {dimension_numbers = #tpu.dot_dimension_numbers<[1], [0], [0], [1], [0, 0, 1, 1], [], []>} : vector<2x32xf32>, vector<32x128xf32>, vector<2x128xf32> -> vector<2x128xf32>
    %90 = arith.addf %45, %89 : vector<2x128xf32>
    %91 = arith.negf %90 : vector<2x128xf32>
    %92 = math.exp %91 : vector<2x128xf32>
    %cst_28 = arith.constant 1.000000e+00 : f32
    %93 = vector.broadcast %cst_28 : f32 to vector<2x128xf32>
    %94 = arith.addf %93, %92 : vector<2x128xf32>
    %95 = arith.divf %93, %94 : vector<2x128xf32>
    %96 = math.tanh %90 : vector<2x128xf32>
    %97 = vector.extract_strided_slice %95 {offsets = [0, 0], sizes = [2, 32], strides = [1, 1]} : vector<2x128xf32> to vector<2x32xf32>
    %98 = vector.extract_strided_slice %95 {offsets = [0, 32], sizes = [2, 32], strides = [1, 1]} : vector<2x128xf32> to vector<2x32xf32>
    %99 = vector.extract_strided_slice %96 {offsets = [0, 64], sizes = [2, 32], strides = [1, 1]} : vector<2x128xf32> to vector<2x32xf32>
    %100 = vector.extract_strided_slice %95 {offsets = [0, 96], sizes = [2, 32], strides = [1, 1]} : vector<2x128xf32> to vector<2x32xf32>
    %101 = arith.mulf %98, %86 : vector<2x32xf32>
    %102 = arith.mulf %97, %99 : vector<2x32xf32>
    %103 = arith.addf %101, %102 : vector<2x32xf32>
    %104 = math.tanh %103 : vector<2x32xf32>
    %105 = arith.mulf %100, %104 : vector<2x32xf32>
    %cst_29 = arith.constant dense<0.000000e+00> : vector<2x128xf32>
    %106 = tpu.matmul %105, %11, %cst_29 {dimension_numbers = #tpu.dot_dimension_numbers<[1], [0], [0], [1], [0, 0, 1, 1], [], []>} : vector<2x32xf32>, vector<32x128xf32>, vector<2x128xf32> -> vector<2x128xf32>
    %107 = arith.addf %46, %106 : vector<2x128xf32>
    %108 = arith.negf %107 : vector<2x128xf32>
    %109 = math.exp %108 : vector<2x128xf32>
    %cst_30 = arith.constant 1.000000e+00 : f32
    %110 = vector.broadcast %cst_30 : f32 to vector<2x128xf32>
    %111 = arith.addf %110, %109 : vector<2x128xf32>
    %112 = arith.divf %110, %111 : vector<2x128xf32>
    %113 = math.tanh %107 : vector<2x128xf32>
    %114 = vector.extract_strided_slice %112 {offsets = [0, 0], sizes = [2, 32], strides = [1, 1]} : vector<2x128xf32> to vector<2x32xf32>
    %115 = vector.extract_strided_slice %112 {offsets = [0, 32], sizes = [2, 32], strides = [1, 1]} : vector<2x128xf32> to vector<2x32xf32>
    %116 = vector.extract_strided_slice %113 {offsets = [0, 64], sizes = [2, 32], strides = [1, 1]} : vector<2x128xf32> to vector<2x32xf32>
    %117 = vector.extract_strided_slice %112 {offsets = [0, 96], sizes = [2, 32], strides = [1, 1]} : vector<2x128xf32> to vector<2x32xf32>
    %118 = arith.mulf %115, %103 : vector<2x32xf32>
    %119 = arith.mulf %114, %116 : vector<2x32xf32>
    %120 = arith.addf %118, %119 : vector<2x32xf32>
    %121 = math.tanh %120 : vector<2x32xf32>
    %122 = arith.mulf %117, %121 : vector<2x32xf32>
    %cst_31 = arith.constant dense<0.000000e+00> : vector<2x128xf32>
    %123 = tpu.matmul %122, %11, %cst_31 {dimension_numbers = #tpu.dot_dimension_numbers<[1], [0], [0], [1], [0, 0, 1, 1], [], []>} : vector<2x32xf32>, vector<32x128xf32>, vector<2x128xf32> -> vector<2x128xf32>
    %124 = arith.addf %47, %123 : vector<2x128xf32>
    %125 = arith.negf %124 : vector<2x128xf32>
    %126 = math.exp %125 : vector<2x128xf32>
    %cst_32 = arith.constant 1.000000e+00 : f32
    %127 = vector.broadcast %cst_32 : f32 to vector<2x128xf32>
    %128 = arith.addf %127, %126 : vector<2x128xf32>
    %129 = arith.divf %127, %128 : vector<2x128xf32>
    %130 = math.tanh %124 : vector<2x128xf32>
    %131 = vector.extract_strided_slice %129 {offsets = [0, 0], sizes = [2, 32], strides = [1, 1]} : vector<2x128xf32> to vector<2x32xf32>
    %132 = vector.extract_strided_slice %129 {offsets = [0, 32], sizes = [2, 32], strides = [1, 1]} : vector<2x128xf32> to vector<2x32xf32>
    %133 = vector.extract_strided_slice %130 {offsets = [0, 64], sizes = [2, 32], strides = [1, 1]} : vector<2x128xf32> to vector<2x32xf32>
    %134 = vector.extract_strided_slice %129 {offsets = [0, 96], sizes = [2, 32], strides = [1, 1]} : vector<2x128xf32> to vector<2x32xf32>
    %135 = arith.mulf %132, %120 : vector<2x32xf32>
    %136 = arith.mulf %131, %133 : vector<2x32xf32>
    %137 = arith.addf %135, %136 : vector<2x32xf32>
    %138 = math.tanh %137 : vector<2x32xf32>
    %139 = arith.mulf %134, %138 : vector<2x32xf32>
    %c0_33 = arith.constant 0 : index
    %c0_34 = arith.constant 0 : index
    %140 = vector.load %arg11[%c0_33, %c0_34] : memref<32x128xf32, #tpu.memory_space<vmem>>, vector<32x128xf32>
    %c0_35 = arith.constant 0 : index
    %c0_36 = arith.constant 0 : index
    %141 = vector.load %arg12[%c0_35, %c0_36] : memref<32x128xf32, #tpu.memory_space<vmem>>, vector<32x128xf32>
    %c0_37 = arith.constant 0 : index
    %c0_38 = arith.constant 0 : index
    %142 = vector.load %arg13[%c0_37, %c0_38] : memref<1x128xf32, #tpu.memory_space<vmem>>, vector<1x128xf32>
    %143 = tpu.concatenate %71, %88, %105, %122, %139 in 0 : vector<2x32xf32>, vector<2x32xf32>, vector<2x32xf32>, vector<2x32xf32>, vector<2x32xf32> -> vector<10x32xf32>
    %cst_39 = arith.constant dense<0.000000e+00> : vector<10x128xf32>
    %144 = tpu.matmul %143, %140, %cst_39 {dimension_numbers = #tpu.dot_dimension_numbers<[1], [0], [0], [1], [0, 0, 1, 1], [], []>} : vector<10x32xf32>, vector<32x128xf32>, vector<10x128xf32> -> vector<10x128xf32>
    %145 = vector.broadcast %142 : vector<1x128xf32> to vector<10x128xf32>
    %146 = arith.addf %144, %145 : vector<10x128xf32>
    %147 = vector.extract_strided_slice %146 {offsets = [0, 0], sizes = [2, 128], strides = [1, 1]} : vector<10x128xf32> to vector<2x128xf32>
    %148 = vector.extract_strided_slice %146 {offsets = [2, 0], sizes = [2, 128], strides = [1, 1]} : vector<10x128xf32> to vector<2x128xf32>
    %149 = vector.extract_strided_slice %146 {offsets = [4, 0], sizes = [2, 128], strides = [1, 1]} : vector<10x128xf32> to vector<2x128xf32>
    %150 = vector.extract_strided_slice %146 {offsets = [6, 0], sizes = [2, 128], strides = [1, 1]} : vector<10x128xf32> to vector<2x128xf32>
    %151 = vector.extract_strided_slice %146 {offsets = [8, 0], sizes = [2, 128], strides = [1, 1]} : vector<10x128xf32> to vector<2x128xf32>
    %152 = vector.extract_strided_slice %8 {offsets = [1, 0], sizes = [1, 32], strides = [1, 1]} : vector<2x32xf32> to vector<1x32xf32>
    %153 = vector.shape_cast %152 : vector<1x32xf32> to vector<1x32xf32>
    %154 = vector.broadcast %153 : vector<1x32xf32> to vector<2x32xf32>
    %155 = vector.extract_strided_slice %9 {offsets = [1, 0], sizes = [1, 32], strides = [1, 1]} : vector<2x32xf32> to vector<1x32xf32>
    %156 = vector.shape_cast %155 : vector<1x32xf32> to vector<1x32xf32>
    %157 = vector.broadcast %156 : vector<1x32xf32> to vector<2x32xf32>
    %cst_40 = arith.constant dense<0.000000e+00> : vector<2x128xf32>
    %158 = tpu.matmul %154, %141, %cst_40 {dimension_numbers = #tpu.dot_dimension_numbers<[1], [0], [0], [1], [0, 0, 1, 1], [], []>} : vector<2x32xf32>, vector<32x128xf32>, vector<2x128xf32> -> vector<2x128xf32>
    %159 = arith.addf %147, %158 : vector<2x128xf32>
    %160 = arith.negf %159 : vector<2x128xf32>
    %161 = math.exp %160 : vector<2x128xf32>
    %cst_41 = arith.constant 1.000000e+00 : f32
    %162 = vector.broadcast %cst_41 : f32 to vector<2x128xf32>
    %163 = arith.addf %162, %161 : vector<2x128xf32>
    %164 = arith.divf %162, %163 : vector<2x128xf32>
    %165 = math.tanh %159 : vector<2x128xf32>
    %166 = vector.extract_strided_slice %164 {offsets = [0, 0], sizes = [2, 32], strides = [1, 1]} : vector<2x128xf32> to vector<2x32xf32>
    %167 = vector.extract_strided_slice %164 {offsets = [0, 32], sizes = [2, 32], strides = [1, 1]} : vector<2x128xf32> to vector<2x32xf32>
    %168 = vector.extract_strided_slice %165 {offsets = [0, 64], sizes = [2, 32], strides = [1, 1]} : vector<2x128xf32> to vector<2x32xf32>
    %169 = vector.extract_strided_slice %164 {offsets = [0, 96], sizes = [2, 32], strides = [1, 1]} : vector<2x128xf32> to vector<2x32xf32>
    %170 = arith.mulf %167, %157 : vector<2x32xf32>
    %171 = arith.mulf %166, %168 : vector<2x32xf32>
    %172 = arith.addf %170, %171 : vector<2x32xf32>
    %173 = math.tanh %172 : vector<2x32xf32>
    %174 = arith.mulf %169, %173 : vector<2x32xf32>
    %cst_42 = arith.constant dense<0.000000e+00> : vector<2x128xf32>
    %175 = tpu.matmul %174, %141, %cst_42 {dimension_numbers = #tpu.dot_dimension_numbers<[1], [0], [0], [1], [0, 0, 1, 1], [], []>} : vector<2x32xf32>, vector<32x128xf32>, vector<2x128xf32> -> vector<2x128xf32>
    %176 = arith.addf %148, %175 : vector<2x128xf32>
    %177 = arith.negf %176 : vector<2x128xf32>
    %178 = math.exp %177 : vector<2x128xf32>
    %cst_43 = arith.constant 1.000000e+00 : f32
    %179 = vector.broadcast %cst_43 : f32 to vector<2x128xf32>
    %180 = arith.addf %179, %178 : vector<2x128xf32>
    %181 = arith.divf %179, %180 : vector<2x128xf32>
    %182 = math.tanh %176 : vector<2x128xf32>
    %183 = vector.extract_strided_slice %181 {offsets = [0, 0], sizes = [2, 32], strides = [1, 1]} : vector<2x128xf32> to vector<2x32xf32>
    %184 = vector.extract_strided_slice %181 {offsets = [0, 32], sizes = [2, 32], strides = [1, 1]} : vector<2x128xf32> to vector<2x32xf32>
    %185 = vector.extract_strided_slice %182 {offsets = [0, 64], sizes = [2, 32], strides = [1, 1]} : vector<2x128xf32> to vector<2x32xf32>
    %186 = vector.extract_strided_slice %181 {offsets = [0, 96], sizes = [2, 32], strides = [1, 1]} : vector<2x128xf32> to vector<2x32xf32>
    %187 = arith.mulf %184, %172 : vector<2x32xf32>
    %188 = arith.mulf %183, %185 : vector<2x32xf32>
    %189 = arith.addf %187, %188 : vector<2x32xf32>
    %190 = math.tanh %189 : vector<2x32xf32>
    %191 = arith.mulf %186, %190 : vector<2x32xf32>
    %cst_44 = arith.constant dense<0.000000e+00> : vector<2x128xf32>
    %192 = tpu.matmul %191, %141, %cst_44 {dimension_numbers = #tpu.dot_dimension_numbers<[1], [0], [0], [1], [0, 0, 1, 1], [], []>} : vector<2x32xf32>, vector<32x128xf32>, vector<2x128xf32> -> vector<2x128xf32>
    %193 = arith.addf %149, %192 : vector<2x128xf32>
    %194 = arith.negf %193 : vector<2x128xf32>
    %195 = math.exp %194 : vector<2x128xf32>
    %cst_45 = arith.constant 1.000000e+00 : f32
    %196 = vector.broadcast %cst_45 : f32 to vector<2x128xf32>
    %197 = arith.addf %196, %195 : vector<2x128xf32>
    %198 = arith.divf %196, %197 : vector<2x128xf32>
    %199 = math.tanh %193 : vector<2x128xf32>
    %200 = vector.extract_strided_slice %198 {offsets = [0, 0], sizes = [2, 32], strides = [1, 1]} : vector<2x128xf32> to vector<2x32xf32>
    %201 = vector.extract_strided_slice %198 {offsets = [0, 32], sizes = [2, 32], strides = [1, 1]} : vector<2x128xf32> to vector<2x32xf32>
    %202 = vector.extract_strided_slice %199 {offsets = [0, 64], sizes = [2, 32], strides = [1, 1]} : vector<2x128xf32> to vector<2x32xf32>
    %203 = vector.extract_strided_slice %198 {offsets = [0, 96], sizes = [2, 32], strides = [1, 1]} : vector<2x128xf32> to vector<2x32xf32>
    %204 = arith.mulf %201, %189 : vector<2x32xf32>
    %205 = arith.mulf %200, %202 : vector<2x32xf32>
    %206 = arith.addf %204, %205 : vector<2x32xf32>
    %207 = math.tanh %206 : vector<2x32xf32>
    %208 = arith.mulf %203, %207 : vector<2x32xf32>
    %cst_46 = arith.constant dense<0.000000e+00> : vector<2x128xf32>
    %209 = tpu.matmul %208, %141, %cst_46 {dimension_numbers = #tpu.dot_dimension_numbers<[1], [0], [0], [1], [0, 0, 1, 1], [], []>} : vector<2x32xf32>, vector<32x128xf32>, vector<2x128xf32> -> vector<2x128xf32>
    %210 = arith.addf %150, %209 : vector<2x128xf32>
    %211 = arith.negf %210 : vector<2x128xf32>
    %212 = math.exp %211 : vector<2x128xf32>
    %cst_47 = arith.constant 1.000000e+00 : f32
    %213 = vector.broadcast %cst_47 : f32 to vector<2x128xf32>
    %214 = arith.addf %213, %212 : vector<2x128xf32>
    %215 = arith.divf %213, %214 : vector<2x128xf32>
    %216 = math.tanh %210 : vector<2x128xf32>
    %217 = vector.extract_strided_slice %215 {offsets = [0, 0], sizes = [2, 32], strides = [1, 1]} : vector<2x128xf32> to vector<2x32xf32>
    %218 = vector.extract_strided_slice %215 {offsets = [0, 32], sizes = [2, 32], strides = [1, 1]} : vector<2x128xf32> to vector<2x32xf32>
    %219 = vector.extract_strided_slice %216 {offsets = [0, 64], sizes = [2, 32], strides = [1, 1]} : vector<2x128xf32> to vector<2x32xf32>
    %220 = vector.extract_strided_slice %215 {offsets = [0, 96], sizes = [2, 32], strides = [1, 1]} : vector<2x128xf32> to vector<2x32xf32>
    %221 = arith.mulf %218, %206 : vector<2x32xf32>
    %222 = arith.mulf %217, %219 : vector<2x32xf32>
    %223 = arith.addf %221, %222 : vector<2x32xf32>
    %224 = math.tanh %223 : vector<2x32xf32>
    %225 = arith.mulf %220, %224 : vector<2x32xf32>
    %cst_48 = arith.constant dense<0.000000e+00> : vector<2x128xf32>
    %226 = tpu.matmul %225, %141, %cst_48 {dimension_numbers = #tpu.dot_dimension_numbers<[1], [0], [0], [1], [0, 0, 1, 1], [], []>} : vector<2x32xf32>, vector<32x128xf32>, vector<2x128xf32> -> vector<2x128xf32>
    %227 = arith.addf %151, %226 : vector<2x128xf32>
    %228 = arith.negf %227 : vector<2x128xf32>
    %229 = math.exp %228 : vector<2x128xf32>
    %cst_49 = arith.constant 1.000000e+00 : f32
    %230 = vector.broadcast %cst_49 : f32 to vector<2x128xf32>
    %231 = arith.addf %230, %229 : vector<2x128xf32>
    %232 = arith.divf %230, %231 : vector<2x128xf32>
    %233 = math.tanh %227 : vector<2x128xf32>
    %234 = vector.extract_strided_slice %232 {offsets = [0, 0], sizes = [2, 32], strides = [1, 1]} : vector<2x128xf32> to vector<2x32xf32>
    %235 = vector.extract_strided_slice %232 {offsets = [0, 32], sizes = [2, 32], strides = [1, 1]} : vector<2x128xf32> to vector<2x32xf32>
    %236 = vector.extract_strided_slice %233 {offsets = [0, 64], sizes = [2, 32], strides = [1, 1]} : vector<2x128xf32> to vector<2x32xf32>
    %237 = vector.extract_strided_slice %232 {offsets = [0, 96], sizes = [2, 32], strides = [1, 1]} : vector<2x128xf32> to vector<2x32xf32>
    %238 = arith.mulf %235, %223 : vector<2x32xf32>
    %239 = arith.mulf %234, %236 : vector<2x32xf32>
    %240 = arith.addf %238, %239 : vector<2x32xf32>
    %241 = math.tanh %240 : vector<2x32xf32>
    %242 = arith.mulf %237, %241 : vector<2x32xf32>
    %c0_50 = arith.constant 0 : index
    %c0_51 = arith.constant 0 : index
    %243 = vector.load %arg14[%c0_50, %c0_51] : memref<32x32xf32, #tpu.memory_space<vmem>>, vector<32x32xf32>
    %c0_52 = arith.constant 0 : index
    %c0_53 = arith.constant 0 : index
    %244 = vector.load %arg16[%c0_52, %c0_53] : memref<32x32xf32, #tpu.memory_space<vmem>>, vector<32x32xf32>
    %c0_54 = arith.constant 0 : index
    %c0_55 = arith.constant 0 : index
    %245 = vector.load %arg15[%c0_54, %c0_55] : memref<1x32xf32, #tpu.memory_space<vmem>>, vector<1x32xf32>
    %246 = vector.shape_cast %245 : vector<1x32xf32> to vector<1x1x32xf32>
    %c0_56 = arith.constant 0 : index
    %c0_57 = arith.constant 0 : index
    %247 = vector.load %arg17[%c0_56, %c0_57] : memref<1x32xf32, #tpu.memory_space<vmem>>, vector<1x32xf32>
    %248 = vector.shape_cast %247 : vector<1x32xf32> to vector<1x1x32xf32>
    %249 = tpu.iota {dimensions = array<i32: 1>} : vector<1x8xi32>
    %cst_58 = arith.constant 0.000000e+00 : f32
    %250 = vector.broadcast %cst_58 : f32 to vector<5x120xf32>
    %cst_59 = arith.constant 0.000000e+00 : f32
    %251 = vector.broadcast %cst_59 : f32 to vector<5x96xf32>
    %252 = vector.extract_strided_slice %6 {offsets = [0, 0], sizes = [8, 32], strides = [1, 1]} : vector<16x64xf32> to vector<8x32xf32>
    %253 = vector.extract_strided_slice %6 {offsets = [0, 32], sizes = [8, 32], strides = [1, 1]} : vector<16x64xf32> to vector<8x32xf32>
    %254 = vector.shape_cast %253 : vector<8x32xf32> to vector<1x8x32xf32>
    %255 = vector.shape_cast %252 : vector<8x32xf32> to vector<1x8x32xf32>
    %c2_i32 = arith.constant 2 : i32
    %256 = arith.muli %arg0, %c2_i32 : i32
    %c0_i32 = arith.constant 0 : i32
    %257 = arith.addi %256, %c0_i32 : i32
    %258 = arith.index_cast %257 : i32 to index
    %259 = memref.load %arg1[%258] : memref<2xi32, #tpu.memory_space<smem>>
    %260 = vector.broadcast %259 : i32 to vector<1x8xi32>
    %261 = arith.cmpi slt, %249, %260 : vector<1x8xi32>
    %cst_60 = arith.constant 0.000000e+00 : f32
    %cst_61 = arith.constant -9.99999984E+17 : f32
    %262 = vector.broadcast %cst_60 : f32 to vector<1x8xf32>
    %263 = vector.broadcast %cst_61 : f32 to vector<1x8xf32>
    %264 = arith.select %261, %262, %263 : vector<1x8xi1>, vector<1x8xf32>
    %265 = vector.extract_strided_slice %174 {offsets = [0, 0], sizes = [1, 32], strides = [1, 1]} : vector<2x32xf32> to vector<1x32xf32>
    %266 = vector.extract_strided_slice %191 {offsets = [0, 0], sizes = [1, 32], strides = [1, 1]} : vector<2x32xf32> to vector<1x32xf32>
    %267 = vector.extract_strided_slice %208 {offsets = [0, 0], sizes = [1, 32], strides = [1, 1]} : vector<2x32xf32> to vector<1x32xf32>
    %268 = vector.extract_strided_slice %225 {offsets = [0, 0], sizes = [1, 32], strides = [1, 1]} : vector<2x32xf32> to vector<1x32xf32>
    %269 = vector.extract_strided_slice %242 {offsets = [0, 0], sizes = [1, 32], strides = [1, 1]} : vector<2x32xf32> to vector<1x32xf32>
    %270 = tpu.concatenate %265, %266, %267, %268, %269 in 0 : vector<1x32xf32>, vector<1x32xf32>, vector<1x32xf32>, vector<1x32xf32>, vector<1x32xf32> -> vector<5x32xf32>
    %cst_62 = arith.constant dense<0.000000e+00> : vector<5x32xf32>
    %271 = tpu.matmul %270, %243, %cst_62 {dimension_numbers = #tpu.dot_dimension_numbers<[1], [0], [0], [1], [0, 0, 1, 1], [], []>} : vector<5x32xf32>, vector<32x32xf32>, vector<5x32xf32> -> vector<5x32xf32>
    %272 = vector.shape_cast %271 : vector<5x32xf32> to vector<5x1x32xf32>
    %273 = vector.broadcast %254 : vector<1x8x32xf32> to vector<5x8x32xf32>
    %274 = vector.broadcast %272 : vector<5x1x32xf32> to vector<5x8x32xf32>
    %275 = arith.addf %273, %274 : vector<5x8x32xf32>
    %276 = math.tanh %275 : vector<5x8x32xf32>
    %277 = vector.broadcast %246 : vector<1x1x32xf32> to vector<5x8x32xf32>
    %278 = arith.mulf %276, %277 : vector<5x8x32xf32>
    %cst_63 = arith.constant dense<0.000000e+00> : vector<5x8xf32>
    %279 = vector.multi_reduction <add>, %278, %cst_63 [2] : vector<5x8x32xf32> to vector<5x8xf32>
    %280 = vector.broadcast %264 : vector<1x8xf32> to vector<5x8xf32>
    %281 = arith.addf %279, %280 : vector<5x8xf32>
    %cst_64 = arith.constant dense<0xFF800000> : vector<5xf32>
    %282 = vector.multi_reduction <maximumf>, %281, %cst_64 [1] : vector<5x8xf32> to vector<5xf32>
    %283 = vector.shape_cast %282 : vector<5xf32> to vector<5x1xf32>
    %284 = vector.broadcast %283 : vector<5x1xf32> to vector<5x8xf32>
    %285 = arith.subf %281, %284 : vector<5x8xf32>
    %286 = math.exp %285 : vector<5x8xf32>
    %cst_65 = arith.constant dense<0.000000e+00> : vector<5xf32>
    %287 = vector.multi_reduction <add>, %286, %cst_65 [1] : vector<5x8xf32> to vector<5xf32>
    %288 = vector.shape_cast %287 : vector<5xf32> to vector<5x1xf32>
    %289 = tpu.reciprocal %288 {approx = true} : vector<5x1xf32> -> vector<5x1xf32>
    %290 = arith.mulf %288, %289 : vector<5x1xf32>
    %cst_66 = arith.constant 2.000000e+00 : f32
    %291 = vector.broadcast %cst_66 : f32 to vector<5x1xf32>
    %292 = arith.subf %291, %290 : vector<5x1xf32>
    %293 = arith.mulf %289, %292 : vector<5x1xf32>
    %294 = vector.broadcast %293 : vector<5x1xf32> to vector<5x8xf32>
    %295 = arith.mulf %286, %294 : vector<5x8xf32>
    %cst_67 = arith.constant dense<0.000000e+00> : vector<5x32xf32>
    %296 = tpu.matmul %295, %253, %cst_67 {dimension_numbers = #tpu.dot_dimension_numbers<[1], [0], [0], [1], [0, 0, 1, 1], [], []>} : vector<5x8xf32>, vector<8x32xf32>, vector<5x32xf32> -> vector<5x32xf32>
    %cst_68 = arith.constant dense<0.000000e+00> : vector<5x32xf32>
    %297 = tpu.matmul %296, %243, %cst_68 {dimension_numbers = #tpu.dot_dimension_numbers<[1], [0], [0], [1], [0, 0, 1, 1], [], []>} : vector<5x32xf32>, vector<32x32xf32>, vector<5x32xf32> -> vector<5x32xf32>
    %298 = vector.shape_cast %297 : vector<5x32xf32> to vector<5x1x32xf32>
    %299 = vector.broadcast %254 : vector<1x8x32xf32> to vector<5x8x32xf32>
    %300 = vector.broadcast %298 : vector<5x1x32xf32> to vector<5x8x32xf32>
    %301 = arith.addf %299, %300 : vector<5x8x32xf32>
    %302 = math.tanh %301 : vector<5x8x32xf32>
    %303 = vector.broadcast %246 : vector<1x1x32xf32> to vector<5x8x32xf32>
    %304 = arith.mulf %302, %303 : vector<5x8x32xf32>
    %cst_69 = arith.constant dense<0.000000e+00> : vector<5x8xf32>
    %305 = vector.multi_reduction <add>, %304, %cst_69 [2] : vector<5x8x32xf32> to vector<5x8xf32>
    %306 = vector.broadcast %264 : vector<1x8xf32> to vector<5x8xf32>
    %307 = arith.addf %305, %306 : vector<5x8xf32>
    %cst_70 = arith.constant dense<0xFF800000> : vector<5xf32>
    %308 = vector.multi_reduction <maximumf>, %307, %cst_70 [1] : vector<5x8xf32> to vector<5xf32>
    %309 = vector.shape_cast %308 : vector<5xf32> to vector<5x1xf32>
    %310 = vector.broadcast %309 : vector<5x1xf32> to vector<5x8xf32>
    %311 = arith.subf %307, %310 : vector<5x8xf32>
    %312 = math.exp %311 : vector<5x8xf32>
    %cst_71 = arith.constant dense<0.000000e+00> : vector<5xf32>
    %313 = vector.multi_reduction <add>, %312, %cst_71 [1] : vector<5x8xf32> to vector<5xf32>
    %314 = vector.shape_cast %313 : vector<5xf32> to vector<5x1xf32>
    %315 = tpu.reciprocal %314 {approx = true} : vector<5x1xf32> -> vector<5x1xf32>
    %316 = arith.mulf %314, %315 : vector<5x1xf32>
    %cst_72 = arith.constant 2.000000e+00 : f32
    %317 = vector.broadcast %cst_72 : f32 to vector<5x1xf32>
    %318 = arith.subf %317, %316 : vector<5x1xf32>
    %319 = arith.mulf %315, %318 : vector<5x1xf32>
    %320 = vector.broadcast %319 : vector<5x1xf32> to vector<5x8xf32>
    %321 = arith.mulf %312, %320 : vector<5x8xf32>
    %cst_73 = arith.constant dense<0.000000e+00> : vector<5x32xf32>
    %322 = tpu.matmul %321, %253, %cst_73 {dimension_numbers = #tpu.dot_dimension_numbers<[1], [0], [0], [1], [0, 0, 1, 1], [], []>} : vector<5x8xf32>, vector<8x32xf32>, vector<5x32xf32> -> vector<5x32xf32>
    %cst_74 = arith.constant dense<0.000000e+00> : vector<5x32xf32>
    %323 = tpu.matmul %322, %244, %cst_74 {dimension_numbers = #tpu.dot_dimension_numbers<[1], [0], [0], [1], [0, 0, 1, 1], [], []>} : vector<5x32xf32>, vector<32x32xf32>, vector<5x32xf32> -> vector<5x32xf32>
    %324 = vector.shape_cast %323 : vector<5x32xf32> to vector<5x1x32xf32>
    %325 = vector.broadcast %255 : vector<1x8x32xf32> to vector<5x8x32xf32>
    %326 = vector.broadcast %324 : vector<5x1x32xf32> to vector<5x8x32xf32>
    %327 = arith.addf %325, %326 : vector<5x8x32xf32>
    %328 = math.tanh %327 : vector<5x8x32xf32>
    %329 = vector.broadcast %248 : vector<1x1x32xf32> to vector<5x8x32xf32>
    %330 = arith.mulf %328, %329 : vector<5x8x32xf32>
    %cst_75 = arith.constant dense<0.000000e+00> : vector<5x8xf32>
    %331 = vector.multi_reduction <add>, %330, %cst_75 [2] : vector<5x8x32xf32> to vector<5x8xf32>
    %332 = tpu.concatenate %331, %250 in 1 : vector<5x8xf32>, vector<5x120xf32> -> vector<5x128xf32>
    %c0_76 = arith.constant 0 : index
    %c0_77 = arith.constant 0 : index
    %c0_78 = arith.constant 0 : index
    %333 = vector.load %arg18[%c0_76, %c0_77, %c0_78] : memref<2x5x128xf32, #tpu.memory_space<vmem>>, vector<1x5x128xf32>
    %334 = vector.shape_cast %333 : vector<1x5x128xf32> to vector<5x128xf32>
    %335 = vector.shape_cast %332 : vector<5x128xf32> to vector<1x5x128xf32>
    tpu.vector_store %arg18[%c0_76, %c0_77, %c0_78], %335 {strides = array<i32>} : memref<2x5x128xf32, #tpu.memory_space<vmem>>, vector<1x5x128xf32>,
    %336 = tpu.concatenate %322, %251 in 1 : vector<5x32xf32>, vector<5x96xf32> -> vector<5x128xf32>
    %c0_79 = arith.constant 0 : index
    %c0_80 = arith.constant 0 : index
    %c0_81 = arith.constant 0 : index
    %337 = vector.load %arg19[%c0_79, %c0_80, %c0_81] : memref<2x5x128xf32, #tpu.memory_space<vmem>>, vector<1x5x128xf32>
    %338 = vector.shape_cast %337 : vector<1x5x128xf32> to vector<5x128xf32>
    %339 = vector.shape_cast %336 : vector<5x128xf32> to vector<1x5x128xf32>
    tpu.vector_store %arg19[%c0_79, %c0_80, %c0_81], %339 {strides = array<i32>} : memref<2x5x128xf32, #tpu.memory_space<vmem>>, vector<1x5x128xf32>,
    %340 = vector.extract_strided_slice %6 {offsets = [8, 0], sizes = [8, 32], strides = [1, 1]} : vector<16x64xf32> to vector<8x32xf32>
    %341 = vector.extract_strided_slice %6 {offsets = [8, 32], sizes = [8, 32], strides = [1, 1]} : vector<16x64xf32> to vector<8x32xf32>
    %342 = vector.shape_cast %341 : vector<8x32xf32> to vector<1x8x32xf32>
    %343 = vector.shape_cast %340 : vector<8x32xf32> to vector<1x8x32xf32>
    %c2_i32_82 = arith.constant 2 : i32
    %344 = arith.muli %arg0, %c2_i32_82 : i32
    %c1_i32 = arith.constant 1 : i32
    %345 = arith.addi %344, %c1_i32 : i32
    %346 = arith.index_cast %345 : i32 to index
    %347 = memref.load %arg1[%346] : memref<2xi32, #tpu.memory_space<smem>>
    %348 = vector.broadcast %347 : i32 to vector<1x8xi32>
    %349 = arith.cmpi slt, %249, %348 : vector<1x8xi32>
    %cst_83 = arith.constant 0.000000e+00 : f32
    %cst_84 = arith.constant -9.99999984E+17 : f32
    %350 = vector.broadcast %cst_83 : f32 to vector<1x8xf32>
    %351 = vector.broadcast %cst_84 : f32 to vector<1x8xf32>
    %352 = arith.select %349, %350, %351 : vector<1x8xi1>, vector<1x8xf32>
    %353 = vector.extract_strided_slice %174 {offsets = [1, 0], sizes = [1, 32], strides = [1, 1]} : vector<2x32xf32> to vector<1x32xf32>
    %354 = vector.extract_strided_slice %191 {offsets = [1, 0], sizes = [1, 32], strides = [1, 1]} : vector<2x32xf32> to vector<1x32xf32>
    %355 = vector.extract_strided_slice %208 {offsets = [1, 0], sizes = [1, 32], strides = [1, 1]} : vector<2x32xf32> to vector<1x32xf32>
    %356 = vector.extract_strided_slice %225 {offsets = [1, 0], sizes = [1, 32], strides = [1, 1]} : vector<2x32xf32> to vector<1x32xf32>
    %357 = vector.extract_strided_slice %242 {offsets = [1, 0], sizes = [1, 32], strides = [1, 1]} : vector<2x32xf32> to vector<1x32xf32>
    %358 = tpu.concatenate %353, %354, %355, %356, %357 in 0 : vector<1x32xf32>, vector<1x32xf32>, vector<1x32xf32>, vector<1x32xf32>, vector<1x32xf32> -> vector<5x32xf32>
    %cst_85 = arith.constant dense<0.000000e+00> : vector<5x32xf32>
    %359 = tpu.matmul %358, %243, %cst_85 {dimension_numbers = #tpu.dot_dimension_numbers<[1], [0], [0], [1], [0, 0, 1, 1], [], []>} : vector<5x32xf32>, vector<32x32xf32>, vector<5x32xf32> -> vector<5x32xf32>
    %360 = vector.shape_cast %359 : vector<5x32xf32> to vector<5x1x32xf32>
    %361 = vector.broadcast %342 : vector<1x8x32xf32> to vector<5x8x32xf32>
    %362 = vector.broadcast %360 : vector<5x1x32xf32> to vector<5x8x32xf32>
    %363 = arith.addf %361, %362 : vector<5x8x32xf32>
    %364 = math.tanh %363 : vector<5x8x32xf32>
    %365 = vector.broadcast %246 : vector<1x1x32xf32> to vector<5x8x32xf32>
    %366 = arith.mulf %364, %365 : vector<5x8x32xf32>
    %cst_86 = arith.constant dense<0.000000e+00> : vector<5x8xf32>
    %367 = vector.multi_reduction <add>, %366, %cst_86 [2] : vector<5x8x32xf32> to vector<5x8xf32>
    %368 = vector.broadcast %352 : vector<1x8xf32> to vector<5x8xf32>
    %369 = arith.addf %367, %368 : vector<5x8xf32>
    %cst_87 = arith.constant dense<0xFF800000> : vector<5xf32>
    %370 = vector.multi_reduction <maximumf>, %369, %cst_87 [1] : vector<5x8xf32> to vector<5xf32>
    %371 = vector.shape_cast %370 : vector<5xf32> to vector<5x1xf32>
    %372 = vector.broadcast %371 : vector<5x1xf32> to vector<5x8xf32>
    %373 = arith.subf %369, %372 : vector<5x8xf32>
    %374 = math.exp %373 : vector<5x8xf32>
    %cst_88 = arith.constant dense<0.000000e+00> : vector<5xf32>
    %375 = vector.multi_reduction <add>, %374, %cst_88 [1] : vector<5x8xf32> to vector<5xf32>
    %376 = vector.shape_cast %375 : vector<5xf32> to vector<5x1xf32>
    %377 = tpu.reciprocal %376 {approx = true} : vector<5x1xf32> -> vector<5x1xf32>
    %378 = arith.mulf %376, %377 : vector<5x1xf32>
    %cst_89 = arith.constant 2.000000e+00 : f32
    %379 = vector.broadcast %cst_89 : f32 to vector<5x1xf32>
    %380 = arith.subf %379, %378 : vector<5x1xf32>
    %381 = arith.mulf %377, %380 : vector<5x1xf32>
    %382 = vector.broadcast %381 : vector<5x1xf32> to vector<5x8xf32>
    %383 = arith.mulf %374, %382 : vector<5x8xf32>
    %cst_90 = arith.constant dense<0.000000e+00> : vector<5x32xf32>
    %384 = tpu.matmul %383, %341, %cst_90 {dimension_numbers = #tpu.dot_dimension_numbers<[1], [0], [0], [1], [0, 0, 1, 1], [], []>} : vector<5x8xf32>, vector<8x32xf32>, vector<5x32xf32> -> vector<5x32xf32>
    %cst_91 = arith.constant dense<0.000000e+00> : vector<5x32xf32>
    %385 = tpu.matmul %384, %243, %cst_91 {dimension_numbers = #tpu.dot_dimension_numbers<[1], [0], [0], [1], [0, 0, 1, 1], [], []>} : vector<5x32xf32>, vector<32x32xf32>, vector<5x32xf32> -> vector<5x32xf32>
    %386 = vector.shape_cast %385 : vector<5x32xf32> to vector<5x1x32xf32>
    %387 = vector.broadcast %342 : vector<1x8x32xf32> to vector<5x8x32xf32>
    %388 = vector.broadcast %386 : vector<5x1x32xf32> to vector<5x8x32xf32>
    %389 = arith.addf %387, %388 : vector<5x8x32xf32>
    %390 = math.tanh %389 : vector<5x8x32xf32>
    %391 = vector.broadcast %246 : vector<1x1x32xf32> to vector<5x8x32xf32>
    %392 = arith.mulf %390, %391 : vector<5x8x32xf32>
    %cst_92 = arith.constant dense<0.000000e+00> : vector<5x8xf32>
    %393 = vector.multi_reduction <add>, %392, %cst_92 [2] : vector<5x8x32xf32> to vector<5x8xf32>
    %394 = vector.broadcast %352 : vector<1x8xf32> to vector<5x8xf32>
    %395 = arith.addf %393, %394 : vector<5x8xf32>
    %cst_93 = arith.constant dense<0xFF800000> : vector<5xf32>
    %396 = vector.multi_reduction <maximumf>, %395, %cst_93 [1] : vector<5x8xf32> to vector<5xf32>
    %397 = vector.shape_cast %396 : vector<5xf32> to vector<5x1xf32>
    %398 = vector.broadcast %397 : vector<5x1xf32> to vector<5x8xf32>
    %399 = arith.subf %395, %398 : vector<5x8xf32>
    %400 = math.exp %399 : vector<5x8xf32>
    %cst_94 = arith.constant dense<0.000000e+00> : vector<5xf32>
    %401 = vector.multi_reduction <add>, %400, %cst_94 [1] : vector<5x8xf32> to vector<5xf32>
    %402 = vector.shape_cast %401 : vector<5xf32> to vector<5x1xf32>
    %403 = tpu.reciprocal %402 {approx = true} : vector<5x1xf32> -> vector<5x1xf32>
    %404 = arith.mulf %402, %403 : vector<5x1xf32>
    %cst_95 = arith.constant 2.000000e+00 : f32
    %405 = vector.broadcast %cst_95 : f32 to vector<5x1xf32>
    %406 = arith.subf %405, %404 : vector<5x1xf32>
    %407 = arith.mulf %403, %406 : vector<5x1xf32>
    %408 = vector.broadcast %407 : vector<5x1xf32> to vector<5x8xf32>
    %409 = arith.mulf %400, %408 : vector<5x8xf32>
    %cst_96 = arith.constant dense<0.000000e+00> : vector<5x32xf32>
    %410 = tpu.matmul %409, %341, %cst_96 {dimension_numbers = #tpu.dot_dimension_numbers<[1], [0], [0], [1], [0, 0, 1, 1], [], []>} : vector<5x8xf32>, vector<8x32xf32>, vector<5x32xf32> -> vector<5x32xf32>
    %cst_97 = arith.constant dense<0.000000e+00> : vector<5x32xf32>
    %411 = tpu.matmul %410, %244, %cst_97 {dimension_numbers = #tpu.dot_dimension_numbers<[1], [0], [0], [1], [0, 0, 1, 1], [], []>} : vector<5x32xf32>, vector<32x32xf32>, vector<5x32xf32> -> vector<5x32xf32>
    %412 = vector.shape_cast %411 : vector<5x32xf32> to vector<5x1x32xf32>
    %413 = vector.broadcast %343 : vector<1x8x32xf32> to vector<5x8x32xf32>
    %414 = vector.broadcast %412 : vector<5x1x32xf32> to vector<5x8x32xf32>
    %415 = arith.addf %413, %414 : vector<5x8x32xf32>
    %416 = math.tanh %415 : vector<5x8x32xf32>
    %417 = vector.broadcast %248 : vector<1x1x32xf32> to vector<5x8x32xf32>
    %418 = arith.mulf %416, %417 : vector<5x8x32xf32>
    %cst_98 = arith.constant dense<0.000000e+00> : vector<5x8xf32>
    %419 = vector.multi_reduction <add>, %418, %cst_98 [2] : vector<5x8x32xf32> to vector<5x8xf32>
    %420 = tpu.concatenate %419, %250 in 1 : vector<5x8xf32>, vector<5x120xf32> -> vector<5x128xf32>
    %c1_99 = arith.constant 1 : index
    %c0_100 = arith.constant 0 : index
    %c0_101 = arith.constant 0 : index
    %421 = vector.load %arg18[%c1_99, %c0_100, %c0_101] : memref<2x5x128xf32, #tpu.memory_space<vmem>>, vector<1x5x128xf32>
    %422 = vector.shape_cast %421 : vector<1x5x128xf32> to vector<5x128xf32>
    %423 = vector.shape_cast %420 : vector<5x128xf32> to vector<1x5x128xf32>
    tpu.vector_store %arg18[%c1_99, %c0_100, %c0_101], %423 {strides = array<i32>} : memref<2x5x128xf32, #tpu.memory_space<vmem>>, vector<1x5x128xf32>,
    %424 = tpu.concatenate %410, %251 in 1 : vector<5x32xf32>, vector<5x96xf32> -> vector<5x128xf32>
    %c1_102 = arith.constant 1 : index
    %c0_103 = arith.constant 0 : index
    %c0_104 = arith.constant 0 : index
    %425 = vector.load %arg19[%c1_102, %c0_103, %c0_104] : memref<2x5x128xf32, #tpu.memory_space<vmem>>, vector<1x5x128xf32>
    %426 = vector.shape_cast %425 : vector<1x5x128xf32> to vector<5x128xf32>
    %427 = vector.shape_cast %424 : vector<5x128xf32> to vector<1x5x128xf32>
    tpu.vector_store %arg19[%c1_102, %c0_103, %c0_104], %427 {strides = array<i32>} : memref<2x5x128xf32, #tpu.memory_space<vmem>>, vector<1x5x128xf32>,
    return
  }
  func.func @transform_0(%arg0: i32, %arg1: memref<2xi32, #tpu.memory_space<smem>>) -> (i32, i32, i32) {
    %c0_i32 = arith.constant 0 : i32
    %c0_i32_0 = arith.constant 0 : i32
    %c0_i32_1 = arith.constant 0 : i32
    return %arg0, %c0_i32, %c0_i32_0 : i32, i32, i32
  }
  func.func @transform_1(%arg0: i32, %arg1: memref<2xi32, #tpu.memory_space<smem>>) -> (i32, i32, i32) {
    %c0_i32 = arith.constant 0 : i32
    %c0_i32_0 = arith.constant 0 : i32
    %c0_i32_1 = arith.constant 0 : i32
    return %arg0, %c0_i32, %c0_i32_0 : i32, i32, i32
  }
  func.func @transform_2(%arg0: i32, %arg1: memref<2xi32, #tpu.memory_space<smem>>) -> (i32, i32) {
    %c0_i32 = arith.constant 0 : i32
    %c0_i32_0 = arith.constant 0 : i32
    %c0_i32_1 = arith.constant 0 : i32
    return %c0_i32, %c0_i32_0 : i32, i32
  }
  func.func @transform_3(%arg0: i32, %arg1: memref<2xi32, #tpu.memory_space<smem>>) -> (i32, i32) {
    %c0_i32 = arith.constant 0 : i32
    %c0_i32_0 = arith.constant 0 : i32
    %c0_i32_1 = arith.constant 0 : i32
    return %c0_i32, %c0_i32_0 : i32, i32
  }
  func.func @transform_4(%arg0: i32, %arg1: memref<2xi32, #tpu.memory_space<smem>>) -> (i32, i32) {
    %c0_i32 = arith.constant 0 : i32
    %c0_i32_0 = arith.constant 0 : i32
    %c0_i32_1 = arith.constant 0 : i32
    return %c0_i32, %c0_i32_0 : i32, i32
  }
  func.func @transform_5(%arg0: i32, %arg1: memref<2xi32, #tpu.memory_space<smem>>) -> (i32, i32) {
    %c0_i32 = arith.constant 0 : i32
    %c0_i32_0 = arith.constant 0 : i32
    %c0_i32_1 = arith.constant 0 : i32
    return %c0_i32, %c0_i32_0 : i32, i32
  }
  func.func @transform_6(%arg0: i32, %arg1: memref<2xi32, #tpu.memory_space<smem>>) -> (i32, i32) {
    %c0_i32 = arith.constant 0 : i32
    %c0_i32_0 = arith.constant 0 : i32
    %c0_i32_1 = arith.constant 0 : i32
    return %c0_i32, %c0_i32_0 : i32, i32
  }
  func.func @transform_7(%arg0: i32, %arg1: memref<2xi32, #tpu.memory_space<smem>>) -> (i32, i32) {
    %c0_i32 = arith.constant 0 : i32
    %c0_i32_0 = arith.constant 0 : i32
    %c0_i32_1 = arith.constant 0 : i32
    return %c0_i32, %c0_i32_0 : i32, i32
  }
  func.func @transform_8(%arg0: i32, %arg1: memref<2xi32, #tpu.memory_space<smem>>) -> (i32, i32) {
    %c0_i32 = arith.constant 0 : i32
    %c0_i32_0 = arith.constant 0 : i32
    %c0_i32_1 = arith.constant 0 : i32
    return %c0_i32, %c0_i32_0 : i32, i32
  }
  func.func @transform_9(%arg0: i32, %arg1: memref<2xi32, #tpu.memory_space<smem>>) -> (i32, i32) {
    %c0_i32 = arith.constant 0 : i32
    %c0_i32_0 = arith.constant 0 : i32
    %c0_i32_1 = arith.constant 0 : i32
    return %c0_i32, %c0_i32_0 : i32, i32
  }
  func.func @transform_10(%arg0: i32, %arg1: memref<2xi32, #tpu.memory_space<smem>>) -> (i32, i32) {
    %c0_i32 = arith.constant 0 : i32
    %c0_i32_0 = arith.constant 0 : i32
    %c0_i32_1 = arith.constant 0 : i32
    return %c0_i32, %c0_i32_0 : i32, i32
  }
  func.func @transform_11(%arg0: i32, %arg1: memref<2xi32, #tpu.memory_space<smem>>) -> (i32, i32) {
    %c0_i32 = arith.constant 0 : i32
    %c0_i32_0 = arith.constant 0 : i32
    %c0_i32_1 = arith.constant 0 : i32
    return %c0_i32, %c0_i32_0 : i32, i32
  }
  func.func @transform_12(%arg0: i32, %arg1: memref<2xi32, #tpu.memory_space<smem>>) -> (i32, i32) {
    %c0_i32 = arith.constant 0 : i32
    %c0_i32_0 = arith.constant 0 : i32
    %c0_i32_1 = arith.constant 0 : i32
    return %c0_i32, %c0_i32_0 : i32, i32
  }
  func.func @transform_13(%arg0: i32, %arg1: memref<2xi32, #tpu.memory_space<smem>>) -> (i32, i32) {
    %c0_i32 = arith.constant 0 : i32
    %c0_i32_0 = arith.constant 0 : i32
    %c0_i32_1 = arith.constant 0 : i32
    return %c0_i32, %c0_i32_0 : i32, i32
  }
  func.func @transform_14(%arg0: i32, %arg1: memref<2xi32, #tpu.memory_space<smem>>) -> (i32, i32) {
    %c0_i32 = arith.constant 0 : i32
    %c0_i32_0 = arith.constant 0 : i32
    %c0_i32_1 = arith.constant 0 : i32
    return %c0_i32, %c0_i32_0 : i32, i32
  }
  func.func @transform_15(%arg0: i32, %arg1: memref<2xi32, #tpu.memory_space<smem>>) -> (i32, i32) {
    %c0_i32 = arith.constant 0 : i32
    %c0_i32_0 = arith.constant 0 : i32
    %c0_i32_1 = arith.constant 0 : i32
    return %c0_i32, %c0_i32_0 : i32, i32
  }
  func.func @transform_16(%arg0: i32, %arg1: memref<2xi32, #tpu.memory_space<smem>>) -> (i32, i32, i32) {
    %c0_i32 = arith.constant 0 : i32
    %c0_i32_0 = arith.constant 0 : i32
    %c0_i32_1 = arith.constant 0 : i32
    return %arg0, %c0_i32, %c0_i32_0 : i32, i32, i32
  }
  func.func @transform_17(%arg0: i32, %arg1: memref<2xi32, #tpu.memory_space<smem>>) -> (i32, i32, i32) {
    %c0_i32 = arith.constant 0 : i32
    %c0_i32_0 = arith.constant 0 : i32
    %c0_i32_1 = arith.constant 0 : i32
    return %arg0, %c0_i32, %c0_i32_0 : i32, i32, i32
  }
}

</mosaic_0001>

<bundles_post_ra>
// kernel: lstm_pointer_net_forward.1
= control target key start
LH: loop header
LB: loop body
LE: loop exit
PB: predicated region body
PF: predicated region fallthrough
CT: control target
= control target key end

     0   :  { %s3029_s30 = smov [#allocation3]   ;;  %s3859_s0 = inlined_call_operand.vmem [shape: s32[2], index: 0, kind: input, shape index: {}]   ;;  %s3860_s1 = inlined_call_operand.hbm [shape: f32[2,8,32], index: 1, kind: input, shape index: {}]   ;;  %s3861_s2 = inlined_call_operand.vmem [shape: f32[2,4,32], index: 2, kind: input, shape index: {}]   ;;  %s3862_s3 = inlined_call_operand.hbm [shape: f32[32,64], index: 3, kind: input, shape index: {}]   ;;  %s3863_s4 = inlined_call_operand.vmem [shape: f32[1,32], index: 4, kind: input, shape index: {}]   ;;  %s3864_s5 = inlined_call_operand.vmem [shape: f32[2,32], index: 5, kind: input, shape index: {}]   ;;  %s3865_s6 = inlined_call_operand.vmem [shape: f32[2,32], index: 6, kind: input, shape index: {}]   ;;  %s3866_s7 = inlined_call_operand.hbm [shape: f32[32,128], index: 7, kind: input, shape index: {}]   ;;  %s3867_s8 = inlined_call_operand.hbm [shape: f32[32,128], index: 8, kind: input, shape index: {}]   ;;  %s3868_s9 = inlined_call_operand.hbm [shape: f32[1,128], index: 9, kind: input, shape index: {}]   ;;  %s3869_s10 = inlined_call_operand.hbm [shape: f32[32,128], index: 10, kind: input, shape index: {}]   ;;  %s3870_s11 = inlined_call_operand.hbm [shape: f32[32,128], index: 11, kind: input, shape index: {}]   ;;  %s3871_s12 = inlined_call_operand.hbm [shape: f32[1,128], index: 12, kind: input, shape index: {}]   ;;  %s3872_s13 = inlined_call_operand.hbm [shape: f32[32,32], index: 13, kind: input, shape index: {}]   ;;  %s3873_s14 = inlined_call_operand.hbm [shape: f32[1,32], index: 14, kind: input, shape index: {}]   ;;  %s3874_s15 = inlined_call_operand.hbm [shape: f32[32,32], index: 15, kind: input, shape index: {}]   ;;  %s3875_s16 = inlined_call_operand.hbm [shape: f32[1,32], index: 16, kind: input, shape index: {}]   ;;  %s3876_s17 = inlined_call_operand.vmem [shape: f32[2,5,128], index: 17, kind: output, shape index: {0}]   ;;  %s3877_s18 = inlined_call_operand.vmem [shape: f32[2,5,128], index: 18, kind: output, shape index: {1}]  }
   0x1   :  { %3879 = sst [smem:[#allocation31_spill]] %s3859_s0 }
   0x2   :  { %3880 = sst [smem:[#allocation32_spill]] %s3860_s1 }
   0x3   :  { %3881 = sst [smem:[#allocation33_spill]] %s3861_s2 }
   0x4   :  { %3882 = sst [smem:[#allocation34_spill]] %s3865_s6 }
   0x5   :  { %s3883_s29 = sld [smem:[#allocation31_spill]] }
   0xb   :  { %s25_s6 = sshll.u32 %s3883_s29, 4  ;;  %s26_s6 = int_to_ptr.vmem [resolvable:$true] %s25_s6 }
   0xc   :  { %28 = dma.vmem_to_smem %s26_s6, 16, %s3029_s30, [#allocation2] }
   0xd   :  { %3013 = dma.done.wait [#allocation2], 16 }
   0xe   :  { %3014 = vsyncadd [#allocation2], 4294967280 }
   0xf   :  { %31 = sfence }
  0x10   :  { %32 = vsyncpa [#allocation5], 0 }
  0x11   :  { %33 = vsyncpa [#allocation7], 0 }
  0x12   :  { %34 = vsyncpa [#allocation10], 0 }
  0x13   :  { %35 = vsyncpa [#allocation13], 0 }
  0x14   :  { %36 = vsyncpa [#allocation16], 0 }
  0x15   :  { %37 = vsyncpa [#allocation19], 0 }
  0x16   :  { %38 = vsyncpa [#allocation22], 0  ;;  %s58_s1 = sshll.u32 %s3862_s3, 4  ;;  %s3030_s20 = smov [#allocation6]   ;;  %s59_s1 = int_to_ptr.hbm [resolvable:$true] %s58_s1 }
  0x17   :  { %s60_s21 = sshll.u32 %s3030_s20, 4  ;;  %s90_s2 = sshll.u32 %s3867_s8, 4  ;;  %s61_s21 = int_to_ptr.vmem [resolvable:$true] %s60_s21  ;;  %s91_s2 = int_to_ptr.hbm [resolvable:$true] %s90_s2 }
  0x18   :  { %s3031_s23 = smov 128   ;;  %s3032_s24 = smov 8  }
  0x19   :  { %66 = dma.hbm_to_vmem [thread:$0]  %s59_s1, 512, %s61_s21, [#allocation7], %s3031_s23, %s3031_s23, %s3032_s24  }
  0x1a   :  { %s3033_s25 = smov [#allocation9]   ;;  %s114_s3 = sshll.u32 %s3869_s10, 4  ;;  %s115_s3 = int_to_ptr.hbm [resolvable:$true] %s114_s3 }
  0x1b   :  { %s92_s26 = sshll.u32 %s3033_s25, 4  ;;  %s141_s30 = sshll.u32 %s3871_s12, 4  ;;  %s93_s26 = int_to_ptr.vmem [resolvable:$true] %s92_s26  ;;  %s142_s30 = int_to_ptr.hbm [resolvable:$true] %s141_s30 }
  0x1c   :  { %98 = dma.hbm_to_vmem [thread:$0]  %s91_s2, 512, %s93_s26, [#allocation10], %s3031_s23, %s3031_s23, %s3032_s24  }
  0x1d   :  { %s3034_s0 = smov [#allocation12]   ;;  %s3035_s1 = smov [#allocation15]  }
  0x1e   :  { %s116_s19 = sshll.u32 %s3034_s0, 4  ;;  %s143_s10 = sshll.u32 %s3035_s1, 4  ;;  %s117_s19 = int_to_ptr.vmem [resolvable:$true] %s116_s19  ;;  %s144_s10 = int_to_ptr.vmem [resolvable:$true] %s143_s10 }
  0x1f   :  { %122 = dma.hbm_to_vmem [thread:$0]  %s115_s3, 512, %s117_s19, [#allocation13], %s3031_s23, %s3031_s23, %s3032_s24  }
  0x20   :  { %s165_s22 = sshll.u32 %s3873_s14, 4  ;;  %s3884_s12 = sld [smem:[#allocation32_spill]]  ;;  %s166_s22 = int_to_ptr.hbm [resolvable:$true] %s165_s22 }
  0x21   :  { %146 = dma.hbm_to_vmem [thread:$0]  %s142_s30, 16, %s144_s10, [#allocation16]  }
  0x22   :  { %s3036_s26 = smov [#allocation18]   ;;  %s3037_s28 = smov [#allocation4]  }
  0x23   :  { %s167_s27 = sshll.u32 %s3036_s26, 4  ;;  %s45_s3 = sshll.u32 %s3037_s28, 4  ;;  %s168_s27 = int_to_ptr.vmem [resolvable:$true] %s167_s27  ;;  %s46_s3 = int_to_ptr.vmem [resolvable:$true] %s45_s3 }
  0x24   :  { %170 = dma.hbm_to_vmem [thread:$0]  %s166_s22, 16, %s168_s27, [#allocation19]  }
  0x25   :  { %s77_s0 = sshll.u32 %s3866_s7, 4  ;;  %s104_s19 = sshll.u32 %s3868_s9, 4  ;;  %s78_s0 = int_to_ptr.hbm [resolvable:$true] %s77_s0  ;;  %s105_s19 = int_to_ptr.hbm [resolvable:$true] %s104_s19 }
  0x26   :  { %s43_s25 = sshll.u32 %s3884_s12, 4  ;;  %s3038_s1 = smov [#allocation8]   ;;  %s44_s25 = int_to_ptr.hbm [resolvable:$true] %s43_s25 }
  0x27   :  { %51 = dma.hbm_to_vmem [thread:$0]  %s44_s25, 256, %s46_s3, [#allocation5], %s3031_s23, %s3031_s23, %s3032_s24  }
  0x28   :  { %s79_s10 = sshll.u32 %s3038_s1, 4  ;;  %s3039_s20 = smov [#allocation11]   ;;  %s80_s10 = int_to_ptr.vmem [resolvable:$true] %s79_s10 }
  0x29   :  { %85 = dma.hbm_to_vmem [thread:$0]  %s78_s0, 512, %s80_s10, [#allocation7], %s3031_s23, %s3031_s23, %s3032_s24  }
  0x2a   :  { %s106_s7 = sshll.u32 %s3039_s20, 4  ;;  %s127_s6 = sshll.u32 %s3870_s11, 4  ;;  %s107_s7 = int_to_ptr.vmem [resolvable:$true] %s106_s7  ;;  %s128_s6 = int_to_ptr.hbm [resolvable:$true] %s127_s6 }
  0x2b   :  { %109 = dma.hbm_to_vmem [thread:$0]  %s105_s19, 16, %s107_s7, [#allocation10]  }
  0x2c   :  { %s151_s9 = sshll.u32 %s3872_s13, 4  ;;  %s3040_s25 = smov [#allocation14]   ;;  %s152_s9 = int_to_ptr.hbm [resolvable:$true] %s151_s9 }
  0x2d   :  { %s129_s26 = sshll.u32 %s3040_s25, 4  ;;  %s3041_s27 = smov [#allocation17]   ;;  %s130_s26 = int_to_ptr.vmem [resolvable:$true] %s129_s26 }
  0x2e   :  { %135 = dma.hbm_to_vmem [thread:$0]  %s128_s6, 512, %s130_s26, [#allocation13], %s3031_s23, %s3031_s23, %s3032_s24  }
  0x2f   :  { %s153_s28 = sshll.u32 %s3041_s27, 4  ;;  %s175_s11 = sshll.u32 %s3874_s15, 4  ;;  %s154_s28 = int_to_ptr.vmem [resolvable:$true] %s153_s28  ;;  %s176_s11 = int_to_ptr.hbm [resolvable:$true] %s175_s11 }
  0x30   :  { %159 = dma.hbm_to_vmem [thread:$0]  %s152_s9, 512, %s154_s28, [#allocation16], %s3031_s23, %s3031_s23, %s3032_s24  }
  0x31   :  { %s189_s0 = sshll.u32 %s3875_s16, 4  ;;  %s3042_s14 = smov [#allocation20]   ;;  %s190_s0 = int_to_ptr.hbm [resolvable:$true] %s189_s0 }
  0x32   :  { %s177_s30 = sshll.u32 %s3042_s14, 4  ;;  %s3043_s19 = smov [#allocation21]   ;;  %s178_s30 = int_to_ptr.vmem [resolvable:$true] %s177_s30 }
  0x33   :  { %183 = dma.hbm_to_vmem [thread:$0]  %s176_s11, 512, %s178_s30, [#allocation19], %s3031_s23, %s3031_s23, %s3032_s24  }
  0x34   :  { %s191_s15 = sshll.u32 %s3043_s19, 4  ;;  %s192_s15 = int_to_ptr.vmem [resolvable:$true] %s191_s15 }
  0x35   :  { %194 = dma.hbm_to_vmem [thread:$0]  %s190_s0, 16, %s192_s15, [#allocation22]  }
  0x36   :  { %3015 = dma.done.wait [#allocation5], 256  }
  0x37   :  { %3016 = vsyncadd [#allocation5], 4294967040 }
  0x38   :  { %3017 = dma.done.wait [#allocation7], 1024  }
  0x39   :  { %3018 = vsyncadd [#allocation7], 4294966272 }
  0x3a   :  { %3019 = dma.done.wait [#allocation10], 528  }
  0x3b   :  { %3020 = vsyncadd [#allocation10], 4294966768 }
  0x3c   :  { %3021 = dma.done.wait [#allocation13], 1024  }
  0x3d   :  { %3022 = vsyncadd [#allocation13], 4294966272 }
  0x3e   :  { %3023 = dma.done.wait [#allocation16], 528  }
  0x3f   :  { %3024 = vsyncadd [#allocation16], 4294966768 }
  0x40   :  { %3025 = dma.done.wait [#allocation19], 528  }
  0x41   :  { %3026 = vsyncadd [#allocation19], 4294966768 }
  0x42   :  { %3027 = dma.done.wait [#allocation22], 16  }
  0x43   :  { %3028 = vsyncadd [#allocation22], 4294967280  ;;  %v287_v0 = vld [vmem:[#allocation8 + $0x18] sm:$0xff]  ;;  %v286_v1 = vld [vmem:[#allocation8 + $0x10] sm:$0xff]  ;;  %vm250_vm0 = vcmask 261120   ;;  %s3885_s20 = sld [smem:[#allocation34_spill]] }
  0x44   :  { %365 = vmatpush.msra.mxu2 %v287_v0  ;;  %v3207_v2 = vld [vmem:[#allocation9 + $0x18] sm:$0xff]  ;;  %v3209_v3 = vld [vmem:[#allocation9 + $0x10] sm:$0xff]  ;;  %341 = vmatpush.msra.mxu1 %v287_v0  ;;  %v285_v4 = vld [vmem:[#allocation8 + $0x8] sm:$0xff]  ;;  %s3045_s7 = smov 32   ;;  %s3886_s6 = sld [smem:[#allocation33_spill]]  ;;  %vm309_vm5 = vcmask 1040384  }
  0x45   :  { %390 = vmatpush.msra.mxu3 %v3207_v2  ;;  %v3212_v5 = vld [vmem:[#allocation9 + $0x8] sm:$0xff]  ;;  %v3217_v6 = vld [vmem:[%s3864_s5] sm:$0x3]  ;;  %v284_v7 = vld [vmem:[#allocation8] sm:$0xff]  ;;  %vm311_vm6 = vcmask 1041408   ;;  %vm313_vm7 = vcmask 1042432  }
  0x46   :  { %366 = vmatpush.msra.mxu2 %v286_v1  ;;  %342 = vmatpush.msra.mxu1 %v286_v1  ;;  %v349_v8 = vld [vmem:[%s3863_s4] sm:$0x1]  ;;  %v3223_v9 = vld [vmem:[#allocation9] sm:$0xff]  ;;  %v373_v10 = vperm.slane %v3217_v6, 0  ;;  %s3044_s4 = smov 64   ;;  %vm315_vm8 = vcmask 1043456  }
  0x47   :  { %391 = vmatpush.msra.mxu3 %v3209_v3  ;;  %v292_v11 = vld [vmem:[#allocation11] sm:$0x1]  ;;  %vm317_vm9 = vcmask 1044480   ;;  %vm319_vm10 = vcmask 1045504   ;;  %vm321_vm11 = vcmask 1046528   ;;  %s1124_s9 = sld [smem:[#allocation3]] }
  0x48   :  { %367 = vmatpush.msra.mxu2 %v285_v4  ;;  %343 = vmatpush.msra.mxu1 %v285_v4  ;;  %v2521_v60 = vld [vmem:[#allocation11] ss:$0 sm:$0xff]  ;;  %s3046_s25 = smov 96   ;;  %s2487_s26 = sld [smem:[#allocation3 + $0x1]] }
  0x49   :  { %392 = vmatpush.msra.mxu3 %v3212_v5  ;;  %v3246_v18 = vld [vmem:[%s3885_s20] sm:$0x3] }
  0x4a   :  { %368 = vmatpush.msra.mxu2 %v284_v7  ;;  %344 = vmatpush.msra.mxu1 %v284_v7  ;;  %v374_v19 = vperm.slane %v3246_v18, 0  ;;  %v280_v40 = vld [vmem:[%s3886_s6] sm:$0xf]  ;;  %v281_v41 = vld [vmem:[%s3886_s6 + $0x4] sm:$0xf] }
  0x4b   :  { %2459 = vmatmul.msk.f32.vlgmr.msra.gmra.mxu2 %vm250_vm0, %v349_v8  ;;  %393 = vmatpush.msra.mxu3 %v3223_v9  ;;  %v294_v42 = vrot.slane %v281_v41, 7  ;;  %v297_v43 = vrot.slane %v280_v40, 7  ;;  %v299_v44 = vrot.slane %v281_v41, 6  ;;  %v301_v45 = vrot.slane %v280_v40, 6 }
  0x4c   :  { %2460 = vmatmul.msk.f32.vlgmr.msra.gmra.mxu3 %vm250_vm0, %v373_v10  ;;  %458 = vmatpush.msrb.mxu1 %v3207_v2  ;;  %v303_v46 = vrot.slane %v281_v41, 5  ;;  %v305_v48 = vrot.slane %v280_v40, 5  ;;  %v307_v50 = vrot.slane %v281_v41, 4 }
  0x4d   :  { %521 = vmatpush.msrb.mxu2 %v3207_v2  ;;  %591 = vmatpush.msrb.mxu3 %v3207_v2  ;;  %v310_v47 = vsel %vm309_vm5, %v280_v40, %v294_v42 }
  0x4e   :  { %459 = vmatpush.msrb.mxu1 %v3209_v3  ;;  %v312_v49 = vsel %vm311_vm6, %v310_v47, %v297_v43 }
  0x4f   :  { %522 = vmatpush.msrb.mxu2 %v3209_v3  ;;  %592 = vmatpush.msrb.mxu3 %v3209_v3  ;;  %v314_v51 = vsel %vm313_vm7, %v312_v49, %v299_v44 }
  0x50   :  { %460 = vmatpush.msrb.mxu1 %v3212_v5  ;;  %v316_v52 = vsel %vm315_vm8, %v314_v51, %v301_v45 }
  0x51   :  { %523 = vmatpush.msrb.mxu2 %v3212_v5  ;;  %593 = vmatpush.msrb.mxu3 %v3212_v5  ;;  %v318_v53 = vsel %vm317_vm9, %v316_v52, %v303_v46 }
  0x52   :  { %461 = vmatpush.msrb.mxu1 %v3223_v9  ;;  %v320_v54 = vsel %vm319_vm10, %v318_v53, %v305_v48 }
  0x53   :  { %524 = vmatpush.msrb.mxu2 %v3223_v9  ;;  %594 = vmatpush.msrb.mxu3 %v3223_v9  ;;  %v322_v55 = vsel %vm321_vm11, %v320_v54, %v307_v50 }
  0x54   :  { %2458 = vmatmul.msk.f32.vlgmr.msra.gmra.mxu1 %vm250_vm0, %v322_v55 }
  0xce   :  { %v370_v12 = vpop.f32.mrf.mxu2 }
  0xcf   :  { %v371_v13 = vadd.f32 %v370_v12, %v292_v11  ;;  %v395_v14 = vpop.f32.mrf.mxu3 }
  0xd1   :  { %v398_v15 = vperm.slane %v371_v13, 0  ;;  %v346_v59 = vpop.f32.mrf.mxu1 }
  0xd2   :  { %v3272_v61 = vadd.f32 %v2521_v60, %v346_v59 }
  0xd3   :  { %v399_v16 = vadd.f32 %v398_v15, %v395_v14 }
  0xd5   :  { %2525 = vtanh.f32 %v399_v16  ;;  %v2461_v20 = vmul.f32 -1.442695, %v399_v16 }
  0xd7   :  { %2527 = vpow2.f32 %v2461_v20 }
  0xdb   :  { %v2526_v17 = vpop.eup %2525 }
  0xdc   :  { %426 = vrot.lane.b32.xlu0 %v2526_v17, %s3044_s4 }
  0xdd   :  { %v2528_v21 = vpop.eup %2527 }
  0xde   :  { %v403_v22 = vadd.f32 1.0, %v2528_v21 }
  0xe0   :  { %2529 = vrcp.f32 %v403_v22  ;;  %v415_v28 = vand.u32 2147483648, %v403_v22  ;;  %vm409_vm2 = vweird.f32 %v403_v22  ;;  %v413_v29 = vand.u32 2147483647, %v403_v22 }
  0xe2   :  { %v416_v31 = vor.u32 1.1754944e-38, %v415_v28  ;;  %vm414_vm4 = vcmp.eq.f32.partialorder %v413_v29, 8.507059e+37 }
  0xe4   :  { %421 = vrot.lane.b32.xlu0 %v374_v19, %s3045_s7 }
  0xe6   :  { %v2530_v23 = vpop.eup %2529 }
  0xe7   :  { %v405_v24 = vmul.f32 %v2530_v23, %v403_v22  ;;  %vm410_vm1 = vweird.f32 %v2530_v23 }
  0xe8   :  { %vm411_vm3 = vmor %vm409_vm2, %vm410_vm1 }
  0xe9   :  { %v406_v25 = vsub.f32 1.0, %v405_v24 }
  0xeb   :  { %v407_v26 = vmul.f32 %v2530_v23, %v406_v25 }
  0xed   :  { %v408_v27 = vadd.f32 %v2530_v23, %v407_v26 }
  0xef   :  { %v412_v30 = vsel %vm411_vm3, %v2530_v23, %v408_v27 }
  0xf0   :  { %v417_v33 = vsel %vm414_vm4, %v416_v31, %v412_v30 }
 0x14e   :  { %v427_v32 = vpop.permute.xlu0 %426 }
 0x14f   :  { %v429_v34 = vmul.f32 %v427_v32, %v417_v33 }
 0x151   :  { %431 = vrot.lane.b32.xlu1 %v429_v34, %s3045_s7 }
 0x156   :  { %v422_v35 = vpop.permute.xlu0 %421 }
 0x157   :  { %v424_v36 = vmul.f32 %v422_v35, %v417_v33 }
 0x1c3   :  { %v432_v37 = vpop.permute.xlu1 %431 }
 0x1c4   :  { %v3251_v38 = vadd.f32 %v432_v37, %v424_v36 }
 0x1c6   :  { %2531 = vtanh.f32 %v3251_v38 }
 0x1cc   :  { %v2532_v39 = vpop.eup %2531 }
 0x1cd   :  { %437 = vrot.lane.b32.xlu1 %v2532_v39, %s3044_s4 }
 0x23f   :  { %v438_v56 = vpop.permute.xlu1 %437 }
 0x240   :  { %v3267_v57 = vmul.f32 %v438_v56, %v417_v33 }
 0x242   :  { %442 = vrot.lane.b32.xlu2 %v3267_v57, %s3045_s7 }
 0x29c   :  { %v443_v58 = vpop.permute.xlu2 %442 }
 0x29d   :  { %2462 = vmatmul.msk.f32.vlgmr.msrb.gmra.mxu1 %vm250_vm0, %v443_v58 }
 0x31a   :  { %v463_v62 = vpop.f32.mrf.mxu1 }
 0x31b   :  { %v466_v63 = vadd.f32 %v463_v62, %v3272_v61 }
 0x31d   :  { %2533 = vtanh.f32 %v466_v63  ;;  %v2463_v1 = vmul.f32 -1.442695, %v466_v63 }
 0x31f   :  { %2535 = vpow2.f32 %v2463_v1 }
 0x323   :  { %v2534_v0 = vpop.eup %2533 }
 0x324   :  { %489 = vrot.lane.b32.xlu2 %v2534_v0, %s3044_s4 }
 0x325   :  { %v2536_v4 = vpop.eup %2535 }
 0x326   :  { %v470_v7 = vadd.f32 1.0, %v2536_v4 }
 0x328   :  { %2537 = vrcp.f32 %v470_v7  ;;  %v482_v14 = vand.u32 2147483648, %v470_v7  ;;  %vm476_vm13 = vweird.f32 %v470_v7  ;;  %v480_v15 = vand.u32 2147483647, %v470_v7 }
 0x32a   :  { %v483_v17 = vor.u32 1.1754944e-38, %v482_v14  ;;  %vm481_vm15 = vcmp.eq.f32.partialorder %v480_v15, 8.507059e+37 }
 0x32e   :  { %v2538_v8 = vpop.eup %2537 }
 0x32f   :  { %v472_v10 = vmul.f32 %v2538_v8, %v470_v7  ;;  %vm477_vm12 = vweird.f32 %v2538_v8 }
 0x330   :  { %vm478_vm14 = vmor %vm476_vm13, %vm477_vm12 }
 0x331   :  { %v473_v11 = vsub.f32 1.0, %v472_v10 }
 0x333   :  { %v474_v12 = vmul.f32 %v2538_v8, %v473_v11 }
 0x335   :  { %v475_v13 = vadd.f32 %v2538_v8, %v474_v12 }
 0x337   :  { %v479_v16 = vsel %vm478_vm14, %v2538_v8, %v475_v13 }
 0x338   :  { %v484_v20 = vsel %vm481_vm15, %v483_v17, %v479_v16 }
 0x339   :  { %v487_v22 = vmul.f32 %v484_v20, %v3251_v38 }
 0x37e   :  { %v490_v19 = vpop.permute.xlu2 %489 }
 0x37f   :  { %v492_v21 = vmul.f32 %v490_v19, %v484_v20 }
 0x381   :  { %494 = vrot.lane.b32.xlu0 %v492_v21, %s3045_s7 }
 0x3f3   :  { %v495_v23 = vpop.permute.xlu0 %494 }
 0x3f4   :  { %v497_v24 = vadd.f32 %v495_v23, %v487_v22 }
 0x3f6   :  { %2539 = vtanh.f32 %v497_v24  ;;  %v554_v48 = vrot.slane %v497_v24, 6 }
 0x3fc   :  { %v2540_v25 = vpop.eup %2539 }
 0x3fd   :  { %500 = vrot.lane.b32.xlu1 %v2540_v25, %s3044_s4 }
 0x46f   :  { %v501_v26 = vpop.permute.xlu1 %500 }
 0x470   :  { %v503_v27 = vmul.f32 %v501_v26, %v484_v20 }
 0x472   :  { %505 = vrot.lane.b32.xlu2 %v503_v27, %s3045_s7  ;;  %v722_v53 = vrot.slane %v503_v27, 6 }
 0x474   :  { %v730_v59 = vsel %vm311_vm6, %v3267_v57, %v722_v53 }
 0x4cc   :  { %v506_v28 = vpop.permute.xlu2 %505 }
 0x4cd   :  { %2464 = vmatmul.msk.f32.vlgmr.msrb.gmra.mxu2 %vm250_vm0, %v506_v28  ;;  %v3299_v28 = vld [vmem:[#allocation14 + $0x18] sm:$0xff] }
 0x4ce   :  { %785 = vmatpush.msra.mxu2 %v3299_v28  ;;  %852 = vmatpush.msra.mxu3 %v3299_v28 }
 0x550   :  { %v526_v29 = vpop.f32.mrf.mxu2 }
 0x551   :  { %v530_v30 = vrot.slane %v526_v29, 6  ;;  %v3301_v29 = vld [vmem:[#allocation14 + $0x10] sm:$0xff] }
 0x552   :  { %786 = vmatpush.msra.mxu2 %v3301_v29  ;;  %853 = vmatpush.msra.mxu3 %v3301_v29 }
 0x553   :  { %v532_v31 = vadd.f32 %v530_v30, %v3272_v61  ;;  %v716_v30 = vld [vmem:[#allocation12 + $0x18] sm:$0xff] }
 0x554   :  { %757 = vmatpush.msra.mxu1 %v716_v30 }
 0x555   :  { %2541 = vtanh.f32 %v532_v31  ;;  %v2465_v33 = vmul.f32 -1.442695, %v532_v31  ;;  %v715_v31 = vld [vmem:[#allocation12 + $0x10] sm:$0xff] }
 0x556   :  { %758 = vmatpush.msra.mxu1 %v715_v31 }
 0x557   :  { %2543 = vpow2.f32 %v2465_v33  ;;  %v714_v33 = vld [vmem:[#allocation12 + $0x8] sm:$0xff] }
 0x558   :  { %759 = vmatpush.msra.mxu1 %v714_v33 }
 0x55b   :  { %v2542_v32 = vpop.eup %2541 }
 0x55c   :  { %558 = vrot.lane.b32.xlu0 %v2542_v32, %s3044_s4  ;;  %v3304_v32 = vld [vmem:[#allocation14 + $0x8] sm:$0xff] }
 0x55d   :  { %v2544_v34 = vpop.eup %2543  ;;  %787 = vmatpush.msra.mxu2 %v3304_v32  ;;  %854 = vmatpush.msra.mxu3 %v3304_v32 }
 0x55e   :  { %v536_v35 = vadd.f32 1.0, %v2544_v34  ;;  %v768_v34 = vperm.slane %v3217_v6, 1 }
 0x560   :  { %2545 = vrcp.f32 %v536_v35  ;;  %v548_v41 = vand.u32 2147483648, %v536_v35  ;;  %vm542_vm2 = vweird.f32 %v536_v35  ;;  %v546_v42 = vand.u32 2147483647, %v536_v35 }
 0x562   :  { %v549_v44 = vor.u32 1.1754944e-38, %v548_v41  ;;  %vm547_vm4 = vcmp.eq.f32.partialorder %v546_v42, 8.507059e+37  ;;  %v3334_v42 = vld [vmem:[#allocation15] ss:$0 sm:$0xff] }
 0x566   :  { %v2546_v36 = vpop.eup %2545 }
 0x567   :  { %v538_v37 = vmul.f32 %v2546_v36, %v536_v35  ;;  %vm543_vm1 = vweird.f32 %v2546_v36  ;;  %v3309_v35 = vld [vmem:[#allocation14] sm:$0xff] }
 0x568   :  { %vm544_vm3 = vmor %vm542_vm2, %vm543_vm1  ;;  %788 = vmatpush.msra.mxu2 %v3309_v35  ;;  %855 = vmatpush.msra.mxu3 %v3309_v35 }
 0x569   :  { %v539_v38 = vsub.f32 1.0, %v538_v37  ;;  %2472 = vmatmul.msk.f32.vlgmr.msra.gmra.mxu2 %vm250_vm0, %v768_v34 }
 0x56a   :  { %992 = vmatpush.msrb.mxu2 %v3299_v28 }
 0x56b   :  { %v540_v39 = vmul.f32 %v2546_v36, %v539_v38 }
 0x56c   :  { %993 = vmatpush.msrb.mxu2 %v3301_v29 }
 0x56d   :  { %v541_v40 = vadd.f32 %v2546_v36, %v540_v39 }
 0x56e   :  { %994 = vmatpush.msrb.mxu2 %v3304_v32 }
 0x56f   :  { %v545_v43 = vsel %vm544_vm3, %v2546_v36, %v541_v40  ;;  %v713_v36 = vld [vmem:[#allocation12] sm:$0xff]  ;;  %v769_v40 = vperm.slane %v3246_v18, 1 }
 0x570   :  { %v550_v46 = vsel %vm547_vm4, %v549_v44, %v545_v43  ;;  %760 = vmatpush.msra.mxu1 %v713_v36  ;;  %995 = vmatpush.msrb.mxu2 %v3309_v35 }
 0x571   :  { %v556_v49 = vmul.f32 %v554_v48, %v550_v46 }
 0x5ce   :  { %v559_v45 = vpop.permute.xlu0 %558 }
 0x5cf   :  { %v561_v47 = vmul.f32 %v559_v45, %v550_v46 }
 0x5d1   :  { %563 = vrot.lane.b32.xlu1 %v561_v47, %s3045_s7 }
 0x5ec   :  { %v790_v44 = vpop.f32.mrf.mxu2 }
 0x643   :  { %v564_v50 = vpop.permute.xlu1 %563 }
 0x644   :  { %v566_v51 = vadd.f32 %v564_v50, %v556_v49 }
 0x646   :  { %2547 = vtanh.f32 %v566_v51  ;;  %v624_v23 = vrot.slane %v566_v51, 6 }
 0x64c   :  { %v2548_v52 = vpop.eup %2547 }
 0x64d   :  { %569 = vrot.lane.b32.xlu2 %v2548_v52, %s3044_s4 }
 0x6a7   :  { %v570_v54 = vpop.permute.xlu2 %569 }
 0x6a8   :  { %v572_v55 = vmul.f32 %v570_v54, %v550_v46 }
 0x6aa   :  { %v574_v56 = vrot.slane %v572_v55, 2  ;;  %v724_v58 = vrot.slane %v572_v55, 6 }
 0x6ac   :  { %575 = vrot.lane.b32.xlu0 %v574_v56, %s3045_s7  ;;  %v3289_v60 = vsel %vm315_vm8, %v730_v59, %v724_v58 }
 0x71e   :  { %v576_v62 = vpop.permute.xlu0 %575 }
 0x71f   :  { %2466 = vmatmul.msk.f32.vlgmr.msrb.gmra.mxu3 %vm250_vm0, %v576_v62 }
 0x720   :  { %1062 = vmatpush.msrb.mxu3 %v3299_v28 }
 0x722   :  { %1063 = vmatpush.msrb.mxu3 %v3301_v29 }
 0x724   :  { %1064 = vmatpush.msrb.mxu3 %v3304_v32 }
 0x726   :  { %1065 = vmatpush.msrb.mxu3 %v3309_v35 }
 0x7a2   :  { %v596_v63 = vpop.f32.mrf.mxu3 }
 0x7a3   :  { %v600_v0 = vrot.slane %v596_v63, 4 }
 0x7a5   :  { %v602_v1 = vadd.f32 %v600_v0, %v3272_v61 }
 0x7a7   :  { %2549 = vtanh.f32 %v602_v1  ;;  %v2467_v7 = vmul.f32 -1.442695, %v602_v1 }
 0x7a9   :  { %2551 = vpow2.f32 %v2467_v7 }
 0x7ad   :  { %v2550_v4 = vpop.eup %2549 }
 0x7ae   :  { %628 = vrot.lane.b32.xlu1 %v2550_v4, %s3044_s4 }
 0x7af   :  { %v2552_v8 = vpop.eup %2551 }
 0x7b0   :  { %v606_v57 = vadd.f32 1.0, %v2552_v8 }
 0x7b2   :  { %2553 = vrcp.f32 %v606_v57  ;;  %v618_v15 = vand.u32 2147483648, %v606_v57  ;;  %vm612_vm11 = vweird.f32 %v606_v57  ;;  %v616_v16 = vand.u32 2147483647, %v606_v57 }
 0x7b4   :  { %v619_v19 = vor.u32 1.1754944e-38, %v618_v15  ;;  %vm617_vm13 = vcmp.eq.f32.partialorder %v616_v16, 8.507059e+37  ;;  %v246_v15 = vld [vmem:[#allocation6] sm:$0xff]  ;;  %v243_v16 = vld [vmem:[#allocation4] sm:$0xff] }
 0x7b8   :  { %v2554_v10 = vpop.eup %2553 }
 0x7b9   :  { %v608_v11 = vmul.f32 %v2554_v10, %v606_v57  ;;  %vm613_vm9 = vweird.f32 %v2554_v10 }
 0x7ba   :  { %vm614_vm12 = vmor %vm612_vm11, %vm613_vm9 }
 0x7bb   :  { %v609_v12 = vsub.f32 1.0, %v608_v11 }
 0x7bd   :  { %v610_v13 = vmul.f32 %v2554_v10, %v609_v12  ;;  %v249_v12 = vld [vmem:[#allocation6 + $0x18] sm:$0xff] }
 0x7be   :  { %269 = vmatpush.msra.mxu0 %v249_v12 }
 0x7bf   :  { %v611_v14 = vadd.f32 %v2554_v10, %v610_v13  ;;  %v248_v13 = vld [vmem:[#allocation6 + $0x10] sm:$0xff] }
 0x7c0   :  { %270 = vmatpush.msra.mxu0 %v248_v13 }
 0x7c1   :  { %v615_v17 = vsel %vm614_vm12, %v2554_v10, %v611_v14  ;;  %v247_v14 = vld [vmem:[#allocation6 + $0x8] sm:$0xff] }
 0x7c2   :  { %v620_v21 = vsel %vm617_vm13, %v619_v19, %v615_v17  ;;  %271 = vmatpush.msra.mxu0 %v247_v14 }
 0x7c3   :  { %v626_v24 = vmul.f32 %v624_v23, %v620_v21 }
 0x7c4   :  { %272 = vmatpush.msra.mxu0 %v246_v15 }
 0x7c5   :  { %2456 = vmatmul.msk.f32.vlgmr.msra.gmra.mxu0 %vm250_vm0, %v243_v16 }
 0x7c6   :  { %661 = vmatpush.msrb.mxu0 %v3207_v2 }
 0x7c8   :  { %662 = vmatpush.msrb.mxu0 %v3209_v3 }
 0x7ca   :  { %663 = vmatpush.msrb.mxu0 %v3212_v5 }
 0x7cc   :  { %664 = vmatpush.msrb.mxu0 %v3223_v9 }
 0x7ce   :  { %922 = vmatpush.msra.mxu0 %v3299_v28 }
 0x7d0   :  { %923 = vmatpush.msra.mxu0 %v3301_v29 }
 0x7d2   :  { %924 = vmatpush.msra.mxu0 %v3304_v32 }
 0x7d4   :  { %925 = vmatpush.msra.mxu0 %v3309_v35 }
 0x820   :  { %v629_v20 = vpop.permute.xlu1 %628 }
 0x821   :  { %v631_v22 = vmul.f32 %v629_v20, %v620_v21 }
 0x823   :  { %633 = vrot.lane.b32.xlu2 %v631_v22, %s3045_s7  ;;  %v245_v22 = vld [vmem:[#allocation4 + $0x8] sm:$0xff] }
 0x824   :  { %2457 = vmatmul.msk.f32.gmra.mxu0 %vm250_vm0, %v245_v22 }
 0x87d   :  { %v634_v25 = vpop.permute.xlu2 %633 }
 0x87e   :  { %v3295_v26 = vadd.f32 %v634_v25, %v626_v24 }
 0x880   :  { %2555 = vtanh.f32 %v3295_v26 }
 0x886   :  { %v2556_v27 = vpop.eup %2555 }
 0x887   :  { %639 = vrot.lane.b32.xlu0 %v2556_v27, %s3044_s4 }
 0x88f   :  { %815 = vrot.lane.b32.xlu0 %v769_v40, %s3045_s7 }
 0x8f9   :  { %v640_v6 = vpop.permute.xlu0 %639 }
 0x8fa   :  { %v3325_v37 = vmul.f32 %v640_v6, %v620_v21 }
 0x8fc   :  { %v726_v38 = vrot.slane %v3325_v37, 6  ;;  %v644_v3 = vrot.slane %v3325_v37, 4 }
 0x8fe   :  { %v732_v39 = vsel %vm319_vm10, %v3289_v60, %v726_v38 }
 0x8ff   :  { %737 = vrot.lane.b32.xlu1 %v732_v39, %s3045_s7 }
 0x901   :  { %v816_v0 = vpop.permute.xlu0 %815 }
 0x971   :  { %v738_v41 = vpop.permute.xlu1 %737 }
 0x972   :  { %2470 = vmatmul.msk.f32.vlgmr.msra.gmra.mxu1 %vm250_vm0, %v738_v41 }
 0x9ef   :  { %v762_v43 = vpop.f32.mrf.mxu1 }
 0x9f0   :  { %v3337_v45 = vadd.f32 %v3334_v42, %v762_v43 }
 0x9f2   :  { %v793_v46 = vadd.f32 %v790_v44, %v3337_v45 }
 0x9f4   :  { %2557 = vtanh.f32 %v793_v46  ;;  %v2473_v48 = vmul.f32 -1.442695, %v793_v46 }
 0x9f6   :  { %2559 = vpow2.f32 %v2473_v48 }
 0x9fa   :  { %v2558_v47 = vpop.eup %2557 }
 0x9fb   :  { %820 = vrot.lane.b32.xlu2 %v2558_v47, %s3044_s4  ;;  %v3371_v47 = vpop.f32.mrf.mxu0 }
 0x9fc   :  { %v2560_v18 = vpop.eup %2559 }
 0x9fd   :  { %v797_v49 = vadd.f32 1.0, %v2560_v18 }
 0x9ff   :  { %2561 = vrcp.f32 %v797_v49  ;;  %v809_v55 = vand.u32 2147483648, %v797_v49  ;;  %vm803_vm14 = vweird.f32 %v797_v49  ;;  %v807_v56 = vand.u32 2147483647, %v797_v49 }
 0xa01   :  { %v810_v59 = vor.u32 1.1754944e-38, %v809_v55  ;;  %vm808_vm1 = vcmp.eq.f32.partialorder %v807_v56, 8.507059e+37 }
 0xa03   :  { %v3373_v48 = vpop.f32.mrf.mxu0 }
 0xa05   :  { %v2562_v50 = vpop.eup %2561 }
 0xa06   :  { %v799_v51 = vmul.f32 %v2562_v50, %v797_v49  ;;  %vm804_vm10 = vweird.f32 %v2562_v50 }
 0xa07   :  { %vm805_vm15 = vmor %vm803_vm14, %vm804_vm10 }
 0xa08   :  { %v800_v52 = vsub.f32 1.0, %v799_v51 }
 0xa0a   :  { %v801_v53 = vmul.f32 %v2562_v50, %v800_v52 }
 0xa0c   :  { %v802_v54 = vadd.f32 %v2562_v50, %v801_v53 }
 0xa0e   :  { %v806_v58 = vsel %vm805_vm15, %v2562_v50, %v802_v54 }
 0xa0f   :  { %v811_v60 = vsel %vm808_vm1, %v810_v59, %v806_v58 }
 0xa10   :  { %v818_v1 = vmul.f32 %v816_v0, %v811_v60 }
 0xa55   :  { %v821_v62 = vpop.permute.xlu2 %820 }
 0xa56   :  { %v823_v63 = vmul.f32 %v821_v62, %v811_v60 }
 0xa58   :  { %825 = vrot.lane.b32.xlu1 %v823_v63, %s3045_s7 }
 0xaca   :  { %v826_v4 = vpop.permute.xlu1 %825 }
 0xacb   :  { %v3342_v7 = vadd.f32 %v826_v4, %v818_v1 }
 0xacd   :  { %2563 = vtanh.f32 %v3342_v7  ;;  %v885_v6 = vrot.slane %v3342_v7, 6 }
 0xad3   :  { %v2564_v8 = vpop.eup %2563 }
 0xad4   :  { %831 = vrot.lane.b32.xlu2 %v2564_v8, %s3044_s4 }
 0xb2e   :  { %v832_v57 = vpop.permute.xlu2 %831 }
 0xb2f   :  { %v3346_v10 = vmul.f32 %v832_v57, %v811_v60 }
 0xb31   :  { %836 = vrot.lane.b32.xlu0 %v3346_v10, %s3045_s7 }
 0xba3   :  { %v837_v11 = vpop.permute.xlu0 %836 }
 0xba4   :  { %2474 = vmatmul.msk.f32.vlgmr.msra.gmra.mxu3 %vm250_vm0, %v837_v11 }
 0xc27   :  { %v857_v17 = vpop.f32.mrf.mxu3 }
 0xc28   :  { %v861_v19 = vrot.slane %v857_v17, 6 }
 0xc2a   :  { %v863_v20 = vadd.f32 %v861_v19, %v3337_v45 }
 0xc2c   :  { %2565 = vtanh.f32 %v863_v20  ;;  %v2475_v5 = vmul.f32 -1.442695, %v863_v20 }
 0xc2e   :  { %2567 = vpow2.f32 %v2475_v5  ;;  %v1793_v5 = vrot.slane %v3346_v10, 1 }
 0xc32   :  { %v2566_v2 = vpop.eup %2565 }
 0xc33   :  { %889 = vrot.lane.b32.xlu1 %v2566_v2, %s3044_s4 }
 0xc34   :  { %v2568_v21 = vpop.eup %2567 }
 0xc35   :  { %v867_v9 = vadd.f32 1.0, %v2568_v21 }
 0xc37   :  { %2569 = vrcp.f32 %v867_v9  ;;  %v879_v29 = vand.u32 2147483648, %v867_v9  ;;  %vm873_vm3 = vweird.f32 %v867_v9  ;;  %v877_v30 = vand.u32 2147483647, %v867_v9 }
 0xc39   :  { %v880_v32 = vor.u32 1.1754944e-38, %v879_v29  ;;  %vm878_vm9 = vcmp.eq.f32.partialorder %v877_v30, 8.507059e+37 }
 0xc3b   :  { %645 = vrot.lane.b32.xlu1 %v644_v3, %s3045_s7 }
 0xc3d   :  { %v2570_v23 = vpop.eup %2569 }
 0xc3e   :  { %v869_v24 = vmul.f32 %v2570_v23, %v867_v9  ;;  %vm874_vm2 = vweird.f32 %v2570_v23 }
 0xc3f   :  { %vm875_vm4 = vmor %vm873_vm3, %vm874_vm2 }
 0xc40   :  { %v870_v25 = vsub.f32 1.0, %v869_v24 }
 0xc42   :  { %v871_v27 = vmul.f32 %v2570_v23, %v870_v25 }
 0xc44   :  { %v872_v28 = vadd.f32 %v2570_v23, %v871_v27 }
 0xc46   :  { %v876_v31 = vsel %vm875_vm4, %v2570_v23, %v872_v28 }
 0xc47   :  { %v881_v34 = vsel %vm878_vm9, %v880_v32, %v876_v31 }
 0xc48   :  { %v887_v37 = vmul.f32 %v885_v6, %v881_v34 }
 0xca5   :  { %v890_v33 = vpop.permute.xlu1 %889 }
 0xca6   :  { %v892_v35 = vmul.f32 %v890_v33, %v881_v34 }
 0xca8   :  { %894 = vrot.lane.b32.xlu2 %v892_v35, %s3045_s7 }
 0xcad   :  { %v646_v36 = vpop.permute.xlu1 %645 }
 0xcae   :  { %2468 = vmatmul.msk.f32.vlgmr.msrb.gmra.mxu0 %vm250_vm0, %v646_v36 }
 0xd02   :  { %v895_v38 = vpop.permute.xlu2 %894 }
 0xd03   :  { %v897_v39 = vadd.f32 %v895_v38, %v887_v37 }
 0xd05   :  { %2571 = vtanh.f32 %v897_v39  ;;  %v955_v11 = vrot.slane %v897_v39, 6 }
 0xd0b   :  { %v2572_v40 = vpop.eup %2571 }
 0xd0c   :  { %900 = vrot.lane.b32.xlu0 %v2572_v40, %s3044_s4 }
 0xd2b   :  { %v666_v18 = vpop.f32.mrf.mxu0 }
 0xd2c   :  { %v670_v15 = vrot.slane %v666_v18, 2 }
 0xd2e   :  { %v672_v16 = vadd.f32 %v670_v15, %v3272_v61 }
 0xd30   :  { %v2469_v28 = vmul.f32 -1.442695, %v672_v16 }
 0xd7e   :  { %v901_v41 = vpop.permute.xlu0 %900 }
 0xd7f   :  { %v903_v43 = vmul.f32 %v901_v41, %v881_v34 }
 0xd81   :  { %v905_v44 = vrot.slane %v903_v43, 2  ;;  %v1128_v20 = vrot.slane %v903_v43, 1 }
 0xd83   :  { %906 = vrot.lane.b32.xlu2 %v905_v44, %s3045_s7  ;;  %v1137_v23 = vsel %vm309_vm5, %v3346_v10, %v1128_v20  ;;  %v1802_v61 = vsel %vm309_vm5, %v1793_v5, %v905_v44 }
 0xddd   :  { %v907_v46 = vpop.permute.xlu2 %906 }
 0xdde   :  { %2476 = vmatmul.msk.f32.vlgmr.msra.gmra.mxu0 %vm250_vm0, %v907_v46 }
 0xe5b   :  { %v927_v49 = vpop.f32.mrf.mxu0 }
 0xe5c   :  { %v931_v50 = vrot.slane %v927_v49, 4 }
 0xe5e   :  { %v933_v51 = vadd.f32 %v931_v50, %v3337_v45 }
 0xe60   :  { %2573 = vtanh.f32 %v933_v51  ;;  %v2477_v53 = vmul.f32 -1.442695, %v933_v51 }
 0xe62   :  { %2575 = vpow2.f32 %v2477_v53 }
 0xe66   :  { %v2574_v52 = vpop.eup %2573 }
 0xe67   :  { %959 = vrot.lane.b32.xlu0 %v2574_v52, %s3044_s4 }
 0xe68   :  { %v2576_v54 = vpop.eup %2575 }
 0xe69   :  { %v937_v55 = vadd.f32 1.0, %v2576_v54 }
 0xe6b   :  { %2577 = vrcp.f32 %v937_v55  ;;  %v949_v63 = vand.u32 2147483648, %v937_v55  ;;  %vm943_vm12 = vweird.f32 %v937_v55  ;;  %v947_v0 = vand.u32 2147483647, %v937_v55 }
 0xe6d   :  { %v950_v4 = vor.u32 1.1754944e-38, %v949_v63  ;;  %vm948_vm10 = vcmp.eq.f32.partialorder %v947_v0, 8.507059e+37  ;;  %v694_v0 = vrot.slane %v3295_v26, 6 }
 0xe71   :  { %v2578_v56 = vpop.eup %2577 }
 0xe72   :  { %v939_v58 = vmul.f32 %v2578_v56, %v937_v55  ;;  %vm944_vm11 = vweird.f32 %v2578_v56 }
 0xe73   :  { %vm945_vm13 = vmor %vm943_vm12, %vm944_vm11 }
 0xe74   :  { %v940_v59 = vsub.f32 1.0, %v939_v58 }
 0xe76   :  { %v941_v60 = vmul.f32 %v2578_v56, %v940_v59 }
 0xe78   :  { %v942_v62 = vadd.f32 %v2578_v56, %v941_v60 }
 0xe7a   :  { %v946_v1 = vsel %vm945_vm13, %v2578_v56, %v942_v62  ;;  %vm1284_vm13 = vcmask 1041409  }
 0xe7b   :  { %v951_v8 = vsel %vm948_vm10, %v950_v4, %v946_v1  ;;  %vm1286_vm10 = vcmask 1042434  }
 0xe7c   :  { %v957_v12 = vmul.f32 %v955_v11, %v951_v8 }
 0xed9   :  { %v960_v7 = vpop.permute.xlu0 %959 }
 0xeda   :  { %v962_v57 = vmul.f32 %v960_v7, %v951_v8 }
 0xedc   :  { %964 = vrot.lane.b32.xlu1 %v962_v57, %s3045_s7 }
 0xf4e   :  { %v965_v13 = vpop.permute.xlu1 %964 }
 0xf4f   :  { %v3378_v14 = vadd.f32 %v965_v13, %v957_v12 }
 0xf51   :  { %2579 = vtanh.f32 %v3378_v14  ;;  %v1025_v57 = vrot.slane %v3378_v14, 6 }
 0xf52   :  { %2581 = vtanh.f32 %v672_v16 }
 0xf53   :  { %2583 = vpow2.f32 %v2469_v28 }
 0xf57   :  { %v2580_v17 = vpop.eup %2579 }
 0xf58   :  { %970 = vrot.lane.b32.xlu2 %v2580_v17, %s3044_s4  ;;  %v2582_v19 = vpop.eup %2581 }
 0xf59   :  { %v2584_v29 = vpop.eup %2583 }
 0xf5a   :  { %v676_v30 = vadd.f32 1.0, %v2584_v29 }
 0xf5c   :  { %2585 = vrcp.f32 %v676_v30  ;;  %v688_v38 = vand.u32 2147483648, %v676_v30  ;;  %v686_v39 = vand.u32 2147483647, %v676_v30 }
 0xf5e   :  { %v689_v43 = vor.u32 1.1754944e-38, %v688_v38  ;;  %vm687_vm15 = vcmp.eq.f32.partialorder %v686_v39, 8.507059e+37 }
 0xf60   :  { %698 = vrot.lane.b32.xlu2 %v2582_v19, %s3044_s4 }
 0xf62   :  { %v2586_v31 = vpop.eup %2585 }
 0xf63   :  { %v678_v10 = vmul.f32 %v2586_v31, %v676_v30  ;;  %vm683_vm5 = vweird.f32 %v2586_v31 }
 0xf65   :  { %v679_v34 = vsub.f32 1.0, %v678_v10 }
 0xf67   :  { %v680_v36 = vmul.f32 %v2586_v31, %v679_v34 }
 0xf69   :  { %v681_v6 = vadd.f32 %v2586_v31, %v680_v36 }
 0xfb2   :  { %v971_v2 = vpop.permute.xlu2 %970 }
 0xfb3   :  { %v973_v3 = vmul.f32 %v971_v2, %v951_v8 }
 0xfb5   :  { %v1130_v21 = vrot.slane %v973_v3, 2  ;;  %v1796_v9 = vrot.slane %v973_v3, 3  ;;  %v975_v22 = vrot.slane %v973_v3, 4 }
 0xfb7   :  { %976 = vrot.lane.b32.xlu0 %v975_v22, %s3045_s7  ;;  %v3390_v24 = vsel %vm311_vm6, %v1137_v23, %v1130_v21  ;;  %v3393_v25 = vsel %vm311_vm6, %v1802_v61, %v1796_v9  ;;  %vm682_vm6 = vweird.f32 %v676_v30 }
 0xfb8   :  { %vm684_vm14 = vmor %vm682_vm6, %vm683_vm5  ;;  %vm1288_vm5 = vcmask 1043459   ;;  %vm1290_vm6 = vcmask 1044484  }
 0xfb9   :  { %v685_v40 = vsel %vm684_vm14, %v2586_v31, %v681_v6  ;;  %vm1293_vm14 = vcmask 61440  }
 0xfba   :  { %v699_v41 = vpop.permute.xlu2 %698  ;;  %v690_v44 = vsel %vm687_vm15, %v689_v43, %v685_v40  ;;  %vm1409_vm15 = vcmask 64512  }
 0xfbb   :  { %v701_v46 = vmul.f32 %v699_v41, %v690_v44  ;;  %v696_v1 = vmul.f32 %v694_v0, %v690_v44 }
0x1029   :  { %v977_v27 = vpop.permute.xlu0 %976 }
0x102a   :  { %2478 = vmatmul.msk.f32.vlgmr.msrb.gmra.mxu2 %vm250_vm0, %v977_v27 }
0x10ad   :  { %v997_v32 = vpop.f32.mrf.mxu2 }
0x10ae   :  { %v1001_v33 = vrot.slane %v997_v32, 2 }
0x10b0   :  { %v1003_v35 = vadd.f32 %v1001_v33, %v3337_v45 }
0x10b2   :  { %2587 = vtanh.f32 %v1003_v35  ;;  %v2479_v45 = vmul.f32 -1.442695, %v1003_v35 }
0x10b4   :  { %2589 = vpow2.f32 %v2479_v45  ;;  %v3416_v45 = vld [vmem:[#allocation17 + $0x18] sm:$0xff] }
0x10b5   :  { %1158 = vmatpush.msrb.mxu0 %v3416_v45  ;;  %1447 = vmatpush.msra.mxu2 %v3416_v45 }
0x10b8   :  { %v2588_v37 = vpop.eup %2587 }
0x10b9   :  { %1029 = vrot.lane.b32.xlu1 %v2588_v37, %s3044_s4 }
0x10ba   :  { %v2590_v18 = vpop.eup %2589 }
0x10bb   :  { %v1007_v49 = vadd.f32 1.0, %v2590_v18  ;;  %v3418_v18 = vld [vmem:[#allocation17 + $0x10] sm:$0xff] }
0x10bc   :  { %1159 = vmatpush.msrb.mxu0 %v3418_v18  ;;  %1448 = vmatpush.msra.mxu2 %v3418_v18 }
0x10bd   :  { %2591 = vrcp.f32 %v1007_v49  ;;  %v1019_v55 = vand.u32 2147483648, %v1007_v49  ;;  %vm1013_vm2 = vweird.f32 %v1007_v49  ;;  %v1017_v56 = vand.u32 2147483647, %v1007_v49 }
0x10bf   :  { %v1020_v59 = vor.u32 1.1754944e-38, %v1019_v55  ;;  %vm1018_vm4 = vcmp.eq.f32.partialorder %v1017_v56, 8.507059e+37 }
0x10c1   :  { %703 = vrot.lane.b32.xlu1 %v701_v46, %s3045_s7 }
0x10c3   :  { %v2592_v50 = vpop.eup %2591 }
0x10c4   :  { %v1009_v51 = vmul.f32 %v2592_v50, %v1007_v49  ;;  %vm1014_vm1 = vweird.f32 %v2592_v50  ;;  %v3422_v49 = vld [vmem:[#allocation17 + $0x8] sm:$0xff] }
0x10c5   :  { %vm1015_vm3 = vmor %vm1013_vm2, %vm1014_vm1  ;;  %1160 = vmatpush.msrb.mxu0 %v3422_v49  ;;  %1449 = vmatpush.msra.mxu2 %v3422_v49 }
0x10c6   :  { %v1010_v52 = vsub.f32 1.0, %v1009_v51 }
0x10c8   :  { %v1011_v53 = vmul.f32 %v2592_v50, %v1010_v52 }
0x10ca   :  { %v1012_v54 = vadd.f32 %v2592_v50, %v1011_v53 }
0x10cc   :  { %v1016_v58 = vsel %vm1015_vm3, %v2592_v50, %v1012_v54  ;;  %v3426_v50 = vld [vmem:[#allocation17] sm:$0xff] }
0x10cd   :  { %v1021_v62 = vsel %vm1018_vm4, %v1020_v59, %v1016_v58  ;;  %1161 = vmatpush.msrb.mxu0 %v3426_v50  ;;  %1450 = vmatpush.msra.mxu2 %v3426_v50 }
0x10ce   :  { %v1027_v11 = vmul.f32 %v1025_v57, %v1021_v62  ;;  %v2523_v57 = vld [vmem:[#allocation18] ss:$0 sm:$0xff] }
0x112b   :  { %v1030_v60 = vpop.permute.xlu1 %1029 }
0x112c   :  { %v1032_v63 = vmul.f32 %v1030_v60, %v1021_v62 }
0x112e   :  { %1034 = vrot.lane.b32.xlu0 %v1032_v63, %s3045_s7 }
0x1133   :  { %v704_v4 = vpop.permute.xlu1 %703 }
0x1134   :  { %v706_v7 = vadd.f32 %v704_v4, %v696_v1 }
0x1136   :  { %2593 = vtanh.f32 %v706_v7 }
0x113c   :  { %v2594_v8 = vpop.eup %2593 }
0x113d   :  { %709 = vrot.lane.b32.xlu0 %v2594_v8, %s3044_s4 }
0x11a0   :  { %v1035_v12 = vpop.permute.xlu0 %1034 }
0x11a1   :  { %v1037_v13 = vadd.f32 %v1035_v12, %v1027_v11  ;;  %v1121_v12 = vlaneseq }
0x11a3   :  { %2595 = vtanh.f32 %v1037_v13  ;;  %v1092_v40 = vrot.slane %v1037_v13, 6  ;;  %v3444_v13 = vshrl.u32 %v1121_v12, 7 }
0x11a5   :  { %2515 = vset.pattern.permute.xlu2 %v3444_v13 }
0x11a9   :  { %v2596_v15 = vpop.eup %2595 }
0x11aa   :  { %1040 = vrot.lane.b32.xlu2 %v2596_v15, %s3044_s4 }
0x11af   :  { %v710_v16 = vpop.permute.xlu0 %709 }
0x11b0   :  { %v712_v17 = vmul.f32 %v710_v16, %v690_v44 }
0x11b2   :  { %v729_v19 = vrot.slane %v712_v17, 6 }
0x11b4   :  { %739 = vrot.lane.b32.xlu2 %v729_v19, %s3045_s7 }
0x1204   :  { %v1041_v26 = vpop.permute.xlu2 %1040 }
0x1205   :  { %v1043_v20 = vmul.f32 %v1041_v26, %v1021_v62 }
0x1207   :  { %v1132_v2 = vrot.slane %v1043_v20, 3  ;;  %v1798_v3 = vrot.slane %v1043_v20, 4  ;;  %v1045_v5 = vrot.slane %v1043_v20, 6 }
0x1209   :  { %1046 = vrot.lane.b32.xlu1 %v1045_v5, %s3045_s7  ;;  %v1139_v14 = vsel %vm313_vm7, %v3390_v24, %v1132_v2  ;;  %v1804_v21 = vsel %vm313_vm7, %v3393_v25, %v1798_v3 }
0x120e   :  { %v740_v9 = vpop.permute.xlu2 %739 }
0x120f   :  { %2471 = vmatmul.msk.f32.gmra.mxu1 %vm250_vm0, %v740_v9 }
0x127b   :  { %v1047_v22 = vpop.permute.xlu1 %1046 }
0x127c   :  { %2480 = vmatmul.msk.f32.vlgmr.msrb.gmra.mxu3 %vm250_vm0, %v1047_v22 }
0x128c   :  { %v765_v23 = vpop.f32.mrf.mxu1 }
0x128d   :  { %v766_v61 = vadd.f32 %v3334_v42, %v765_v23 }
0x12ff   :  { %v1067_v27 = vpop.f32.mrf.mxu3 }
0x1300   :  { %v1070_v28 = vadd.f32 %v1067_v27, %v766_v61 }
0x1302   :  { %2597 = vtanh.f32 %v1070_v28  ;;  %v2481_v30 = vmul.f32 -1.442695, %v1070_v28 }
0x1304   :  { %2599 = vpow2.f32 %v2481_v30 }
0x1308   :  { %v2598_v29 = vpop.eup %2597 }
0x1309   :  { %1096 = vrot.lane.b32.xlu0 %v2598_v29, %s3044_s4 }
0x130a   :  { %v2600_v24 = vpop.eup %2599 }
0x130b   :  { %v1074_v31 = vadd.f32 1.0, %v2600_v24 }
0x130d   :  { %2601 = vrcp.f32 %v1074_v31  ;;  %v1086_v35 = vand.u32 2147483648, %v1074_v31  ;;  %vm1080_vm9 = vweird.f32 %v1074_v31  ;;  %v1084_v42 = vand.u32 2147483647, %v1074_v31 }
0x130f   :  { %v1087_v6 = vor.u32 1.1754944e-38, %v1086_v35  ;;  %vm1085_vm12 = vcmp.eq.f32.partialorder %v1084_v42, 8.507059e+37 }
0x1313   :  { %v2602_v25 = vpop.eup %2601 }
0x1314   :  { %v1076_v10 = vmul.f32 %v2602_v25, %v1074_v31  ;;  %vm1081_vm7 = vweird.f32 %v2602_v25 }
0x1315   :  { %vm1082_vm11 = vmor %vm1080_vm9, %vm1081_vm7 }
0x1316   :  { %v1077_v32 = vsub.f32 1.0, %v1076_v10  ;;  %v1125_v10 = vstv %s1124_s9 }
0x1318   :  { %v1078_v33 = vmul.f32 %v2602_v25, %v1077_v32  ;;  %v3047_v32 = vmov -1e+18  }
0x131a   :  { %v1079_v34 = vadd.f32 %v2602_v25, %v1078_v33 }
0x131c   :  { %v1083_v36 = vsel %vm1082_vm11, %v2602_v25, %v1079_v34  ;;  %v3462_v25 = vand.u32 127, %v1121_v12 }
0x131d   :  { %v1088_v38 = vsel %vm1085_vm12, %v1087_v6, %v1083_v36 }
0x131e   :  { %v1094_v41 = vmul.f32 %v1092_v40, %v1088_v38 }
0x137b   :  { %v1097_v37 = vpop.permute.xlu0 %1096 }
0x137c   :  { %v1099_v39 = vmul.f32 %v1097_v37, %v1088_v38 }
0x137e   :  { %1101 = vrot.lane.b32.xlu1 %v1099_v39, %s3045_s7 }
0x13f0   :  { %v1102_v43 = vpop.permute.xlu1 %1101 }
0x13f1   :  { %v1104_v44 = vadd.f32 %v1102_v43, %v1094_v41  ;;  %v3048_v43 = vmov 0  }
0x13f2   :  { %2517 = vset.pattern.permute.xlu1 %v3048_v43  ;;  %2516 = vset.pattern.permute.xlu0 %v3048_v43 }
0x13f3   :  { %2603 = vtanh.f32 %v1104_v44 }
0x13f9   :  { %v2604_v46 = vpop.eup %2603 }
0x13fa   :  { %1107 = vrot.lane.b32.xlu2 %v2604_v46, %s3044_s4 }
0x1454   :  { %v1108_v51 = vpop.permute.xlu2 %1107 }
0x1455   :  { %v1110_v52 = vmul.f32 %v1108_v51, %v1088_v38 }
0x1457   :  { %v1135_v53 = vrot.slane %v1110_v52, 4  ;;  %v1800_v54 = vrot.slane %v1110_v52, 5 }
0x1459   :  { %v1140_v55 = vsel %vm315_vm8, %v1139_v14, %v1135_v53  ;;  %v3434_v56 = vsel %vm315_vm8, %v1804_v21, %v1800_v54  ;;  %vm1126_vm8 = vcmp.lt.s32.totalorder %v3462_v25, %v1125_v10 }
0x145a   :  { %1142 = vrot.lane.b32.xlu0 %v1140_v55, %s3045_s7  ;;  %v1127_v33 = vsel %vm1126_vm8, 0.0, %v3047_v32 }
0x14cc   :  { %v1143_v58 = vpop.permute.xlu0 %1142 }
0x14cd   :  { %2482 = vmatmul.msk.f32.vlgmr.msrb.gmra.mxu0 %vm250_vm0, %v1143_v58 }
0x154a   :  { %v1163_v59 = vpop.f32.mrf.mxu0 }
0x154b   :  { %v1171_v60 = vperm.slane %v1163_v59, 0  ;;  %v1168_v62 = vrot.slane %v1163_v59, 2  ;;  %v1167_v63 = vrot.slane %v1163_v59, 1  ;;  %v1169_v4 = vrot.slane %v1163_v59, 3 }
0x154c   :  { %v1170_v7 = vrot.slane %v1163_v59, 4 }
0x154d   :  { %1176 = vrot.lane.b32.xlu1 %v1171_v60, %s3045_s7  ;;  %v1173_v0 = vperm.slane %v1168_v62, 0  ;;  %v1172_v1 = vperm.slane %v1167_v63, 0  ;;  %v1174_v8 = vperm.slane %v1169_v4, 0 }
0x154e   :  { %v1175_v11 = vperm.slane %v1170_v7, 0 }
0x154f   :  { %1180 = vrot.lane.b32.xlu0 %v1173_v0, %s3045_s7  ;;  %1178 = vrot.lane.b32.xlu2 %v1172_v1, %s3045_s7 }
0x1555   :  { %1182 = vrot.lane.b32.xlu1 %v1174_v8, %s3045_s7 }
0x1557   :  { %1203 = vrot.lane.b32.xlu0 %v2523_v57, %s3045_s7  ;;  %1184 = vrot.lane.b32.xlu2 %v1175_v11, %s3045_s7 }
0x15a9   :  { %v1179_v15 = vpop.permute.xlu2 %1178 }
0x15aa   :  { %v1192_v16 = vadd.f32 %v1179_v15, %v3371_v47 }
0x15b1   :  { %v1185_v2 = vpop.permute.xlu2 %1184 }
0x15b2   :  { %v1195_v3 = vadd.f32 %v1185_v2, %v3371_v47 }
0x15bf   :  { %v1177_v17 = vpop.permute.xlu1 %1176 }
0x15c0   :  { %v1191_v19 = vadd.f32 %v1177_v17, %v3371_v47 }
0x15c1   :  { %v1181_v26 = vpop.permute.xlu0 %1180 }
0x15c2   :  { %2605 = vtanh.f32 %v1191_v19  ;;  %v1193_v20 = vadd.f32 %v1181_v26, %v3371_v47 }
0x15c3   :  { %2607 = vtanh.f32 %v1192_v16 }
0x15c4   :  { %2609 = vtanh.f32 %v1193_v20 }
0x15c7   :  { %v1183_v5 = vpop.permute.xlu1 %1182 }
0x15c8   :  { %v2606_v14 = vpop.eup %2605  ;;  %v1194_v21 = vadd.f32 %v1183_v5, %v3371_v47 }
0x15c9   :  { %v2608_v9 = vpop.eup %2607  ;;  %v3452_v22 = vpop.permute.xlu0 %1203 }
0x15ca   :  { %v2610_v23 = vpop.eup %2609  ;;  %2611 = vtanh.f32 %v1194_v21  ;;  %v1206_v61 = vmul.f32 %v2606_v14, %v3452_v22  ;;  %v1207_v27 = vmul.f32 %v2608_v9, %v3452_v22 }
0x15cb   :  { %2613 = vtanh.f32 %v1195_v3  ;;  %v1208_v28 = vmul.f32 %v2610_v23, %v3452_v22 }
0x15cc   :  { %1216 = vrot.lane.b32.xlu1 %v1206_v61, %s3046_s25  ;;  %1218 = vrot.lane.b32.xlu2 %v1207_v27, %s3046_s25 }
0x15cd   :  { %1220 = vrot.lane.b32.xlu0 %v1208_v28, %s3046_s25 }
0x15d0   :  { %v2612_v29 = vpop.eup %2611 }
0x15d1   :  { %v2614_v30 = vpop.eup %2613  ;;  %v1209_v24 = vmul.f32 %v2612_v29, %v3452_v22 }
0x15d2   :  { %v1210_v31 = vmul.f32 %v2614_v30, %v3452_v22 }
0x15d4   :  { %1222 = vrot.lane.b32.xlu1 %v1209_v24, %s3046_s25  ;;  %1224 = vrot.lane.b32.xlu2 %v1210_v31, %s3046_s25 }
0x15dc   :  { %1251 = vperm.xlu2 %2515, %v1127_v33  }
0x15e4   :  { %2518 = vset.pattern.permute.xlu2 %v3048_v43 }
0x1626   :  { %v1219_v34 = vpop.permute.xlu2 %1218 }
0x1627   :  { %v1234_v35 = vsel %vm250_vm0, %v1219_v34, 0.0 }
0x1628   :  { %1235 = vadd.xlane.f32.xlu1 %v1234_v35 }
0x162e   :  { %v1225_v42 = vpop.permute.xlu2 %1224 }
0x162f   :  { %v1243_v36 = vsel %vm250_vm0, %v1225_v42, 0.0 }
0x1630   :  { %1244 = vadd.xlane.f32.xlu1 %v1243_v36 }
0x1636   :  { %v3476_v44 = vpop.permute.xlu2 %1251 }
0x163e   :  { %v1217_v6 = vpop.permute.xlu1 %1216 }
0x163f   :  { %v1221_v37 = vpop.permute.xlu0 %1220  ;;  %v1231_v38 = vsel %vm250_vm0, %v1217_v6, 0.0 }
0x1640   :  { %1232 = vadd.xlane.f32.xlu0 %v1231_v38  ;;  %v1237_v39 = vsel %vm250_vm0, %v1221_v37, 0.0 }
0x1641   :  { %1238 = vadd.xlane.f32.xlu2 %v1237_v39 }
0x1646   :  { %v1223_v40 = vpop.permute.xlu1 %1222 }
0x1647   :  { %v1240_v41 = vsel %vm250_vm0, %v1223_v40, 0.0 }
0x1648   :  { %1241 = vadd.xlane.f32.xlu0 %v1240_v41 }
0x169b   :  { %v1236_v46 = vpop.xlane.xlu1 %1235 }
0x169c   :  { %v1255_v51 = vadd.f32 %v3476_v44, %v1236_v46 }
0x169e   :  { %1268 = vperm.xlu1 %2517, %v1255_v51  }
0x16a3   :  { %v1245_v52 = vpop.xlane.xlu1 %1244 }
0x16a4   :  { %v1258_v53 = vadd.f32 %v3476_v44, %v1245_v52 }
0x16a6   :  { %1277 = vperm.xlu1 %2517, %v1258_v53  }
0x16b3   :  { %v1233_v54 = vpop.xlane.xlu0 %1232 }
0x16b4   :  { %v1254_v55 = vadd.f32 %v3476_v44, %v1233_v54  ;;  %v1239_v58 = vpop.xlane.xlu2 %1238 }
0x16b5   :  { %v1256_v59 = vadd.f32 %v3476_v44, %v1239_v58 }
0x16b6   :  { %1265 = vperm.xlu0 %2516, %v1254_v55  }
0x16b7   :  { %1271 = vperm.xlu2 %2518, %v1256_v59  }
0x16bb   :  { %v1242_v60 = vpop.xlane.xlu0 %1241 }
0x16bc   :  { %v1257_v62 = vadd.f32 %v3476_v44, %v1242_v60 }
0x16bf   :  { %1274 = vperm.xlu2 %2518, %v1257_v62  }
0x1710   :  { %v1269_v0 = vpop.permute.xlu1 %1268 }
0x1711   :  { %v1272_v63 = vpop.permute.xlu2 %1271  ;;  %v1280_v7 = vperm.slane %v1269_v0, %v3462_v25 }
0x1712   :  { %v1281_v11 = vperm.slane %v1272_v63, %v3462_v25 }
0x1718   :  { %v1278_v8 = vpop.permute.xlu1 %1277 }
0x1719   :  { %v1275_v1 = vpop.permute.xlu2 %1274  ;;  %v1283_v16 = vperm.slane %v1278_v8, %v3462_v25 }
0x171a   :  { %v1282_v12 = vperm.slane %v1275_v1, %v3462_v25 }
0x1728   :  { %v1266_v4 = vpop.permute.xlu0 %1265 }
0x1729   :  { %v1279_v57 = vperm.slane %v1266_v4, %v3462_v25 }
0x172b   :  { %v1285_v15 = vsel %vm1284_vm13, %v1280_v7, %v1279_v57 }
0x172c   :  { %v1287_v17 = vsel %vm1286_vm10, %v1281_v11, %v1285_v15 }
0x172d   :  { %v1289_v19 = vsel %vm1288_vm5, %v1282_v12, %v1287_v17 }
0x172e   :  { %v1291_v26 = vsel %vm1290_vm6, %v1283_v16, %v1289_v19 }
0x172f   :  { %v1294_v20 = vsel %vm1293_vm14, %v1291_v26, -inf }
0x1730   :  { %1295 = vmax.xlane.f32.xlu2 %v1294_v20 }
0x17a3   :  { %v1296_v2 = vpop.xlane.xlu2 %1295 }
0x17a4   :  { %v1298_v3 = vperm.slane %v1296_v2, 0  ;;  %v1299_v5 = vperm.slane %v1296_v2, 1  ;;  %v1300_v14 = vperm.slane %v1296_v2, 2  ;;  %v1301_v23 = vperm.slane %v1296_v2, 3 }
0x17a5   :  { %v1302_v30 = vperm.slane %v1296_v2, 4 }
0x17a6   :  { %v1308_v21 = vsub.f32 %v1254_v55, %v1298_v3  ;;  %v1309_v9 = vsub.f32 %v1255_v51, %v1299_v5  ;;  %v1310_v28 = vsub.f32 %v1256_v59, %v1300_v14  ;;  %v1311_v29 = vsub.f32 %v1257_v62, %v1301_v23 }
0x17a7   :  { %v1312_v34 = vsub.f32 %v1258_v53, %v1302_v30 }
0x17a8   :  { %v1313_v61 = vmul.f32 1.442695, %v1308_v21  ;;  %v1315_v27 = vmul.f32 1.442695, %v1309_v9  ;;  %v1317_v24 = vmul.f32 1.442695, %v1310_v28 }
0x17a9   :  { %v1319_v31 = vmul.f32 1.442695, %v1311_v29  ;;  %v1321_v35 = vmul.f32 1.442695, %v1312_v34 }
0x17aa   :  { %2615 = vpow2.f32 %v1313_v61 }
0x17ab   :  { %2617 = vpow2.f32 %v1315_v27 }
0x17ac   :  { %2619 = vpow2.f32 %v1317_v24 }
0x17ad   :  { %2621 = vpow2.f32 %v1319_v31 }
0x17ae   :  { %2623 = vpow2.f32 %v1321_v35 }
0x17b0   :  { %v2616_v10 = vpop.eup %2615 }
0x17b1   :  { %v2618_v33 = vpop.eup %2617  ;;  %1329 = vperm.xlu1 %2517, %v2616_v10  }
0x17b2   :  { %1332 = vperm.xlu0 %2516, %v2618_v33   ;;  %v2620_v42 = vpop.eup %2619 }
0x17b3   :  { %v2622_v36 = vpop.eup %2621 }
0x17b4   :  { %v2624_v6 = vpop.eup %2623 }
0x17b9   :  { %1335 = vperm.xlu1 %2517, %v2620_v42  }
0x17ba   :  { %1338 = vperm.xlu0 %2516, %v2622_v36  }
0x17c1   :  { %1341 = vperm.xlu1 %2517, %v2624_v6  }
0x1823   :  { %v1330_v37 = vpop.permute.xlu1 %1329 }
0x1824   :  { %v1333_v38 = vpop.permute.xlu0 %1332  ;;  %v1343_v41 = vperm.slane %v1330_v37, %v3462_v25  ;;  %v1790_v37 = vstv %s2487_s26 }
0x1825   :  { %v1344_v40 = vperm.slane %v1333_v38, %v3462_v25  ;;  %vm1791_vm1 = vcmp.lt.s32.totalorder %v3462_v25, %v1790_v37 }
0x1826   :  { %v1792_v38 = vsel %vm1791_vm1, 0.0, %v3047_v32 }
0x1827   :  { %v1348_v52 = vsel %vm1284_vm13, %v1344_v40, %v1343_v41 }
0x182b   :  { %v1336_v39 = vpop.permute.xlu1 %1335 }
0x182c   :  { %v1339_v46 = vpop.permute.xlu0 %1338  ;;  %v1345_v51 = vperm.slane %v1336_v39, %v3462_v25 }
0x182d   :  { %v1346_v53 = vperm.slane %v1339_v46, %v3462_v25 }
0x182e   :  { %v1349_v54 = vsel %vm1286_vm10, %v1345_v51, %v1348_v52 }
0x182f   :  { %v1350_v59 = vsel %vm1288_vm5, %v1346_v53, %v1349_v54 }
0x1833   :  { %v1342_v55 = vpop.permute.xlu1 %1341 }
0x1834   :  { %v1347_v58 = vperm.slane %v1342_v55, %v3462_v25 }
0x1836   :  { %v1351_v60 = vsel %vm1290_vm6, %v1347_v58, %v1350_v59 }
0x1837   :  { %v1353_v62 = vsel %vm1293_vm14, %v1351_v60, 0.0 }
0x1838   :  { %1354 = vadd.xlane.f32.xlu0 %v1353_v62 }
0x18ab   :  { %v1355_v63 = vpop.xlane.xlu0 %1354 }
0x18ac   :  { %2625 = vrcp.f32 %v1355_v63 }
0x18b2   :  { %v2626_v0 = vpop.eup %2625 }
0x18b3   :  { %v1357_v1 = vmul.f32 %v2626_v0, %v1355_v63 }
0x18b5   :  { %v1358_v4 = vsub.f32 2.0, %v1357_v1 }
0x18b7   :  { %v1359_v7 = vmul.f32 %v2626_v0, %v1358_v4 }
0x18b9   :  { %v1363_v8 = vperm.slane %v1359_v7, 2  ;;  %v1361_v57 = vperm.slane %v1359_v7, 0  ;;  %v1362_v15 = vperm.slane %v1359_v7, 1  ;;  %v1364_v17 = vperm.slane %v1359_v7, 3 }
0x18ba   :  { %v1365_v26 = vperm.slane %v1359_v7, 4 }
0x18bb   :  { %v1373_v11 = vmul.f32 %v2620_v42, %v1363_v8  ;;  %v1371_v12 = vmul.f32 %v2616_v10, %v1361_v57  ;;  %v1372_v16 = vmul.f32 %v2618_v33, %v1362_v15  ;;  %v1374_v19 = vmul.f32 %v2622_v36, %v1364_v17 }
0x18bc   :  { %v1375_v20 = vmul.f32 %v2624_v6, %v1365_v26 }
0x18bd   :  { %1388 = vperm.xlu2 %2518, %v1373_v11   ;;  %1382 = vperm.xlu1 %2517, %v1371_v12  }
0x18c5   :  { %1807 = vrot.lane.b32.xlu2 %v3434_v56, %s3045_s7  ;;  %1385 = vperm.xlu1 %2517, %v1372_v16  }
0x18c6   :  { %2519 = vset.pattern.permute.xlu2 %v3444_v13 }
0x18cd   :  { %1391 = vperm.xlu1 %2517, %v1374_v19  }
0x18d5   :  { %1394 = vperm.xlu1 %2517, %v1375_v20  }
0x18dd   :  { %1406 = vrot.lane.b32.xlu1 %v3371_v47, %s3046_s25 }
0x1917   :  { %v1389_v9 = vpop.permute.xlu2 %1388 }
0x1918   :  { %v1398_v61 = vperm.slane %v1389_v9, %v3462_v25 }
0x191f   :  { %v1808_v31 = vpop.permute.xlu2 %1807 }
0x192f   :  { %v1383_v2 = vpop.permute.xlu1 %1382 }
0x1930   :  { %v1396_v56 = vperm.slane %v1383_v2, %v3462_v25 }
0x1937   :  { %v1386_v3 = vpop.permute.xlu1 %1385 }
0x1938   :  { %v1397_v14 = vperm.slane %v1386_v3, %v3462_v25 }
0x193a   :  { %v1401_v13 = vsel %vm1284_vm13, %v1397_v14, %v1396_v56 }
0x193b   :  { %v1402_v28 = vsel %vm1286_vm10, %v1398_v61, %v1401_v13 }
0x193f   :  { %v1392_v5 = vpop.permute.xlu1 %1391 }
0x1940   :  { %v1399_v23 = vperm.slane %v1392_v5, %v3462_v25 }
0x1942   :  { %v1403_v29 = vsel %vm1288_vm5, %v1399_v23, %v1402_v28 }
0x1947   :  { %v1395_v21 = vpop.permute.xlu1 %1394 }
0x1948   :  { %v1400_v27 = vperm.slane %v1395_v21, %v3462_v25 }
0x194a   :  { %v1404_v24 = vsel %vm1290_vm6, %v1400_v27, %v1403_v29 }
0x194f   :  { %v1407_v30 = vpop.permute.xlu1 %1406 }
0x1950   :  { %1427 = vmatpush.msrb.mxu1 %v1407_v30  ;;  %1693 = vmatpush.msra.mxu3 %v1407_v30 }
0x1951   :  { %2483 = vmatmul.msk.f32.vlgmr.msrb.gmra.mxu1 %vm1409_vm15, %v1404_v24 }
0x1952   :  { %2101 = vmatpush.msrb.mxu3 %v3416_v45  ;;  %1823 = vmatpush.msra.mxu1 %v3416_v45 }
0x1954   :  { %2102 = vmatpush.msrb.mxu3 %v3418_v18  ;;  %1824 = vmatpush.msra.mxu1 %v3418_v18 }
0x1956   :  { %2103 = vmatpush.msrb.mxu3 %v3422_v49  ;;  %1825 = vmatpush.msra.mxu1 %v3422_v49 }
0x1958   :  { %2104 = vmatpush.msrb.mxu3 %v3426_v50  ;;  %1826 = vmatpush.msra.mxu1 %v3426_v50 }
0x1959   :  { %2488 = vmatmul.msk.f32.vlgmr.msra.gmra.mxu1 %vm250_vm0, %v1808_v31 }
0x19ce   :  { %v1429_v10 = vpop.f32.mrf.mxu1 }
0x19cf   :  { %2484 = vmatmul.msk.f32.vlgmr.msra.gmra.mxu2 %vm250_vm0, %v1429_v10 }
0x19d6   :  { %v1828_v33 = vpop.f32.mrf.mxu1 }
0x19d7   :  { %v1836_v45 = vperm.slane %v1828_v33, 0  ;;  %v1833_v34 = vrot.slane %v1828_v33, 2  ;;  %v1832_v35 = vrot.slane %v1828_v33, 1  ;;  %v1834_v49 = vrot.slane %v1828_v33, 3 }
0x19d8   :  { %v1835_v36 = vrot.slane %v1828_v33, 4 }
0x19d9   :  { %1841 = vrot.lane.b32.xlu1 %v1836_v45, %s3045_s7  ;;  %v1838_v18 = vperm.slane %v1833_v34, 0  ;;  %v1837_v42 = vperm.slane %v1832_v35, 0  ;;  %v1839_v50 = vperm.slane %v1834_v49, 0 }
0x19da   :  { %v1840_v6 = vperm.slane %v1835_v36, 0 }
0x19db   :  { %1845 = vrot.lane.b32.xlu2 %v1838_v18, %s3045_s7  ;;  %1843 = vrot.lane.b32.xlu0 %v1837_v42, %s3045_s7 }
0x19e1   :  { %1847 = vrot.lane.b32.xlu1 %v1839_v50, %s3045_s7 }
0x19e3   :  { %1849 = vrot.lane.b32.xlu2 %v1840_v6, %s3045_s7 }
0x19eb   :  { %1911 = vperm.xlu2 %2519, %v1792_v38  }
0x19f3   :  { %2520 = vset.pattern.permute.xlu2 %v3048_v43 }
0x1a35   :  { %v1846_v39 = vpop.permute.xlu2 %1845 }
0x1a36   :  { %v1858_v40 = vadd.f32 %v1846_v39, %v3373_v48 }
0x1a38   :  { %2627 = vtanh.f32 %v1858_v40 }
0x1a3d   :  { %v1850_v55 = vpop.permute.xlu2 %1849 }
0x1a3e   :  { %v2628_v41 = vpop.eup %2627  ;;  %v1860_v32 = vadd.f32 %v1850_v55, %v3373_v48 }
0x1a3f   :  { %v1868_v46 = vmul.f32 %v2628_v41, %v3452_v22 }
0x1a41   :  { %1880 = vrot.lane.b32.xlu2 %v1868_v46, %s3046_s25 }
0x1a45   :  { %v3556_v2 = vpop.permute.xlu2 %1911 }
0x1a4b   :  { %v1842_v51 = vpop.permute.xlu1 %1841 }
0x1a4c   :  { %v1856_v53 = vadd.f32 %v1842_v51, %v3373_v48 }
0x1a4d   :  { %v1844_v52 = vpop.permute.xlu0 %1843 }
0x1a4e   :  { %v1857_v54 = vadd.f32 %v1844_v52, %v3373_v48 }
0x1a50   :  { %2629 = vtanh.f32 %v1857_v54 }
0x1a51   :  { %2631 = vtanh.f32 %v1856_v53 }
0x1a52   :  { %v1452_v43 = vpop.f32.mrf.mxu2  ;;  %2633 = vtanh.f32 %v1860_v32 }
0x1a53   :  { %v1848_v58 = vpop.permute.xlu1 %1847  ;;  %v1460_v59 = vperm.slane %v1452_v43, 0  ;;  %v1457_v60 = vrot.slane %v1452_v43, 2  ;;  %v1458_v7 = vrot.slane %v1452_v43, 3  ;;  %v1456_v17 = vrot.slane %v1452_v43, 1 }
0x1a54   :  { %v1859_v0 = vadd.f32 %v1848_v58, %v3373_v48  ;;  %v1459_v26 = vrot.slane %v1452_v43, 4 }
0x1a55   :  { %1465 = vrot.lane.b32.xlu1 %v1460_v59, %s3045_s7  ;;  %v1462_v62 = vperm.slane %v1457_v60, 0  ;;  %v1463_v11 = vperm.slane %v1458_v7, 0  ;;  %v1461_v19 = vperm.slane %v1456_v17, 0 }
0x1a56   :  { %v2630_v63 = vpop.eup %2629  ;;  %2635 = vtanh.f32 %v1859_v0  ;;  %v1464_v20 = vperm.slane %v1459_v26, 0 }
0x1a57   :  { %1469 = vrot.lane.b32.xlu2 %v1462_v62, %s3045_s7  ;;  %v1867_v1 = vmul.f32 %v2630_v63, %v3452_v22  ;;  %v2632_v4 = vpop.eup %2631 }
0x1a58   :  { %v1866_v8 = vmul.f32 %v2632_v4, %v3452_v22  ;;  %v2634_v57 = vpop.eup %2633 }
0x1a59   :  { %1878 = vrot.lane.b32.xlu0 %v1867_v1, %s3046_s25  ;;  %v1870_v12 = vmul.f32 %v2634_v57, %v3452_v22 }
0x1a5c   :  { %v2636_v15 = vpop.eup %2635 }
0x1a5d   :  { %1876 = vrot.lane.b32.xlu1 %v1866_v8, %s3046_s25  ;;  %v1869_v16 = vmul.f32 %v2636_v15, %v3452_v22 }
0x1a5f   :  { %1471 = vrot.lane.b32.xlu2 %v1463_v11, %s3045_s7 }
0x1a61   :  { %1884 = vrot.lane.b32.xlu0 %v1870_v12, %s3046_s25 }
0x1a65   :  { %1882 = vrot.lane.b32.xlu1 %v1869_v16, %s3046_s25 }
0x1a69   :  { %1467 = vrot.lane.b32.xlu0 %v1461_v19, %s3045_s7 }
0x1a71   :  { %1473 = vrot.lane.b32.xlu0 %v1464_v20, %s3045_s7 }
0x1a9b   :  { %v1881_v3 = vpop.permute.xlu2 %1880 }
0x1a9c   :  { %v1897_v5 = vsel %vm250_vm0, %v1881_v3, 0.0 }
0x1a9d   :  { %1898 = vadd.xlane.f32.xlu0 %v1897_v5 }
0x1ab1   :  { %v1470_v30 = vpop.permute.xlu2 %1469 }
0x1ab2   :  { %v1482_v6 = vadd.f32 %v1470_v30, %v3371_v47 }
0x1ab9   :  { %v1472_v33 = vpop.permute.xlu2 %1471 }
0x1aba   :  { %v1483_v34 = vadd.f32 %v1472_v33, %v3371_v47 }
0x1ac7   :  { %v1466_v14 = vpop.permute.xlu1 %1465 }
0x1ac8   :  { %v1480_v31 = vadd.f32 %v1466_v14, %v3371_v47 }
0x1aca   :  { %2637 = vtanh.f32 %v1480_v31 }
0x1acb   :  { %v1879_v21 = vpop.permute.xlu0 %1878  ;;  %2639 = vtanh.f32 %v1483_v34 }
0x1acc   :  { %v1894_v9 = vsel %vm250_vm0, %v1879_v21, 0.0  ;;  %2641 = vtanh.f32 %v1482_v6 }
0x1acd   :  { %1895 = vadd.xlane.f32.xlu1 %v1894_v9 }
0x1acf   :  { %v1877_v56 = vpop.permute.xlu1 %1876 }
0x1ad0   :  { %v1891_v13 = vsel %vm250_vm0, %v1877_v56, 0.0  ;;  %v2638_v35 = vpop.eup %2637 }
0x1ad1   :  { %1892 = vadd.xlane.f32.xlu2 %v1891_v13  ;;  %v1490_v18 = vmul.f32 %v2638_v35, %v3452_v22  ;;  %v2640_v42 = vpop.eup %2639 }
0x1ad2   :  { %v1493_v49 = vmul.f32 %v2640_v42, %v3452_v22  ;;  %v2642_v52 = vpop.eup %2641 }
0x1ad3   :  { %v1885_v23 = vpop.permute.xlu0 %1884  ;;  %v1492_v54 = vmul.f32 %v2642_v52, %v3452_v22 }
0x1ad4   :  { %v1903_v61 = vsel %vm250_vm0, %v1885_v23, 0.0 }
0x1ad5   :  { %1904 = vadd.xlane.f32.xlu0 %v1903_v61 }
0x1ad7   :  { %v1883_v27 = vpop.permute.xlu1 %1882 }
0x1ad8   :  { %v1900_v28 = vsel %vm250_vm0, %v1883_v27, 0.0 }
0x1ad9   :  { %1901 = vadd.xlane.f32.xlu1 %v1900_v28 }
0x1adb   :  { %v1468_v29 = vpop.permute.xlu0 %1467 }
0x1adc   :  { %v1481_v39 = vadd.f32 %v1468_v29, %v3371_v47 }
0x1ade   :  { %2643 = vtanh.f32 %v1481_v39 }
0x1ae3   :  { %v1474_v24 = vpop.permute.xlu0 %1473 }
0x1ae4   :  { %v1484_v53 = vadd.f32 %v1474_v24, %v3371_v47  ;;  %v2644_v55 = vpop.eup %2643 }
0x1ae5   :  { %v1491_v32 = vmul.f32 %v2644_v55, %v3452_v22 }
0x1ae6   :  { %2645 = vtanh.f32 %v1484_v53 }
0x1aec   :  { %v2646_v43 = vpop.eup %2645 }
0x1aed   :  { %v1494_v58 = vmul.f32 %v2646_v43, %v3452_v22 }
0x1b10   :  { %v1899_v10 = vpop.xlane.xlu0 %1898 }
0x1b11   :  { %v3565_v45 = vadd.f32 %v3556_v2, %v1899_v10 }
0x1b13   :  { %1931 = vperm.xlu0 %2516, %v3565_v45  }
0x1b1b   :  { %1500 = vrot.lane.b32.xlu0 %v1490_v18, %s3046_s25 }
0x1b23   :  { %1506 = vrot.lane.b32.xlu0 %v1493_v49, %s3046_s25 }
0x1b40   :  { %v1896_v36 = vpop.xlane.xlu1 %1895 }
0x1b41   :  { %v3574_v50 = vadd.f32 %v3556_v2, %v1896_v36 }
0x1b43   :  { %1928 = vperm.xlu2 %2520, %v3574_v50  }
0x1b44   :  { %v1893_v37 = vpop.xlane.xlu2 %1892 }
0x1b45   :  { %v1914_v38 = vadd.f32 %v3556_v2, %v1893_v37 }
0x1b47   :  { %1925 = vperm.xlu1 %2517, %v1914_v38  }
0x1b48   :  { %v1905_v40 = vpop.xlane.xlu0 %1904 }
0x1b49   :  { %v1918_v41 = vadd.f32 %v3556_v2, %v1905_v40 }
0x1b4b   :  { %1937 = vperm.xlu2 %2520, %v1918_v41  }
0x1b4c   :  { %v1902_v46 = vpop.xlane.xlu1 %1901 }
0x1b4d   :  { %v1917_v51 = vadd.f32 %v3556_v2, %v1902_v46 }
0x1b4f   :  { %1934 = vperm.xlu1 %2517, %v1917_v51  }
0x1b53   :  { %1504 = vrot.lane.b32.xlu2 %v1492_v54, %s3046_s25 }
0x1b57   :  { %1502 = vrot.lane.b32.xlu1 %v1491_v32, %s3046_s25 }
0x1b5f   :  { %1508 = vrot.lane.b32.xlu1 %v1494_v58, %s3046_s25 }
0x1b85   :  { %v1932_v59 = vpop.permute.xlu0 %1931 }
0x1b86   :  { %v1941_v12 = vperm.slane %v1932_v59, %v3462_v25 }
0x1b8d   :  { %v1501_v60 = vpop.permute.xlu0 %1500 }
0x1b8e   :  { %v1515_v62 = vsel %vm250_vm0, %v1501_v60, 0.0 }
0x1b8f   :  { %1516 = vadd.xlane.f32.xlu0 %v1515_v62 }
0x1b95   :  { %v1507_v63 = vpop.permute.xlu0 %1506 }
0x1b96   :  { %v1524_v0 = vsel %vm250_vm0, %v1507_v63, 0.0 }
0x1b97   :  { %1525 = vadd.xlane.f32.xlu0 %v1524_v0 }
0x1b9d   :  { %v1929_v1 = vpop.permute.xlu2 %1928 }
0x1b9e   :  { %v1940_v8 = vperm.slane %v1929_v1, %v3462_v25 }
0x1ba5   :  { %v1938_v57 = vpop.permute.xlu2 %1937 }
0x1ba6   :  { %v1943_v17 = vperm.slane %v1938_v57, %v3462_v25 }
0x1bad   :  { %v1505_v21 = vpop.permute.xlu2 %1504 }
0x1bae   :  { %v1521_v9 = vsel %vm250_vm0, %v1505_v21, 0.0 }
0x1bb9   :  { %v1926_v4 = vpop.permute.xlu1 %1925 }
0x1bba   :  { %v1939_v7 = vperm.slane %v1926_v4, %v3462_v25 }
0x1bbc   :  { %v1944_v11 = vsel %vm1284_vm13, %v1940_v8, %v1939_v7 }
0x1bbd   :  { %v1945_v19 = vsel %vm1286_vm10, %v1941_v12, %v1944_v11 }
0x1bc1   :  { %v1935_v15 = vpop.permute.xlu1 %1934 }
0x1bc2   :  { %v1942_v16 = vperm.slane %v1935_v15, %v3462_v25 }
0x1bc4   :  { %v1946_v26 = vsel %vm1288_vm5, %v1942_v16, %v1945_v19 }
0x1bc5   :  { %v1947_v20 = vsel %vm1290_vm6, %v1943_v17, %v1946_v26 }
0x1bc6   :  { %v1949_v3 = vsel %vm1293_vm14, %v1947_v20, -inf }
0x1bc7   :  { %1950 = vmax.xlane.f32.xlu2 %v1949_v3 }
0x1bc9   :  { %v1503_v5 = vpop.permute.xlu1 %1502 }
0x1bca   :  { %v1518_v14 = vsel %vm250_vm0, %v1503_v5, 0.0 }
0x1bcb   :  { %1519 = vadd.xlane.f32.xlu1 %v1518_v14 }
0x1bcf   :  { %1522 = vadd.xlane.f32.xlu2 %v1521_v9 }
0x1bd1   :  { %v1509_v56 = vpop.permute.xlu1 %1508 }
0x1bd2   :  { %v1527_v13 = vsel %vm250_vm0, %v1509_v56, 0.0 }
0x1bd3   :  { %1528 = vadd.xlane.f32.xlu1 %v1527_v13 }
0x1c3a   :  { %v1951_v23 = vpop.xlane.xlu2 %1950 }
0x1c3b   :  { %v1953_v61 = vperm.slane %v1951_v23, 0  ;;  %v1954_v27 = vperm.slane %v1951_v23, 1  ;;  %v1955_v28 = vperm.slane %v1951_v23, 2  ;;  %v1957_v29 = vperm.slane %v1951_v23, 4 }
0x1c3c   :  { %v1956_v10 = vperm.slane %v1951_v23, 3 }
0x1c3d   :  { %v1963_v30 = vsub.f32 %v1914_v38, %v1953_v61  ;;  %v1964_v24 = vsub.f32 %v3574_v50, %v1954_v27  ;;  %v1965_v31 = vsub.f32 %v3565_v45, %v1955_v28  ;;  %v1967_v18 = vsub.f32 %v1918_v41, %v1957_v29  ;;  %v1517_v45 = vpop.xlane.xlu0 %1516  ;;  %v1118_v27 = vld [vmem:[#allocation20 + $0x18] sm:$0xff]  ;;  %v1117_v28 = vld [vmem:[#allocation20 + $0x10] sm:$0xff]  ;;  %v1116_v29 = vld [vmem:[#allocation20 + $0x8] sm:$0xff] }
0x1c3e   :  { %v1966_v42 = vsub.f32 %v1917_v51, %v1956_v10  ;;  %v3620_v40 = vadd.f32 %v1517_v45, %v3476_v44  ;;  %v1520_v41 = vpop.xlane.xlu1 %1519  ;;  %1713 = vmatpush.msra.mxu0 %v1118_v27  ;;  %2367 = vmatpush.msrb.mxu1 %v1118_v27 }
0x1c3f   :  { %v1968_v33 = vmul.f32 1.442695, %v1963_v30  ;;  %v1970_v34 = vmul.f32 1.442695, %v1964_v24  ;;  %v1972_v35 = vmul.f32 1.442695, %v1965_v31  ;;  %v3629_v53 = vadd.f32 %v1520_v41, %v3476_v44 }
0x1c40   :  { %v1976_v49 = vmul.f32 1.442695, %v1967_v18  ;;  %v1974_v36 = vmul.f32 1.442695, %v1966_v42  ;;  %1714 = vmatpush.msra.mxu0 %v1117_v28  ;;  %2368 = vmatpush.msrb.mxu1 %v1117_v28  ;;  %v1115_v30 = vld [vmem:[#allocation20] sm:$0xff] }
0x1c41   :  { %2647 = vpow2.f32 %v1968_v33 }
0x1c42   :  { %2649 = vpow2.f32 %v1970_v34  ;;  %v1523_v46 = vpop.xlane.xlu2 %1522  ;;  %1715 = vmatpush.msra.mxu0 %v1116_v29  ;;  %2369 = vmatpush.msrb.mxu1 %v1116_v29 }
0x1c43   :  { %2651 = vpow2.f32 %v1972_v35  ;;  %v3626_v52 = vadd.f32 %v1523_v46, %v3476_v44 }
0x1c44   :  { %2653 = vpow2.f32 %v1976_v49  ;;  %1716 = vmatpush.msra.mxu0 %v1115_v30  ;;  %2370 = vmatpush.msrb.mxu1 %v1115_v30 }
0x1c45   :  { %2655 = vpow2.f32 %v1974_v36  ;;  %v1526_v51 = vpop.xlane.xlu0 %1525 }
0x1c46   :  { %v3632_v54 = vadd.f32 %v1526_v51, %v3476_v44  ;;  %v1529_v55 = vpop.xlane.xlu1 %1528 }
0x1c47   :  { %v3606_v6 = vpop.eup %2647  ;;  %v1534_v32 = vadd.f32 %v1529_v55, %v3476_v44 }
0x1c48   :  { %v3608_v37 = vpop.eup %2649  ;;  %1984 = vperm.xlu2 %2520, %v3606_v6  }
0x1c49   :  { %v3611_v50 = vpop.eup %2651  ;;  %1987 = vperm.xlu0 %2516, %v3608_v37  }
0x1c4a   :  { %1990 = vperm.xlu1 %2517, %v3611_v50   ;;  %v3615_v38 = vpop.eup %2653 }
0x1c4b   :  { %v3617_v39 = vpop.eup %2655 }
0x1c50   :  { %1996 = vperm.xlu2 %2520, %v3615_v38  }
0x1c51   :  { %1993 = vperm.xlu0 %2516, %v3617_v39  }
0x1c52   :  { %1541 = vperm.xlu1 %2517, %v3620_v40  }
0x1c58   :  { %1547 = vperm.xlu2 %2520, %v3626_v52  }
0x1c59   :  { %1544 = vperm.xlu0 %2516, %v3629_v53  }
0x1c5a   :  { %1550 = vperm.xlu1 %2517, %v3632_v54  }
0x1c61   :  { %1553 = vperm.xlu0 %2516, %v1534_v32  }
0x1ca2   :  { %v1985_v43 = vpop.permute.xlu2 %1984 }
0x1ca3   :  { %v1998_v62 = vperm.slane %v1985_v43, %v3462_v25 }
0x1caa   :  { %v1997_v0 = vpop.permute.xlu2 %1996 }
0x1cab   :  { %v2002_v8 = vperm.slane %v1997_v0, %v3462_v25 }
0x1cb2   :  { %v1548_v19 = vpop.permute.xlu2 %1547 }
0x1cb3   :  { %v1557_v3 = vperm.slane %v1548_v19, %v3462_v25 }
0x1cbb   :  { %v1988_v58 = vpop.permute.xlu0 %1987 }
0x1cbc   :  { %v1991_v59 = vpop.permute.xlu1 %1990  ;;  %v1999_v60 = vperm.slane %v1988_v58, %v3462_v25 }
0x1cbd   :  { %v2000_v63 = vperm.slane %v1991_v59, %v3462_v25 }
0x1cbe   :  { %v2003_v1 = vsel %vm1284_vm13, %v1999_v60, %v1998_v62 }
0x1cbf   :  { %v2004_v44 = vsel %vm1286_vm10, %v2000_v63, %v2003_v1 }
0x1cc3   :  { %v1994_v4 = vpop.permute.xlu0 %1993 }
0x1cc4   :  { %v2001_v7 = vperm.slane %v1994_v4, %v3462_v25  ;;  %v1542_v57 = vpop.permute.xlu1 %1541 }
0x1cc5   :  { %v1555_v26 = vperm.slane %v1542_v57, %v3462_v25 }
0x1cc6   :  { %v2005_v11 = vsel %vm1288_vm5, %v2001_v7, %v2004_v44 }
0x1cc7   :  { %v2006_v12 = vsel %vm1290_vm6, %v2002_v8, %v2005_v11 }
0x1cc8   :  { %v2008_v15 = vsel %vm1293_vm14, %v2006_v12, 0.0 }
0x1cc9   :  { %2009 = vadd.xlane.f32.xlu2 %v2008_v15 }
0x1ccb   :  { %v1545_v16 = vpop.permute.xlu0 %1544 }
0x1ccc   :  { %v1556_v17 = vperm.slane %v1545_v16, %v3462_v25  ;;  %v1551_v5 = vpop.permute.xlu1 %1550 }
0x1ccd   :  { %v1558_v21 = vperm.slane %v1551_v5, %v3462_v25 }
0x1cce   :  { %v1560_v20 = vsel %vm1284_vm13, %v1556_v17, %v1555_v26 }
0x1ccf   :  { %v1561_v14 = vsel %vm1286_vm10, %v1557_v3, %v1560_v20 }
0x1cd0   :  { %v1562_v13 = vsel %vm1288_vm5, %v1558_v21, %v1561_v14 }
0x1cd3   :  { %v1554_v9 = vpop.permute.xlu0 %1553 }
0x1cd4   :  { %v1559_v56 = vperm.slane %v1554_v9, %v3462_v25 }
0x1cd6   :  { %v1563_v23 = vsel %vm1290_vm6, %v1559_v56, %v1562_v13 }
0x1cd7   :  { %v1565_v61 = vsel %vm1293_vm14, %v1563_v23, -inf }
0x1cd8   :  { %1566 = vmax.xlane.f32.xlu1 %v1565_v61 }
0x1ce1   :  { %2061 = vrot.lane.b32.xlu2 %v3373_v48, %s3046_s25 }
0x1d3c   :  { %v2010_v24 = vpop.xlane.xlu2 %2009 }
0x1d3d   :  { %2657 = vrcp.f32 %v2010_v24 }
0x1d43   :  { %v2658_v31 = vpop.eup %2657 }
0x1d44   :  { %v2012_v10 = vmul.f32 %v2658_v31, %v2010_v24  ;;  %v2062_v33 = vpop.permute.xlu2 %2061 }
0x1d45   :  { %2081 = vmatpush.msrb.mxu2 %v2062_v33  ;;  %2347 = vmatpush.msrb.mxu0 %v2062_v33 }
0x1d46   :  { %v2013_v34 = vsub.f32 2.0, %v2012_v10 }
0x1d48   :  { %v2014_v35 = vmul.f32 %v2658_v31, %v2013_v34 }
0x1d4a   :  { %v2016_v18 = vperm.slane %v2014_v35, 0  ;;  %v2017_v55 = vperm.slane %v2014_v35, 1  ;;  %v2018_v60 = vperm.slane %v2014_v35, 2  ;;  %v2020_v0 = vperm.slane %v2014_v35, 4 }
0x1d4b   :  { %v1567_v42 = vpop.xlane.xlu1 %1566 }
0x1d4c   :  { %v1569_v49 = vperm.slane %v1567_v42, 0  ;;  %v1573_v36 = vperm.slane %v1567_v42, 4  ;;  %v2026_v45 = vmul.f32 %v3606_v6, %v2016_v18  ;;  %v2027_v58 = vmul.f32 %v3608_v37, %v2017_v55 }
0x1d4d   :  { %v2028_v6 = vmul.f32 %v3611_v50, %v2018_v60  ;;  %v1571_v1 = vperm.slane %v1567_v42, 2  ;;  %v2030_v7 = vmul.f32 %v3615_v38, %v2020_v0  ;;  %v1572_v44 = vperm.slane %v1567_v42, 3 }
0x1d4e   :  { %v1579_v41 = vsub.f32 %v3620_v40, %v1569_v49  ;;  %v1583_v46 = vsub.f32 %v1534_v32, %v1573_v36  ;;  %2037 = vperm.xlu0 %2516, %v2026_v45   ;;  %v2019_v40 = vperm.slane %v2014_v35, 3  ;;  %v1570_v32 = vperm.slane %v1567_v42, 1 }
0x1d4f   :  { %v1581_v8 = vsub.f32 %v3626_v52, %v1571_v1  ;;  %v1582_v11 = vsub.f32 %v3632_v54, %v1572_v44 }
0x1d50   :  { %v1584_v51 = vmul.f32 1.442695, %v1579_v41  ;;  %v1592_v43 = vmul.f32 1.442695, %v1583_v46  ;;  %v2029_v63 = vmul.f32 %v3617_v39, %v2019_v40  ;;  %v1580_v37 = vsub.f32 %v3629_v53, %v1570_v32 }
0x1d51   :  { %v1588_v57 = vmul.f32 1.442695, %v1581_v8  ;;  %v1590_v39 = vmul.f32 1.442695, %v1582_v11 }
0x1d52   :  { %2659 = vpow2.f32 %v1584_v51  ;;  %v1586_v4 = vmul.f32 1.442695, %v1580_v37 }
0x1d53   :  { %2661 = vpow2.f32 %v1592_v43 }
0x1d54   :  { %2663 = vpow2.f32 %v1586_v4 }
0x1d55   :  { %2665 = vpow2.f32 %v1588_v57 }
0x1d56   :  { %2040 = vperm.xlu0 %2516, %v2027_v58   ;;  %2667 = vpow2.f32 %v1590_v39 }
0x1d58   :  { %v3663_v59 = vpop.eup %2659 }
0x1d59   :  { %1600 = vperm.xlu1 %2517, %v3663_v59   ;;  %v3666_v62 = vpop.eup %2661 }
0x1d5a   :  { %1612 = vperm.xlu2 %2520, %v3666_v62   ;;  %v2664_v50 = vpop.eup %2663 }
0x1d5b   :  { %v2666_v12 = vpop.eup %2665 }
0x1d5c   :  { %v2668_v53 = vpop.eup %2667 }
0x1d5e   :  { %2043 = vperm.xlu0 %2516, %v2028_v6  }
0x1d66   :  { %2046 = vperm.xlu0 %2516, %v2029_v63  }
0x1d6e   :  { %2049 = vperm.xlu0 %2516, %v2030_v7  }
0x1d76   :  { %1603 = vperm.xlu0 %2516, %v2664_v50  }
0x1d7e   :  { %1606 = vperm.xlu0 %2516, %v2666_v12  }
0x1d86   :  { %1609 = vperm.xlu0 %2516, %v2668_v53  }
0x1db4   :  { %v1613_v28 = vpop.permute.xlu2 %1612 }
0x1db5   :  { %v1618_v10 = vperm.slane %v1613_v28, %v3462_v25 }
0x1dc0   :  { %v2038_v15 = vpop.permute.xlu0 %2037 }
0x1dc1   :  { %v2051_v26 = vperm.slane %v2038_v15, %v3462_v25 }
0x1dc8   :  { %v2041_v16 = vpop.permute.xlu0 %2040 }
0x1dc9   :  { %v2052_v52 = vperm.slane %v2041_v16, %v3462_v25 }
0x1dcb   :  { %v2056_v54 = vsel %vm1284_vm13, %v2052_v52, %v2051_v26  ;;  %v1601_v23 = vpop.permute.xlu1 %1600 }
0x1dcc   :  { %v1614_v29 = vperm.slane %v1601_v23, %v3462_v25 }
0x1dd0   :  { %v2044_v38 = vpop.permute.xlu0 %2043 }
0x1dd1   :  { %v2053_v19 = vperm.slane %v2044_v38, %v3462_v25 }
0x1dd3   :  { %v2057_v5 = vsel %vm1286_vm10, %v2053_v19, %v2056_v54 }
0x1dd8   :  { %v2047_v17 = vpop.permute.xlu0 %2046 }
0x1dd9   :  { %v2054_v20 = vperm.slane %v2047_v17, %v3462_v25 }
0x1ddb   :  { %v2058_v21 = vsel %vm1288_vm5, %v2054_v20, %v2057_v5 }
0x1de0   :  { %v2050_v3 = vpop.permute.xlu0 %2049 }
0x1de1   :  { %v2055_v14 = vperm.slane %v2050_v3, %v3462_v25 }
0x1de3   :  { %v2059_v9 = vsel %vm1290_vm6, %v2055_v14, %v2058_v21 }
0x1de4   :  { %2489 = vmatmul.msk.f32.vlgmr.msrb.gmra.mxu2 %vm1409_vm15, %v2059_v9 }
0x1de8   :  { %v1604_v56 = vpop.permute.xlu0 %1603 }
0x1de9   :  { %v1615_v61 = vperm.slane %v1604_v56, %v3462_v25 }
0x1deb   :  { %v1619_v24 = vsel %vm1284_vm13, %v1615_v61, %v1614_v29 }
0x1df0   :  { %v1607_v13 = vpop.permute.xlu0 %1606 }
0x1df1   :  { %v1616_v27 = vperm.slane %v1607_v13, %v3462_v25 }
0x1df3   :  { %v1620_v33 = vsel %vm1286_vm10, %v1616_v27, %v1619_v24 }
0x1df8   :  { %v1610_v30 = vpop.permute.xlu0 %1609 }
0x1df9   :  { %v1617_v31 = vperm.slane %v1610_v30, %v3462_v25 }
0x1dfb   :  { %v1621_v34 = vsel %vm1288_vm5, %v1617_v31, %v1620_v33 }
0x1dfc   :  { %v1622_v35 = vsel %vm1290_vm6, %v1618_v10, %v1621_v34 }
0x1dfd   :  { %v1624_v18 = vsel %vm1293_vm14, %v1622_v35, 0.0 }
0x1dfe   :  { %1625 = vadd.xlane.f32.xlu0 %v1624_v18 }
0x1e71   :  { %v1626_v42 = vpop.xlane.xlu0 %1625 }
0x1e72   :  { %2669 = vrcp.f32 %v1626_v42 }
0x1e78   :  { %v2670_v49 = vpop.eup %2669 }
0x1e79   :  { %v1628_v36 = vmul.f32 %v2670_v49, %v1626_v42 }
0x1e7b   :  { %v1629_v45 = vsub.f32 2.0, %v1628_v36 }
0x1e7d   :  { %v1630_v41 = vmul.f32 %v2670_v49, %v1629_v45 }
0x1e7f   :  { %v1633_v46 = vperm.slane %v1630_v41, 1  ;;  %v1632_v51 = vperm.slane %v1630_v41, 0  ;;  %v1635_v58 = vperm.slane %v1630_v41, 3  ;;  %v1634_v60 = vperm.slane %v1630_v41, 2 }
0x1e80   :  { %v1636_v32 = vperm.slane %v1630_v41, 4 }
0x1e81   :  { %v1643_v55 = vmul.f32 %v2664_v50, %v1633_v46  ;;  %v1642_v43 = vmul.f32 %v3663_v59, %v1632_v51  ;;  %v1645_v6 = vmul.f32 %v2668_v53, %v1635_v58  ;;  %v1644_v40 = vmul.f32 %v2666_v12, %v1634_v60  ;;  %v2083_v53 = vpop.f32.mrf.mxu2 }
0x1e82   :  { %v1646_v63 = vmul.f32 %v3666_v62, %v1636_v32 }
0x1e83   :  { %1656 = vperm.xlu2 %2520, %v1643_v55   ;;  %1653 = vperm.xlu1 %2517, %v1642_v43  }
0x1e8b   :  { %1662 = vperm.xlu2 %2520, %v1645_v6   ;;  %1659 = vperm.xlu1 %2517, %v1644_v40  }
0x1e93   :  { %1665 = vperm.xlu1 %2517, %v1646_v63  }
0x1edd   :  { %v1657_v0 = vpop.permute.xlu2 %1656 }
0x1ede   :  { %v1668_v59 = vperm.slane %v1657_v0, %v3462_v25 }
0x1ee5   :  { %v1663_v8 = vpop.permute.xlu2 %1662 }
0x1ee6   :  { %v1670_v50 = vperm.slane %v1663_v8, %v3462_v25 }
0x1ef5   :  { %v1654_v37 = vpop.permute.xlu1 %1653 }
0x1ef6   :  { %v1667_v4 = vperm.slane %v1654_v37, %v3462_v25 }
0x1ef8   :  { %v1672_v44 = vsel %vm1284_vm13, %v1668_v59, %v1667_v4 }
0x1efd   :  { %v1660_v1 = vpop.permute.xlu1 %1659 }
0x1efe   :  { %v1669_v7 = vperm.slane %v1660_v1, %v3462_v25 }
0x1f00   :  { %v1673_v57 = vsel %vm1286_vm10, %v1669_v7, %v1672_v44 }
0x1f01   :  { %v1674_v39 = vsel %vm1288_vm5, %v1670_v50, %v1673_v57 }
0x1f05   :  { %v1666_v11 = vpop.permute.xlu1 %1665 }
0x1f06   :  { %v1671_v62 = vperm.slane %v1666_v11, %v3462_v25 }
0x1f08   :  { %v1675_v12 = vsel %vm1290_vm6, %v1671_v62, %v1674_v39 }
0x1f09   :  { %2485 = vmatmul.msk.f32.vlgmr.msra.gmra.mxu3 %vm1409_vm15, %v1675_v12 }
0x1f11   :  { %2490 = vmatmul.msk.f32.vlgmr.msrb.gmra.mxu3 %vm250_vm0, %v2083_v53 }
0x1f8c   :  { %v1695_v15 = vpop.f32.mrf.mxu3 }
0x1f8d   :  { %v1786_v16 = vsel %vm250_vm0, %v1695_v15, 0.0  ;;  %2486 = vmatmul.msk.f32.vlgmr.msra.gmra.mxu0 %vm250_vm0, %v1695_v15 }
0x1f8e   :  { %1787 = vst [vmem:[%s3877_s18] sm:$0x1f] %v1786_v16 }
0x1f94   :  { %v2106_v38 = vpop.f32.mrf.mxu3 }
0x1f95   :  { %v2110_v17 = vrot.slane %v2106_v38, 1  ;;  %v2114_v52 = vperm.slane %v2106_v38, 0  ;;  %v2111_v26 = vrot.slane %v2106_v38, 2  ;;  %v2112_v20 = vrot.slane %v2106_v38, 3 }
0x1f96   :  { %v2113_v5 = vrot.slane %v2106_v38, 4 }
0x1f97   :  { %v2115_v19 = vperm.slane %v2110_v17, 0  ;;  %2119 = vrot.lane.b32.xlu2 %v2114_v52, %s3045_s7  ;;  %v2116_v54 = vperm.slane %v2111_v26, 0  ;;  %v2117_v3 = vperm.slane %v2112_v20, 0 }
0x1f98   :  { %v2118_v14 = vperm.slane %v2113_v5, 0 }
0x1f99   :  { %2121 = vrot.lane.b32.xlu1 %v2115_v19, %s3045_s7 }
0x1f9f   :  { %2123 = vrot.lane.b32.xlu2 %v2116_v54, %s3045_s7 }
0x1fa1   :  { %2125 = vrot.lane.b32.xlu1 %v2117_v3, %s3045_s7 }
0x1fa7   :  { %2127 = vrot.lane.b32.xlu2 %v2118_v14, %s3045_s7 }
0x1ff1   :  { %v2120_v21 = vpop.permute.xlu2 %2119 }
0x1ff2   :  { %v2134_v9 = vadd.f32 %v2120_v21, %v3373_v48 }
0x1ff4   :  { %2671 = vtanh.f32 %v2134_v9 }
0x1ff9   :  { %v2124_v56 = vpop.permute.xlu2 %2123 }
0x1ffa   :  { %v2672_v13 = vpop.eup %2671  ;;  %v2136_v23 = vadd.f32 %v2124_v56, %v3373_v48 }
0x1ffb   :  { %v2144_v61 = vmul.f32 %v2672_v13, %v3452_v22 }
0x1ffc   :  { %2673 = vtanh.f32 %v2136_v23 }
0x1ffd   :  { %2154 = vrot.lane.b32.xlu1 %v2144_v61, %s3046_s25 }
0x2001   :  { %v2128_v24 = vpop.permute.xlu2 %2127 }
0x2002   :  { %v2674_v27 = vpop.eup %2673  ;;  %v2138_v31 = vadd.f32 %v2128_v24, %v3373_v48 }
0x2003   :  { %v2146_v28 = vmul.f32 %v2674_v27, %v3452_v22 }
0x2005   :  { %2158 = vrot.lane.b32.xlu0 %v2146_v28, %s3046_s25 }
0x200b   :  { %v2122_v29 = vpop.permute.xlu1 %2121 }
0x200c   :  { %v2135_v30 = vadd.f32 %v2122_v29, %v3373_v48 }
0x200e   :  { %2675 = vtanh.f32 %v2135_v30 }
0x200f   :  { %2677 = vtanh.f32 %v2138_v31 }
0x2013   :  { %v2126_v10 = vpop.permute.xlu1 %2125 }
0x2014   :  { %v2676_v33 = vpop.eup %2675  ;;  %v2137_v34 = vadd.f32 %v2126_v10, %v3373_v48 }
0x2015   :  { %v2145_v35 = vmul.f32 %v2676_v33, %v3452_v22  ;;  %v2678_v18 = vpop.eup %2677 }
0x2016   :  { %2679 = vtanh.f32 %v2137_v34  ;;  %v2148_v49 = vmul.f32 %v2678_v18, %v3452_v22 }
0x2017   :  { %2156 = vrot.lane.b32.xlu2 %v2145_v35, %s3046_s25  ;;  %v3765_v35 = vpop.f32.mrf.mxu0 }
0x201c   :  { %v2680_v42 = vpop.eup %2679 }
0x201d   :  { %v2147_v36 = vmul.f32 %v2680_v42, %v3452_v22  ;;  %v1722_v42 = vrot.slane %v3765_v35, 1 }
0x201f   :  { %2162 = vrot.lane.b32.xlu2 %v2148_v49, %s3046_s25  ;;  %2160 = vrot.lane.b32.xlu1 %v2147_v36, %s3046_s25  ;;  %v1727_v36 = vperm.slane %v1722_v42, 0 }
0x206f   :  { %v2155_v45 = vpop.permute.xlu1 %2154 }
0x2070   :  { %v2169_v41 = vsel %vm250_vm0, %v2155_v45, 0.0 }
0x2071   :  { %v2157_v46 = vpop.permute.xlu2 %2156  ;;  %2170 = vadd.xlane.f32.xlu1 %v2169_v41 }
0x2072   :  { %v2172_v51 = vsel %vm250_vm0, %v2157_v46, 0.0  ;;  %v1723_v46 = vrot.slane %v3765_v35, 2 }
0x2073   :  { %2173 = vadd.xlane.f32.xlu2 %v2172_v51  ;;  %v1737_v51 = vadd.f32 %v1727_v36, %v3371_v47 }
0x2077   :  { %v2159_v55 = vpop.permute.xlu0 %2158 }
0x2078   :  { %v2175_v43 = vsel %vm250_vm0, %v2159_v55, 0.0 }
0x2079   :  { %2176 = vadd.xlane.f32.xlu0 %v2175_v43  ;;  %v2163_v58 = vpop.permute.xlu2 %2162 }
0x207a   :  { %v2181_v60 = vsel %vm250_vm0, %v2163_v58, 0.0 }
0x207b   :  { %2182 = vadd.xlane.f32.xlu2 %v2181_v60 }
0x2091   :  { %v2161_v22 = vpop.permute.xlu1 %2160 }
0x2092   :  { %v2178_v6 = vsel %vm250_vm0, %v2161_v22, 0.0  ;;  %v1728_v22 = vperm.slane %v1723_v46, 0 }
0x2093   :  { %2179 = vadd.xlane.f32.xlu1 %v2178_v6 }
0x20e4   :  { %v2171_v40 = vpop.xlane.xlu1 %2170 }
0x20e5   :  { %v2184_v32 = vadd.f32 %v2171_v40, %v3556_v2 }
0x20e6   :  { %v2174_v63 = vpop.xlane.xlu2 %2173 }
0x20e7   :  { %v2185_v37 = vadd.f32 %v2174_v63, %v3556_v2  ;;  %2195 = vperm.xlu0 %2516, %v2184_v32  }
0x20e9   :  { %2198 = vperm.xlu1 %2517, %v2185_v37  }
0x20ec   :  { %v2177_v0 = vpop.xlane.xlu0 %2176 }
0x20ed   :  { %v2186_v1 = vadd.f32 %v2177_v0, %v3556_v2  ;;  %v1724_v0 = vrot.slane %v3765_v35, 3 }
0x20ee   :  { %v2183_v4 = vpop.xlane.xlu2 %2182 }
0x20ef   :  { %2201 = vperm.xlu2 %2520, %v2186_v1   ;;  %v2188_v7 = vadd.f32 %v2183_v4, %v3556_v2 }
0x20f7   :  { %2207 = vperm.xlu2 %2520, %v2188_v7  }
0x2106   :  { %v2180_v59 = vpop.xlane.xlu1 %2179 }
0x2107   :  { %v2187_v8 = vadd.f32 %v2180_v59, %v3556_v2 }
0x2109   :  { %2204 = vperm.xlu0 %2516, %v2187_v8  }
0x2149   :  { %v2202_v44 = vpop.permute.xlu2 %2201 }
0x214a   :  { %v2211_v53 = vperm.slane %v2202_v44, %v3462_v25  ;;  %v1729_v44 = vperm.slane %v1724_v0, 0 }
0x2151   :  { %v2208_v39 = vpop.permute.xlu2 %2207 }
0x2152   :  { %v2213_v38 = vperm.slane %v2208_v39, %v3462_v25 }
0x2159   :  { %v2196_v57 = vpop.permute.xlu0 %2195 }
0x215a   :  { %v2209_v62 = vperm.slane %v2196_v57, %v3462_v25 }
0x215b   :  { %v2199_v50 = vpop.permute.xlu1 %2198 }
0x215c   :  { %v2210_v11 = vperm.slane %v2199_v50, %v3462_v25  ;;  %v1739_v50 = vadd.f32 %v1729_v44, %v3371_v47  ;;  %v1725_v44 = vrot.slane %v3765_v35, 4 }
0x215e   :  { %v2214_v12 = vsel %vm1284_vm13, %v2210_v11, %v2209_v62 }
0x215f   :  { %v2215_v2 = vsel %vm1286_vm10, %v2211_v53, %v2214_v12 }
0x217b   :  { %v2205_v15 = vpop.permute.xlu0 %2204 }
0x217c   :  { %v2212_v16 = vperm.slane %v2205_v15, %v3462_v25 }
0x217e   :  { %v2216_v17 = vsel %vm1288_vm5, %v2212_v16, %v2215_v2 }
0x217f   :  { %v2217_v52 = vsel %vm1290_vm6, %v2213_v38, %v2216_v17 }
0x2180   :  { %v2219_v19 = vsel %vm1293_vm14, %v2217_v52, -inf }
0x2181   :  { %2220 = vmax.xlane.f32.xlu1 %v2219_v19 }
0x21f4   :  { %v2221_v26 = vpop.xlane.xlu1 %2220 }
0x21f5   :  { %v2223_v20 = vperm.slane %v2221_v26, 0  ;;  %v2224_v54 = vperm.slane %v2221_v26, 1  ;;  %v2225_v3 = vperm.slane %v2221_v26, 2  ;;  %v2226_v21 = vperm.slane %v2221_v26, 3 }
0x21f6   :  { %v2227_v61 = vperm.slane %v2221_v26, 4 }
0x21f7   :  { %v2233_v5 = vsub.f32 %v2184_v32, %v2223_v20  ;;  %v2234_v14 = vsub.f32 %v2185_v37, %v2224_v54  ;;  %v2235_v13 = vsub.f32 %v2186_v1, %v2225_v3  ;;  %v2236_v23 = vsub.f32 %v2187_v8, %v2226_v21  ;;  %v3782_v8 = vld [vmem:[#allocation21] ss:$0 sm:$0xff] }
0x21f8   :  { %v2237_v24 = vsub.f32 %v2188_v7, %v2227_v61  ;;  %v1738_v1 = vadd.f32 %v1728_v22, %v3371_v47 }
0x21f9   :  { %v2238_v9 = vmul.f32 1.442695, %v2233_v5  ;;  %v2240_v56 = vmul.f32 1.442695, %v2234_v14  ;;  %v2242_v27 = vmul.f32 1.442695, %v2235_v13 }
0x21fa   :  { %v2244_v28 = vmul.f32 1.442695, %v2236_v23  ;;  %v2246_v31 = vmul.f32 1.442695, %v2237_v24  ;;  %v1726_v23 = vperm.slane %v3765_v35, 0 }
0x21fb   :  { %2681 = vpow2.f32 %v2238_v9 }
0x21fc   :  { %2683 = vpow2.f32 %v2240_v56  ;;  %v1736_v61 = vadd.f32 %v1726_v23, %v3371_v47 }
0x21fd   :  { %2685 = vpow2.f32 %v2242_v27 }
0x21fe   :  { %2687 = vpow2.f32 %v2244_v28 }
0x21ff   :  { %2689 = vpow2.f32 %v2246_v31 }
0x2200   :  { %2691 = vtanh.f32 %v1737_v51 }
0x2201   :  { %v3753_v29 = vpop.eup %2681  ;;  %2693 = vtanh.f32 %v1738_v1 }
0x2202   :  { %v3755_v30 = vpop.eup %2683  ;;  %2254 = vperm.xlu0 %2516, %v3753_v29   ;;  %2695 = vtanh.f32 %v1739_v50 }
0x2203   :  { %2257 = vperm.xlu2 %2520, %v3755_v30   ;;  %v3759_v10 = vpop.eup %2685 }
0x2204   :  { %v2688_v33 = vpop.eup %2687 }
0x2205   :  { %v3762_v34 = vpop.eup %2689 }
0x2206   :  { %v2692_v59 = vpop.eup %2691 }
0x2207   :  { %v1750_v57 = vmul.f32 %v2692_v59, %v3782_v8  ;;  %v2694_v62 = vpop.eup %2693 }
0x2208   :  { %v1751_v39 = vmul.f32 %v2694_v62, %v3782_v8  ;;  %v2696_v53 = vpop.eup %2695 }
0x2209   :  { %v1757_v11 = vsel %vm250_vm0, %v1750_v57, 0.0  ;;  %v1752_v15 = vmul.f32 %v2696_v53, %v3782_v8 }
0x220a   :  { %2260 = vperm.xlu0 %2516, %v3759_v10   ;;  %v1760_v12 = vsel %vm250_vm0, %v1751_v39, 0.0 }
0x220b   :  { %2263 = vperm.xlu2 %2520, %v2688_v33   ;;  %v1763_v16 = vsel %vm250_vm0, %v1752_v15, 0.0 }
0x2212   :  { %2266 = vperm.xlu0 %2516, %v3762_v34  }
0x225d   :  { %v2258_v49 = vpop.permute.xlu2 %2257 }
0x225e   :  { %v2269_v43 = vperm.slane %v2258_v49, %v3462_v25 }
0x2265   :  { %v2264_v58 = vpop.permute.xlu2 %2263 }
0x2266   :  { %v2271_v40 = vperm.slane %v2264_v58, %v3462_v25 }
0x2274   :  { %v2255_v18 = vpop.permute.xlu0 %2254 }
0x2275   :  { %v2268_v41 = vperm.slane %v2255_v18, %v3462_v25 }
0x2277   :  { %v2273_v60 = vsel %vm1284_vm13, %v2269_v43, %v2268_v41 }
0x227c   :  { %v2261_v45 = vpop.permute.xlu0 %2260 }
0x227d   :  { %v2270_v55 = vperm.slane %v2261_v45, %v3462_v25 }
0x227f   :  { %v2274_v6 = vsel %vm1286_vm10, %v2270_v55, %v2273_v60 }
0x2280   :  { %v2275_v37 = vsel %vm1288_vm5, %v2271_v40, %v2274_v6 }
0x2284   :  { %v2267_v32 = vpop.permute.xlu0 %2266 }
0x2285   :  { %v2272_v63 = vperm.slane %v2267_v32, %v3462_v25 }
0x2287   :  { %v2276_v4 = vsel %vm1290_vm6, %v2272_v63, %v2275_v37 }
0x2288   :  { %v2278_v7 = vsel %vm1293_vm14, %v2276_v4, 0.0 }
0x2289   :  { %2279 = vadd.xlane.f32.xlu2 %v2278_v7 }
0x2291   :  { %1758 = vadd.xlane.f32.xlu2 %v1757_v11  ;;  %v1730_v11 = vperm.slane %v1725_v44, 0 }
0x2299   :  { %1761 = vadd.xlane.f32.xlu2 %v1760_v12 }
0x22a1   :  { %1764 = vadd.xlane.f32.xlu2 %v1763_v16  ;;  %v1740_v16 = vadd.f32 %v1730_v11, %v3371_v47 }
0x22fc   :  { %v2280_v38 = vpop.xlane.xlu2 %2279 }
0x22fd   :  { %2697 = vrcp.f32 %v2280_v38 }
0x22fe   :  { %2699 = vtanh.f32 %v1736_v61 }
0x2303   :  { %v2698_v2 = vpop.eup %2697 }
0x2304   :  { %v2282_v17 = vmul.f32 %v2698_v2, %v2280_v38  ;;  %v2700_v27 = vpop.eup %2699 }
0x2305   :  { %v1749_v28 = vmul.f32 %v2700_v27, %v3782_v8 }
0x2306   :  { %v2283_v52 = vsub.f32 2.0, %v2282_v17 }
0x2308   :  { %v2284_v19 = vmul.f32 %v2698_v2, %v2283_v52 }
0x230a   :  { %v2289_v26 = vperm.slane %v2284_v19, 3  ;;  %v2286_v20 = vperm.slane %v2284_v19, 0  ;;  %v2287_v5 = vperm.slane %v2284_v19, 1  ;;  %v2288_v21 = vperm.slane %v2284_v19, 2 }
0x230b   :  { %v2290_v56 = vperm.slane %v2284_v19, 4 }
0x230c   :  { %v2299_v54 = vmul.f32 %v2688_v33, %v2289_v26  ;;  %v2296_v3 = vmul.f32 %v3753_v29, %v2286_v20  ;;  %v2297_v14 = vmul.f32 %v3755_v30, %v2287_v5  ;;  %v2298_v9 = vmul.f32 %v3759_v10, %v2288_v21 }
0x230d   :  { %v2300_v13 = vmul.f32 %v3762_v34, %v2290_v56  ;;  %v1754_v29 = vsel %vm250_vm0, %v1749_v28, 0.0 }
0x230e   :  { %2316 = vperm.xlu1 %2517, %v2299_v54   ;;  %2307 = vperm.xlu0 %2516, %v2296_v3  }
0x2316   :  { %2310 = vperm.xlu0 %2516, %v2297_v14   ;;  %v1759_v14 = vpop.xlane.xlu2 %1758 }
0x231e   :  { %2313 = vperm.xlu0 %2516, %v2298_v9   ;;  %v1762_v21 = vpop.xlane.xlu2 %1761 }
0x2326   :  { %2319 = vperm.xlu0 %2516, %v2300_v13   ;;  %v1765_v9 = vpop.xlane.xlu2 %1764 }
0x2350   :  { %1755 = vadd.xlane.f32.xlu0 %v1754_v29 }
0x2380   :  { %v2308_v30 = vpop.permute.xlu0 %2307  ;;  %v2317_v18 = vpop.permute.xlu1 %2316 }
0x2381   :  { %v2321_v34 = vperm.slane %v2308_v30, %v3462_v25  ;;  %v2324_v36 = vperm.slane %v2317_v18, %v3462_v25 }
0x2388   :  { %v2311_v24 = vpop.permute.xlu0 %2310 }
0x2389   :  { %v2322_v10 = vperm.slane %v2311_v24, %v3462_v25 }
0x238b   :  { %v2326_v42 = vsel %vm1284_vm13, %v2322_v10, %v2321_v34 }
0x2390   :  { %v2314_v31 = vpop.permute.xlu0 %2313 }
0x2391   :  { %v2323_v33 = vperm.slane %v2314_v31, %v3462_v25 }
0x2393   :  { %v2327_v49 = vsel %vm1286_vm10, %v2323_v33, %v2326_v42 }
0x2394   :  { %v2328_v46 = vsel %vm1288_vm5, %v2324_v36, %v2327_v49  ;;  %v1776_v36 = vperm.slane %v1762_v21, %v3462_v25 }
0x2398   :  { %v2320_v45 = vpop.permute.xlu0 %2319 }
0x2399   :  { %v2325_v41 = vperm.slane %v2320_v45, %v3462_v25 }
0x239b   :  { %v2329_v51 = vsel %vm1290_vm6, %v2325_v41, %v2328_v46 }
0x239c   :  { %2491 = vmatmul.msk.f32.vlgmr.msrb.gmra.mxu0 %vm1409_vm15, %v2329_v51  ;;  %v1777_v51 = vperm.slane %v1765_v9, %v3462_v25 }
0x23c3   :  { %v1756_v56 = vpop.xlane.xlu0 %1755 }
0x23c4   :  { %v1774_v28 = vperm.slane %v1756_v56, %v3462_v25 }
0x2419   :  { %v2349_v55 = vpop.f32.mrf.mxu0 }
0x241a   :  { %v2438_v43 = vsel %vm250_vm0, %v2349_v55, 0.0  ;;  %2492 = vmatmul.msk.f32.vlgmr.msrb.gmra.mxu1 %vm250_vm0, %v2349_v55 }
0x241b   :  { %2494 = vst [vmem:[%s3877_s18 + $0x8] sm:$0x1f] %v2438_v43 }
0x2497   :  { %v2372_v58 = vpop.f32.mrf.mxu1 }
0x2498   :  { %v2376_v60 = vrot.slane %v2372_v58, 1  ;;  %v2377_v22 = vrot.slane %v2372_v58, 2  ;;  %v2378_v6 = vrot.slane %v2372_v58, 3  ;;  %v2379_v40 = vrot.slane %v2372_v58, 4 }
0x2499   :  { %v2380_v32 = vperm.slane %v2372_v58, 0 }
0x249a   :  { %v2381_v63 = vperm.slane %v2376_v60, 0  ;;  %v2382_v37 = vperm.slane %v2377_v22, 0  ;;  %v2383_v0 = vperm.slane %v2378_v6, 0  ;;  %v2384_v4 = vperm.slane %v2379_v40, 0 }
0x249b   :  { %v2390_v1 = vadd.f32 %v2380_v32, %v3373_v48 }
0x249c   :  { %v2391_v7 = vadd.f32 %v2381_v63, %v3373_v48  ;;  %v2393_v59 = vadd.f32 %v2383_v0, %v3373_v48  ;;  %v2392_v57 = vadd.f32 %v2382_v37, %v3373_v48  ;;  %v2394_v50 = vadd.f32 %v2384_v4, %v3373_v48 }
0x249d   :  { %2701 = vtanh.f32 %v2390_v1 }
0x249e   :  { %2703 = vtanh.f32 %v2391_v7 }
0x249f   :  { %2705 = vtanh.f32 %v2393_v59 }
0x24a0   :  { %2707 = vtanh.f32 %v2392_v57 }
0x24a1   :  { %2709 = vtanh.f32 %v2394_v50 }
0x24a2   :  { %2711 = vtanh.f32 %v1740_v16 }
0x24a3   :  { %v2702_v62 = vpop.eup %2701 }
0x24a4   :  { %v2704_v39 = vpop.eup %2703  ;;  %v2400_v12 = vmul.f32 %v2702_v62, %v3782_v8 }
0x24a5   :  { %v2401_v53 = vmul.f32 %v2704_v39, %v3782_v8  ;;  %v2706_v15 = vpop.eup %2705 }
0x24a6   :  { %v2405_v35 = vsel %vm250_vm0, %v2400_v12, 0.0  ;;  %v2403_v38 = vmul.f32 %v2706_v15, %v3782_v8  ;;  %v2708_v2 = vpop.eup %2707 }
0x24a7   :  { %2406 = vadd.xlane.f32.xlu1 %v2405_v35  ;;  %v2408_v48 = vsel %vm250_vm0, %v2401_v53, 0.0  ;;  %v2710_v52 = vpop.eup %2709  ;;  %v2402_v19 = vmul.f32 %v2708_v2, %v3782_v8 }
0x24a8   :  { %2409 = vadd.xlane.f32.xlu2 %v2408_v48  ;;  %v2414_v17 = vsel %vm250_vm0, %v2403_v38, 0.0  ;;  %v2404_v26 = vmul.f32 %v2710_v52, %v3782_v8  ;;  %v2712_v20 = vpop.eup %2711 }
0x24a9   :  { %2415 = vadd.xlane.f32.xlu0 %v2414_v17  ;;  %v2411_v47 = vsel %vm250_vm0, %v2402_v19, 0.0  ;;  %v1753_v3 = vmul.f32 %v2712_v20, %v3782_v8  ;;  %v1775_v8 = vperm.slane %v1759_v14, %v3462_v25 }
0x24aa   :  { %v2417_v54 = vsel %vm250_vm0, %v2404_v26, 0.0 }
0x24ab   :  { %v1766_v5 = vsel %vm250_vm0, %v1753_v3, 0.0  ;;  %v1779_v42 = vsel %vm1284_vm13, %v1775_v8, %v1774_v28 }
0x24ac   :  { %v1780_v46 = vsel %vm1286_vm10, %v1776_v36, %v1779_v42 }
0x24ad   :  { %v1781_v58 = vsel %vm1288_vm5, %v1777_v51, %v1780_v46 }
0x24b0   :  { %2412 = vadd.xlane.f32.xlu2 %v2411_v47 }
0x24b1   :  { %2418 = vadd.xlane.f32.xlu0 %v2417_v54 }
0x24b8   :  { %1767 = vadd.xlane.f32.xlu2 %v1766_v5 }
0x251a   :  { %v2407_v61 = vpop.xlane.xlu1 %2406 }
0x251b   :  { %v2410_v13 = vpop.xlane.xlu2 %2409  ;;  %v2425_v29 = vperm.slane %v2407_v61, %v3462_v25 }
0x251c   :  { %v2416_v23 = vpop.xlane.xlu0 %2415  ;;  %v2426_v27 = vperm.slane %v2410_v13, %v3462_v25 }
0x251d   :  { %v2428_v31 = vperm.slane %v2416_v23, %v3462_v25 }
0x251e   :  { %v2430_v10 = vsel %vm1284_vm13, %v2426_v27, %v2425_v29 }
0x2523   :  { %v2413_v30 = vpop.xlane.xlu2 %2412 }
0x2524   :  { %v2427_v24 = vperm.slane %v2413_v30, %v3462_v25  ;;  %v2419_v33 = vpop.xlane.xlu0 %2418 }
0x2525   :  { %v2429_v34 = vperm.slane %v2419_v33, %v3462_v25 }
0x2526   :  { %v2431_v18 = vsel %vm1286_vm10, %v2427_v24, %v2430_v10 }
0x2527   :  { %v2432_v49 = vsel %vm1288_vm5, %v2428_v31, %v2431_v18 }
0x2528   :  { %v2433_v45 = vsel %vm1290_vm6, %v2429_v34, %v2432_v49 }
0x2529   :  { %v2435_v41 = vsel %vm1409_vm15, %v2433_v45, 0.0 }
0x252a   :  { %2493 = vst [vmem:[%s3876_s17 + $0x8] sm:$0x1f] %v2435_v41 }
0x252b   :  { %v1768_v55 = vpop.xlane.xlu2 %1767 }
0x252c   :  { %v1778_v43 = vperm.slane %v1768_v55, %v3462_v25 }
0x252e   :  { %v1782_v60 = vsel %vm1290_vm6, %v1778_v43, %v1781_v58 }
0x252f   :  { %v1784_v22 = vsel %vm1409_vm15, %v1782_v60, 0.0 }
0x2530   :  { %1785 = vst [vmem:[%s3876_s17] sm:$0x1f] %v1784_v22 }
0x2531   :  { %2449 = vsyncpa [#allocation5], 1 }
0x2532   :  { %2450 = vsyncpa [#allocation7], 1 }
0x2533   :  { %2451 = vsyncpa [#allocation10], 1 }
0x2534   :  { %2452 = vsyncpa [#allocation13], 1 }
0x2535   :  { %2453 = vsyncpa [#allocation16], 1 }
0x2536   :  { %2454 = vsyncpa [#allocation19], 1 }
0x2537   :  { %2455 = vsyncpa [#allocation22], 1 }

</bundles_post_ra>
